<compile_context>
chip_gen: v7x
topology: tpu7x:2x2x1
jax: 0.10.0
libtpu: 0.0.40
codegen_flags: <defaults>
</compile_context>

<pallas_src>
import functools

import jax
import jax.numpy as jnp
from jax.experimental import pallas as pl
from jax.experimental.pallas import tpu as pltpu

CHID_PAD = 128       # hidden channels padded to a full lane width
NC_PAD = 128         # class logits padded to a full lane width
NEG = -1e9           # logit value used for padded (non-existent) classes
SCE_TILE = 128       # row tile of the loss reduction (128x128 f32 = 64 KiB)
EMA_LANES = 512      # lane width of the flat parameter slab
EMA_TILE_ROWS = 128  # 128 x 512 f32 = 256 KiB per EMA-blend block
AGE_PAD = 80.0       # padded ages -> weight ~ 1.8e-35 without overflow


# ---------------------------------------------------------------------------
# Kernel 1: fused model forward for one batch tile (Bt images) per grid step:
#   im2col into a VMEM scratch -> single K=9C conv matmul (bf16 operands,
#   f32 accum) -> folded BN(eval)+bias -> ReLU -> global average pool ->
#   FC head -> entropy / argmax pseudo-label.  Logits are written lane-dense;
#   entropy / label are written as (1, Bt) rows.
# ---------------------------------------------------------------------------
def fused_forward_kernel(x_ref, wconv_ref, scale_ref, shift_ref, fcw_ref,
                         fcb_ref, logits_ref, ent_ref, lbl_ref, patch_ref,
                         *, H, W):
    Bt = x_ref.shape[0]
    C = x_ref.shape[-1]
    nc_p = fcw_ref.shape[-1]
    HW = H * W

    for b in range(Bt):                          # static unroll over the tile
        # single upcast of the small padded image; slicing/reshape stay on
        # the well-supported f32 layout path (image is bf16 in HBM).
        xb = x_ref[b].astype(jnp.float32)        # [H+2, W+2, C]

        # ---- im2col: nine shifted slabs -> one (HW, 9C) VMEM patch ----
        for k in range(9):
            dh, dw = divmod(k, 3)
            patch_ref[:, k * C:(k + 1) * C] = (
                xb[dh:dh + H, dw:dw + W, :].reshape(HW, C))
        patch = patch_ref[...].astype(jnp.bfloat16)       # one downcast

        # ---- single K=9C conv matmul (one RHS weight push per image) ----
        acc = jnp.dot(patch, wconv_ref[...],
                      preferred_element_type=jnp.float32)  # [HW, CHID_PAD]

        # ---- folded BN (+ conv bias) + ReLU, then global average pool ----
        feat = jnp.maximum(acc * scale_ref[...] + shift_ref[...], 0.0)
        pooled = jnp.mean(feat, axis=0, keepdims=True)     # [1, CHID_PAD]

        # ---- FC head (padded classes get bias = NEG -> never win) ----
        logits = jnp.dot(pooled.astype(jnp.bfloat16), fcw_ref[...],
                         preferred_element_type=jnp.float32) + fcb_ref[...]
        logits_ref[b:b + 1, :] = logits                    # lane-dense row

        # ---- predictive entropy + argmax pseudo-label ----
        m = jnp.max(logits, axis=-1, keepdims=True)
        e = jnp.exp(logits - m)
        p = e / jnp.sum(e, axis=-1, keepdims=True)
        ent = jnp.sum(-p * jnp.log(p + 1e-6), axis=-1, keepdims=True)
        ent_ref[0:1, b:b + 1] = ent
        iota = jax.lax.broadcasted_iota(jnp.int32, logits.shape, 1)
        lbl = jnp.min(jnp.where(logits == m, iota, nc_p),
                      axis=-1, keepdims=True)
        lbl_ref[0:1, b:b + 1] = lbl


def fused_forward(x_pad, w9, scale, shift, fcw, fcb, *, H, W, bt):
    B = x_pad.shape[0]
    C = x_pad.shape[-1]
    assert B % bt == 0
    nb = B // bt
    kernel = functools.partial(fused_forward_kernel, H=H, W=W)
    return pl.pallas_call(
        kernel,
        out_shape=(
            jax.ShapeDtypeStruct((B, NC_PAD), jnp.float32),   # logits
            jax.ShapeDtypeStruct((nb, bt), jnp.float32),      # entropy rows
            jax.ShapeDtypeStruct((nb, bt), jnp.int32),        # label rows
        ),
        grid=(nb,),
        in_specs=[
            pl.BlockSpec((bt, H + 2, W + 2, C), lambda b: (b, 0, 0, 0)),
            pl.BlockSpec((9 * C, CHID_PAD), lambda b: (0, 0)),
            pl.BlockSpec((1, CHID_PAD), lambda b: (0, 0)),
            pl.BlockSpec((1, CHID_PAD), lambda b: (0, 0)),
            pl.BlockSpec((CHID_PAD, NC_PAD), lambda b: (0, 0)),
            pl.BlockSpec((1, NC_PAD), lambda b: (0, 0)),
        ],
        out_specs=(
            pl.BlockSpec((bt, NC_PAD), lambda b: (b, 0)),
            pl.BlockSpec((1, bt), lambda b: (b, 0)),
            pl.BlockSpec((1, bt), lambda b: (b, 0)),
        ),
        scratch_shapes=[pltpu.VMEM((H * W, 9 * C), jnp.float32)],
        compiler_params=pltpu.CompilerParams(
            dimension_semantics=("parallel",)),
    )(x_pad, w9, scale, shift, fcw, fcb)


# ---------------------------------------------------------------------------
# Kernel 2: mean( softmax_entropy(stu, ema) * timeliness(ages) )
#           as a tiled grid reduction with an output-resident accumulator.
# ---------------------------------------------------------------------------
def weighted_sce_kernel(stu_ref, ema_ref, ages_ref, out_ref, *, inv_n):
    @pl.when(pl.program_id(0) == 0)
    def _():
        out_ref[...] = jnp.zeros_like(out_ref)

    x = stu_ref[...]                                    # [TILE, NC_PAD]
    xe = ema_ref[...]
    mx = jnp.max(x, axis=1, keepdims=True)
    lse = mx + jnp.log(jnp.sum(jnp.exp(x - mx), axis=1, keepdims=True))
    log_sm_x = x - lse                                  # log_softmax(stu)
    me = jnp.max(xe, axis=1, keepdims=True)
    ee = jnp.exp(xe - me)
    p_ema = ee / jnp.sum(ee, axis=1, keepdims=True)     # softmax(ema)
    ent = jnp.sum(-p_ema * log_sm_x, axis=1, keepdims=True)   # [TILE, 1]
    # timeliness_reweighting: exp(-a)/(1+exp(-a)) == 1/(1+exp(a)); one exp.
    w = 1.0 / (1.0 + jnp.exp(ages_ref[...]))
    out_ref[...] += jnp.sum(ent * w).reshape(1, 1)

    @pl.when(pl.program_id(0) == pl.num_programs(0) - 1)
    def _():
        out_ref[...] = out_ref[...] * inv_n             # finalize: mean


def weighted_softmax_entropy_loss(stu, ema, ages, *, inv_n, tile=SCE_TILE):
    n_pad, nc_p = stu.shape
    return pl.pallas_call(
        functools.partial(weighted_sce_kernel, inv_n=inv_n),
        out_shape=jax.ShapeDtypeStruct((1, 1), jnp.float32),
        grid=(n_pad // tile,),
        in_specs=[
            pl.BlockSpec((tile, nc_p), lambda i: (i, 0)),
            pl.BlockSpec((tile, nc_p), lambda i: (i, 0)),
            pl.BlockSpec((tile, 1), lambda i: (i, 0)),
        ],
        out_specs=pl.BlockSpec((1, 1), lambda i: (0, 0)),
        compiler_params=pltpu.CompilerParams(
            dimension_semantics=("arbitrary",)),
    )(stu, ema, ages)


# ---------------------------------------------------------------------------
# Kernel 3: EMA parameter blend  ema = (1-nu)*ema + nu*param  (in place),
#           tiled in 256 KiB f32 blocks (HBM-bandwidth-bound).
# ---------------------------------------------------------------------------
def ema_update_kernel(ema_ref, param_ref, out_ref, *, nu):
    out_ref[...] = (1.0 - nu) * ema_ref[...] + nu * param_ref[...]


def ema_update(ema_flat, param_flat, nu, *, tile_rows=EMA_TILE_ROWS):
    R, Ccols = ema_flat.shape
    assert R % tile_rows == 0
    return pl.pallas_call(
        functools.partial(ema_update_kernel, nu=nu),
        out_shape=jax.ShapeDtypeStruct((R, Ccols), jnp.float32),
        grid=(R // tile_rows,),
        in_specs=[
            pl.BlockSpec((tile_rows, Ccols), lambda i: (i, 0)),
            pl.BlockSpec((tile_rows, Ccols), lambda i: (i, 0)),
        ],
        out_specs=pl.BlockSpec((tile_rows, Ccols), lambda i: (i, 0)),
        input_output_aliases={0: 0},   # blend in place into the EMA slab
        compiler_params=pltpu.CompilerParams(
            dimension_semantics=("parallel",)),
    )(ema_flat, param_flat)


# ---------------------------------------------------------------------------
# RoTTA (Pallas-backed). The synthetic adapted network is
#   Conv2d(Cin, Chid, 3, pad=1) -> BatchNorm2d(eval) -> ReLU -> GAP -> Linear.
# CSTU memory, augmentation and the optimizer step are host-side state.
# ---------------------------------------------------------------------------
class RoTTAPallas:
    def __init__(self, key, *, cin=4, chid=32, num_class=10, nu=0.001):
        k = jax.random.split(key, 6)
        self.nu = nu
        self.num_class = num_class
        self.conv_w = 0.1 * jax.random.normal(k[0], (chid, cin, 3, 3), jnp.float32)
        self.conv_b = 0.1 * jax.random.normal(k[1], (chid,), jnp.float32)
        self.bn_gamma = 1.0 + 0.1 * jax.random.normal(k[2], (chid,), jnp.float32)
        self.bn_beta = 0.1 * jax.random.normal(k[3], (chid,), jnp.float32)
        self.bn_mean = jnp.zeros((chid,), jnp.float32)
        self.bn_var = jnp.ones((chid,), jnp.float32)
        self.fc_w = 0.1 * jax.random.normal(k[4], (num_class, chid), jnp.float32)
        self.fc_b = 0.1 * jax.random.normal(k[5], (num_class,), jnp.float32)

    def _packed_weights(self):
        chid, cin = self.conv_w.shape[0], self.conv_w.shape[1]
        nc = self.num_class
        # [Cout, Cin, 3, 3] -> [(dh*3+dw)*Cin + cin, CHID_PAD], bf16
        w9 = jnp.transpose(self.conv_w, (2, 3, 1, 0)).reshape(9 * cin, chid)
        w9 = jnp.pad(w9, ((0, 0), (0, CHID_PAD - chid))).astype(jnp.bfloat16)
        inv_std = 1.0 / jnp.sqrt(self.bn_var + 1e-5)
        scale = jnp.pad(self.bn_gamma * inv_std, (0, CHID_PAD - chid))[None, :]
        shift = jnp.pad(self.bn_beta - (self.bn_mean - self.conv_b)
                        * self.bn_gamma * inv_std,
                        (0, CHID_PAD - chid))[None, :]
        fcw = jnp.pad(self.fc_w.T,
                      ((0, CHID_PAD - chid), (0, NC_PAD - nc))).astype(jnp.bfloat16)
        fcb = jnp.pad(self.fc_b, (0, NC_PAD - nc), constant_values=NEG)[None, :]
        return w9, scale, shift, fcw, fcb

    def _forward_full(self, x):
        B, C, H, W = x.shape
        nc = self.num_class
        # batch tile: a multiple of 8 (sublane-aligned blocks) when possible,
        # otherwise the whole batch (block == full array dim is always legal).
        bt = 8 if (B > 8 and B % 8 == 0) else B
        w9, scale, shift, fcw, fcb = self._packed_weights()
        xp = jnp.transpose(x, (0, 2, 3, 1))                       # NHWC
        xp = jnp.pad(xp, ((0, 0), (1, 1), (1, 1), (0, 0))).astype(jnp.bfloat16)
        logits_p, ent, lbl = fused_forward(
            xp, w9, scale, shift, fcw, fcb, H=H, W=W, bt=bt)
        logits = logits_p[:, :nc]
        prob = jax.nn.softmax(logits, axis=1)      # recomputed on host (cheap)
        return logits, prob, ent.reshape(B, 1), lbl.reshape(B, 1)

    def model_forward(self, x):
        return self._forward_full(x)[0]

    # ---- RoTTA.forward: EMA inference + pseudo-label / uncertainty stats ----
    def forward(self, x):
        ema_out, predict, entropy, pseudo_label = self._forward_full(x)
        # TODO(synk): CSTU memory insertion and the update_frequency-gated
        # backprop / optimizer step are host-side stateful control flow.
        return ema_out, predict, entropy, pseudo_label

    # ---- pieces of update_model, expressed as kernels ----
    def supervised_loss(self, stu_logits, ema_logits, ages):
        N, nc = stu_logits.shape
        n_pad = ((N + SCE_TILE - 1) // SCE_TILE) * SCE_TILE

        def prep(z):
            z = jnp.pad(z, ((0, 0), (0, NC_PAD - nc)), constant_values=NEG)
            return jnp.pad(z, ((0, n_pad - N), (0, 0)))

        # pad ages with 80.0 -> weight ~ 1.8e-35 (no inf in vregs)
        ages = jnp.pad(ages.reshape(N, 1).astype(jnp.float32),
                       ((0, n_pad - N), (0, 0)), constant_values=AGE_PAD)
        return weighted_softmax_entropy_loss(
            prep(stu_logits), prep(ema_logits), ages, inv_n=1.0 / N)

    def update_ema_variables(self, student_params_flat, ema_params_flat):
        return ema_update(ema_params_flat, student_params_flat, self.nu)

    def flat_params(self):
        leaves = [self.conv_w, self.conv_b, self.bn_gamma, self.bn_beta,
                  self.fc_w, self.fc_b]
        flat = jnp.concatenate([p.reshape(-1) for p in leaves])
        chunk = EMA_TILE_ROWS * EMA_LANES
        pad = (-flat.shape[0]) % chunk
        flat = jnp.pad(flat, (0, pad))
        return flat.reshape(-1, EMA_LANES)


# ---------------------------------------------------------------------------
# Pure-JAX f32 reference for sanity checks
# ---------------------------------------------------------------------------
def reference_forward(m, x):
    y = jax.lax.conv_general_dilated(
        x, m.conv_w, (1, 1), ((1, 1), (1, 1)),
        dimension_numbers=("NCHW", "OIHW", "NCHW"))
    y = y + m.conv_b[None, :, None, None]
    y = (y - m.bn_mean[None, :, None, None]) / jnp.sqrt(
        m.bn_var[None, :, None, None] + 1e-5)
    y = y * m.bn_gamma[None, :, None, None] + m.bn_beta[None, :, None, None]
    y = jnp.maximum(y, 0.0)
    pooled = y.mean(axis=(2, 3))
    return pooled @ m.fc_w.T + m.fc_b


if __name__ == "__main__":
    key = jax.random.PRNGKey(0)
    k_model, k_x, k_age = jax.random.split(key, 3)

    B, C, H, W = 2, 4, 16, 16
    NUM_CLASS = 10
    x = jax.random.normal(k_x, (B, C, H, W), jnp.float32)

    rotta = RoTTAPallas(k_model, cin=C, chid=32, num_class=NUM_CLASS, nu=0.001)

    # forward (EMA inference + pseudo-label stats), all from one fused kernel
    ema_out, predict, entropy, pseudo_label = rotta.forward(x)
    jax.block_until_ready((ema_out, predict, entropy, pseudo_label))

    # vs. f32 reference (matmul operands are bf16 -> relaxed tolerances)
    ref_logits = reference_forward(rotta, x)
    assert jnp.allclose(ema_out, ref_logits, atol=3e-2, rtol=3e-2)
    ref_p = jax.nn.softmax(ref_logits, axis=1)
    assert jnp.allclose(predict, ref_p, atol=2e-2)
    ref_ent = jnp.sum(-ref_p * jnp.log(ref_p + 1e-6), axis=1)
    assert jnp.allclose(entropy[:, 0], ref_ent, atol=1e-1)
    # self-consistency of the in-kernel argmax / entropy with the logits
    assert jnp.all(pseudo_label[:, 0] == jnp.argmax(ema_out, axis=1))
    assert jnp.allclose(jnp.sum(predict, axis=1), 1.0, atol=1e-4)
    ent_check = jnp.sum(-predict * jnp.log(predict + 1e-6), axis=1)
    assert jnp.allclose(entropy[:, 0], ent_check, atol=1e-3)

    # update_model compute pieces: weighted softmax-entropy loss (f32 math)
    stu_out = rotta.model_forward(x[:, :, :, ::-1])      # "strong aug" stand-in
    ages = jax.random.uniform(k_age, (B, 1), jnp.float32) * 5.0
    loss = jax.block_until_ready(rotta.supervised_loss(stu_out, ema_out, ages))
    lsm = jax.nn.log_softmax(stu_out, axis=1)
    sce = -(jax.nn.softmax(ema_out, axis=1) * lsm).sum(axis=1, keepdims=True)
    ref_loss = jnp.mean(sce * (jnp.exp(-ages) / (1 + jnp.exp(-ages))))
    assert jnp.allclose(loss[0, 0], ref_loss, atol=1e-4)

    # EMA blend (in-place aliased); expected value computed before donation
    flat = rotta.flat_params()
    student = flat + 0.5
    expected = jax.block_until_ready((1.0 - rotta.nu) * flat + rotta.nu * student)
    new_ema = jax.block_until_ready(rotta.update_ema_variables(student, flat))
    assert jnp.allclose(new_ema, expected, atol=1e-5)

    print("KERNEL_OK")
</pallas_src>

<mosaic_0001>
module attributes {stable_mosaic.version = 11 : i64} {
  func.func @fused_forward_kernel(%arg0: i32, %arg1: memref<2x18x18x4xbf16, #tpu.memory_space<vmem>>, %arg2: memref<36x128xbf16, #tpu.memory_space<vmem>>, %arg3: memref<1x128xf32, #tpu.memory_space<vmem>>, %arg4: memref<1x128xf32, #tpu.memory_space<vmem>>, %arg5: memref<128x128xbf16, #tpu.memory_space<vmem>>, %arg6: memref<1x128xf32, #tpu.memory_space<vmem>>, %arg7: memref<2x128xf32, #tpu.memory_space<vmem>>, %arg8: memref<1x2xf32, #tpu.memory_space<vmem>>, %arg9: memref<1x2xi32, #tpu.memory_space<vmem>>, %arg10: memref<256x36xf32, #tpu.memory_space<vmem>>) attributes {dimension_semantics = [#tpu.dimension_semantics<parallel>], iteration_bounds = array<i64: 1>, scalar_prefetch = 0 : i64, scratch_operands = 1 : i64, tpu.core_type = #tpu.core_type<tc>, window_params = [{transform_indices = @transform_0, window_bounds = array<i64: 2, 18, 18, 4>}, {pipeline_mode = #tpu.pipeline_mode<synchronous>, transform_indices = @transform_1, window_bounds = array<i64: 36, 128>}, {pipeline_mode = #tpu.pipeline_mode<synchronous>, transform_indices = @transform_2, window_bounds = array<i64: 1, 128>}, {pipeline_mode = #tpu.pipeline_mode<synchronous>, transform_indices = @transform_3, window_bounds = array<i64: 1, 128>}, {pipeline_mode = #tpu.pipeline_mode<synchronous>, transform_indices = @transform_4, window_bounds = array<i64: 128, 128>}, {pipeline_mode = #tpu.pipeline_mode<synchronous>, transform_indices = @transform_5, window_bounds = array<i64: 1, 128>}, {transform_indices = @transform_6, window_bounds = array<i64: 2, 128>}, {transform_indices = @transform_7, window_bounds = array<i64: 1, 2>}, {transform_indices = @transform_8, window_bounds = array<i64: 1, 2>}]} {
    %c0 = arith.constant 0 : index
    %c0_0 = arith.constant 0 : index
    %c0_1 = arith.constant 0 : index
    %c0_2 = arith.constant 0 : index
    %0 = vector.load %arg1[%c0, %c0_0, %c0_1, %c0_2] : memref<2x18x18x4xbf16, #tpu.memory_space<vmem>>, vector<1x18x18x4xbf16>
    %1 = vector.shape_cast %0 : vector<1x18x18x4xbf16> to vector<18x18x4xbf16>
    %2 = arith.extf %1 : vector<18x18x4xbf16> to vector<18x18x4xf32>
    %3 = vector.extract_strided_slice %2 {offsets = [0, 0, 0], sizes = [16, 16, 4], strides = [1, 1, 1]} : vector<18x18x4xf32> to vector<16x16x4xf32>
    %4 = vector.shape_cast %3 : vector<16x16x4xf32> to vector<256x4xf32>
    %c0_3 = arith.constant 0 : index
    %c0_4 = arith.constant 0 : index
    %5 = vector.load %arg10[%c0_3, %c0_4] : memref<256x36xf32, #tpu.memory_space<vmem>>, vector<256x4xf32>
    tpu.vector_store %arg10[%c0_3, %c0_4], %4 {strides = array<i32>} : memref<256x36xf32, #tpu.memory_space<vmem>>, vector<256x4xf32>,
    %6 = vector.extract_strided_slice %2 {offsets = [0, 1, 0], sizes = [16, 16, 4], strides = [1, 1, 1]} : vector<18x18x4xf32> to vector<16x16x4xf32>
    %7 = vector.shape_cast %6 : vector<16x16x4xf32> to vector<256x4xf32>
    %c0_5 = arith.constant 0 : index
    %c4 = arith.constant 4 : index
    %8 = vector.load %arg10[%c0_5, %c4] : memref<256x36xf32, #tpu.memory_space<vmem>>, vector<256x4xf32>
    tpu.vector_store %arg10[%c0_5, %c4], %7 {strides = array<i32>} : memref<256x36xf32, #tpu.memory_space<vmem>>, vector<256x4xf32>,
    %9 = vector.extract_strided_slice %2 {offsets = [0, 2, 0], sizes = [16, 16, 4], strides = [1, 1, 1]} : vector<18x18x4xf32> to vector<16x16x4xf32>
    %10 = vector.shape_cast %9 : vector<16x16x4xf32> to vector<256x4xf32>
    %c0_6 = arith.constant 0 : index
    %c8 = arith.constant 8 : index
    %11 = vector.load %arg10[%c0_6, %c8] : memref<256x36xf32, #tpu.memory_space<vmem>>, vector<256x4xf32>
    tpu.vector_store %arg10[%c0_6, %c8], %10 {strides = array<i32>} : memref<256x36xf32, #tpu.memory_space<vmem>>, vector<256x4xf32>,
    %12 = vector.extract_strided_slice %2 {offsets = [1, 0, 0], sizes = [16, 16, 4], strides = [1, 1, 1]} : vector<18x18x4xf32> to vector<16x16x4xf32>
    %13 = vector.shape_cast %12 : vector<16x16x4xf32> to vector<256x4xf32>
    %c0_7 = arith.constant 0 : index
    %c12 = arith.constant 12 : index
    %14 = vector.load %arg10[%c0_7, %c12] : memref<256x36xf32, #tpu.memory_space<vmem>>, vector<256x4xf32>
    tpu.vector_store %arg10[%c0_7, %c12], %13 {strides = array<i32>} : memref<256x36xf32, #tpu.memory_space<vmem>>, vector<256x4xf32>,
    %15 = vector.extract_strided_slice %2 {offsets = [1, 1, 0], sizes = [16, 16, 4], strides = [1, 1, 1]} : vector<18x18x4xf32> to vector<16x16x4xf32>
    %16 = vector.shape_cast %15 : vector<16x16x4xf32> to vector<256x4xf32>
    %c0_8 = arith.constant 0 : index
    %c16 = arith.constant 16 : index
    %17 = vector.load %arg10[%c0_8, %c16] : memref<256x36xf32, #tpu.memory_space<vmem>>, vector<256x4xf32>
    tpu.vector_store %arg10[%c0_8, %c16], %16 {strides = array<i32>} : memref<256x36xf32, #tpu.memory_space<vmem>>, vector<256x4xf32>,
    %18 = vector.extract_strided_slice %2 {offsets = [1, 2, 0], sizes = [16, 16, 4], strides = [1, 1, 1]} : vector<18x18x4xf32> to vector<16x16x4xf32>
    %19 = vector.shape_cast %18 : vector<16x16x4xf32> to vector<256x4xf32>
    %c0_9 = arith.constant 0 : index
    %c20 = arith.constant 20 : index
    %20 = vector.load %arg10[%c0_9, %c20] : memref<256x36xf32, #tpu.memory_space<vmem>>, vector<256x4xf32>
    tpu.vector_store %arg10[%c0_9, %c20], %19 {strides = array<i32>} : memref<256x36xf32, #tpu.memory_space<vmem>>, vector<256x4xf32>,
    %21 = vector.extract_strided_slice %2 {offsets = [2, 0, 0], sizes = [16, 16, 4], strides = [1, 1, 1]} : vector<18x18x4xf32> to vector<16x16x4xf32>
    %22 = vector.shape_cast %21 : vector<16x16x4xf32> to vector<256x4xf32>
    %c0_10 = arith.constant 0 : index
    %c24 = arith.constant 24 : index
    %23 = vector.load %arg10[%c0_10, %c24] : memref<256x36xf32, #tpu.memory_space<vmem>>, vector<256x4xf32>
    tpu.vector_store %arg10[%c0_10, %c24], %22 {strides = array<i32>} : memref<256x36xf32, #tpu.memory_space<vmem>>, vector<256x4xf32>,
    %24 = vector.extract_strided_slice %2 {offsets = [2, 1, 0], sizes = [16, 16, 4], strides = [1, 1, 1]} : vector<18x18x4xf32> to vector<16x16x4xf32>
    %25 = vector.shape_cast %24 : vector<16x16x4xf32> to vector<256x4xf32>
    %c0_11 = arith.constant 0 : index
    %c28 = arith.constant 28 : index
    %26 = vector.load %arg10[%c0_11, %c28] : memref<256x36xf32, #tpu.memory_space<vmem>>, vector<256x4xf32>
    tpu.vector_store %arg10[%c0_11, %c28], %25 {strides = array<i32>} : memref<256x36xf32, #tpu.memory_space<vmem>>, vector<256x4xf32>,
    %27 = vector.extract_strided_slice %2 {offsets = [2, 2, 0], sizes = [16, 16, 4], strides = [1, 1, 1]} : vector<18x18x4xf32> to vector<16x16x4xf32>
    %28 = vector.shape_cast %27 : vector<16x16x4xf32> to vector<256x4xf32>
    %c0_12 = arith.constant 0 : index
    %c32 = arith.constant 32 : index
    %29 = vector.load %arg10[%c0_12, %c32] : memref<256x36xf32, #tpu.memory_space<vmem>>, vector<256x4xf32>
    tpu.vector_store %arg10[%c0_12, %c32], %28 {strides = array<i32>} : memref<256x36xf32, #tpu.memory_space<vmem>>, vector<256x4xf32>,
    %c0_13 = arith.constant 0 : index
    %c0_14 = arith.constant 0 : index
    %30 = vector.load %arg10[%c0_13, %c0_14] : memref<256x36xf32, #tpu.memory_space<vmem>>, vector<256x36xf32>
    %31 = arith.truncf %30 : vector<256x36xf32> to vector<256x36xbf16>
    %c0_15 = arith.constant 0 : index
    %c0_16 = arith.constant 0 : index
    %32 = vector.load %arg2[%c0_15, %c0_16] : memref<36x128xbf16, #tpu.memory_space<vmem>>, vector<36x128xbf16>
    %cst = arith.constant dense<0.000000e+00> : vector<256x128xf32>
    %33 = tpu.matmul %31, %32, %cst {dimension_numbers = #tpu.dot_dimension_numbers<[1], [0], [0], [1], [0, 0, 1, 1], [], []>} : vector<256x36xbf16>, vector<36x128xbf16>, vector<256x128xf32> -> vector<256x128xf32>
    %c0_17 = arith.constant 0 : index
    %c0_18 = arith.constant 0 : index
    %34 = vector.load %arg3[%c0_17, %c0_18] : memref<1x128xf32, #tpu.memory_space<vmem>>, vector<1x128xf32>
    %35 = vector.broadcast %34 : vector<1x128xf32> to vector<256x128xf32>
    %36 = arith.mulf %33, %35 : vector<256x128xf32>
    %c0_19 = arith.constant 0 : index
    %c0_20 = arith.constant 0 : index
    %37 = vector.load %arg4[%c0_19, %c0_20] : memref<1x128xf32, #tpu.memory_space<vmem>>, vector<1x128xf32>
    %38 = vector.broadcast %37 : vector<1x128xf32> to vector<256x128xf32>
    %39 = arith.addf %36, %38 : vector<256x128xf32>
    %cst_21 = arith.constant 0.000000e+00 : f32
    %40 = vector.broadcast %cst_21 : f32 to vector<256x128xf32>
    %41 = arith.maximumf %39, %40 : vector<256x128xf32>
    %cst_22 = arith.constant dense<0.000000e+00> : vector<128xf32>
    %42 = vector.multi_reduction <add>, %41, %cst_22 [0] : vector<256x128xf32> to vector<128xf32>
    %43 = vector.shape_cast %42 : vector<128xf32> to vector<1x128xf32>
    %cst_23 = arith.constant 2.560000e+02 : f32
    %44 = vector.broadcast %cst_23 : f32 to vector<1x128xf32>
    %45 = arith.divf %43, %44 : vector<1x128xf32>
    %46 = arith.truncf %45 : vector<1x128xf32> to vector<1x128xbf16>
    %c0_24 = arith.constant 0 : index
    %c0_25 = arith.constant 0 : index
    %47 = vector.load %arg5[%c0_24, %c0_25] : memref<128x128xbf16, #tpu.memory_space<vmem>>, vector<128x128xbf16>
    %cst_26 = arith.constant dense<0.000000e+00> : vector<1x128xf32>
    %48 = tpu.matmul %46, %47, %cst_26 {dimension_numbers = #tpu.dot_dimension_numbers<[1], [0], [0], [1], [0, 0, 1, 1], [], []>} : vector<1x128xbf16>, vector<128x128xbf16>, vector<1x128xf32> -> vector<1x128xf32>
    %c0_27 = arith.constant 0 : index
    %c0_28 = arith.constant 0 : index
    %49 = vector.load %arg6[%c0_27, %c0_28] : memref<1x128xf32, #tpu.memory_space<vmem>>, vector<1x128xf32>
    %50 = arith.addf %48, %49 : vector<1x128xf32>
    %c0_29 = arith.constant 0 : index
    %c0_30 = arith.constant 0 : index
    %51 = vector.load %arg7[%c0_29, %c0_30] : memref<2x128xf32, #tpu.memory_space<vmem>>, vector<1x128xf32>
    tpu.vector_store %arg7[%c0_29, %c0_30], %50 {strides = array<i32>} : memref<2x128xf32, #tpu.memory_space<vmem>>, vector<1x128xf32>,
    %cst_31 = arith.constant dense<0xFF800000> : vector<1xf32>
    %52 = vector.multi_reduction <maximumf>, %50, %cst_31 [1] : vector<1x128xf32> to vector<1xf32>
    %53 = vector.shape_cast %52 : vector<1xf32> to vector<1x1xf32>
    %54 = vector.broadcast %53 : vector<1x1xf32> to vector<1x128xf32>
    %55 = arith.subf %50, %54 : vector<1x128xf32>
    %56 = math.exp %55 : vector<1x128xf32>
    %cst_32 = arith.constant dense<0.000000e+00> : vector<1xf32>
    %57 = vector.multi_reduction <add>, %56, %cst_32 [1] : vector<1x128xf32> to vector<1xf32>
    %58 = vector.shape_cast %57 : vector<1xf32> to vector<1x1xf32>
    %59 = vector.broadcast %58 : vector<1x1xf32> to vector<1x128xf32>
    %60 = arith.divf %56, %59 : vector<1x128xf32>
    %cst_33 = arith.constant 0.000000e+00 : f32
    %61 = vector.broadcast %cst_33 : f32 to vector<1x128xf32>
    %62 = arith.subf %61, %60 : vector<1x128xf32>
    %cst_34 = arith.constant 9.99999997E-7 : f32
    %63 = vector.broadcast %cst_34 : f32 to vector<1x128xf32>
    %64 = arith.addf %60, %63 : vector<1x128xf32>
    %65 = math.log %64 : vector<1x128xf32>
    %66 = arith.mulf %62, %65 : vector<1x128xf32>
    %cst_35 = arith.constant dense<0.000000e+00> : vector<1xf32>
    %67 = vector.multi_reduction <add>, %66, %cst_35 [1] : vector<1x128xf32> to vector<1xf32>
    %68 = vector.shape_cast %67 : vector<1xf32> to vector<1x1xf32>
    %c0_36 = arith.constant 0 : index
    %c0_37 = arith.constant 0 : index
    %69 = vector.load %arg8[%c0_36, %c0_37] : memref<1x2xf32, #tpu.memory_space<vmem>>, vector<1x1xf32>
    tpu.vector_store %arg8[%c0_36, %c0_37], %68 {strides = array<i32>} : memref<1x2xf32, #tpu.memory_space<vmem>>, vector<1x1xf32>,
    %70 = tpu.iota {dimensions = array<i32: 1>} : vector<1x128xi32>
    %71 = vector.broadcast %53 : vector<1x1xf32> to vector<1x128xf32>
    %72 = arith.cmpf oeq, %50, %71 : vector<1x128xf32>
    %c128_i32 = arith.constant 128 : i32
    %73 = vector.broadcast %c128_i32 : i32 to vector<1x128xi32>
    %74 = arith.select %72, %70, %73 : vector<1x128xi1>, vector<1x128xi32>
    %cst_38 = arith.constant dense<2147483647> : vector<1xi32>
    %75 = vector.multi_reduction <minsi>, %74, %cst_38 [1] : vector<1x128xi32> to vector<1xi32>
    %76 = vector.shape_cast %75 : vector<1xi32> to vector<1x1xi32>
    %c0_39 = arith.constant 0 : index
    %c0_40 = arith.constant 0 : index
    %77 = vector.load %arg9[%c0_39, %c0_40] : memref<1x2xi32, #tpu.memory_space<vmem>>, vector<1x1xi32>
    tpu.vector_store %arg9[%c0_39, %c0_40], %76 {strides = array<i32>} : memref<1x2xi32, #tpu.memory_space<vmem>>, vector<1x1xi32>,
    %c1 = arith.constant 1 : index
    %c0_41 = arith.constant 0 : index
    %c0_42 = arith.constant 0 : index
    %c0_43 = arith.constant 0 : index
    %78 = vector.load %arg1[%c1, %c0_41, %c0_42, %c0_43] : memref<2x18x18x4xbf16, #tpu.memory_space<vmem>>, vector<1x18x18x4xbf16>
    %79 = vector.shape_cast %78 : vector<1x18x18x4xbf16> to vector<18x18x4xbf16>
    %80 = arith.extf %79 : vector<18x18x4xbf16> to vector<18x18x4xf32>
    %81 = vector.extract_strided_slice %80 {offsets = [0, 0, 0], sizes = [16, 16, 4], strides = [1, 1, 1]} : vector<18x18x4xf32> to vector<16x16x4xf32>
    %82 = vector.shape_cast %81 : vector<16x16x4xf32> to vector<256x4xf32>
    %c0_44 = arith.constant 0 : index
    %c0_45 = arith.constant 0 : index
    %83 = vector.load %arg10[%c0_44, %c0_45] : memref<256x36xf32, #tpu.memory_space<vmem>>, vector<256x4xf32>
    tpu.vector_store %arg10[%c0_44, %c0_45], %82 {strides = array<i32>} : memref<256x36xf32, #tpu.memory_space<vmem>>, vector<256x4xf32>,
    %84 = vector.extract_strided_slice %80 {offsets = [0, 1, 0], sizes = [16, 16, 4], strides = [1, 1, 1]} : vector<18x18x4xf32> to vector<16x16x4xf32>
    %85 = vector.shape_cast %84 : vector<16x16x4xf32> to vector<256x4xf32>
    %c0_46 = arith.constant 0 : index
    %c4_47 = arith.constant 4 : index
    %86 = vector.load %arg10[%c0_46, %c4_47] : memref<256x36xf32, #tpu.memory_space<vmem>>, vector<256x4xf32>
    tpu.vector_store %arg10[%c0_46, %c4_47], %85 {strides = array<i32>} : memref<256x36xf32, #tpu.memory_space<vmem>>, vector<256x4xf32>,
    %87 = vector.extract_strided_slice %80 {offsets = [0, 2, 0], sizes = [16, 16, 4], strides = [1, 1, 1]} : vector<18x18x4xf32> to vector<16x16x4xf32>
    %88 = vector.shape_cast %87 : vector<16x16x4xf32> to vector<256x4xf32>
    %c0_48 = arith.constant 0 : index
    %c8_49 = arith.constant 8 : index
    %89 = vector.load %arg10[%c0_48, %c8_49] : memref<256x36xf32, #tpu.memory_space<vmem>>, vector<256x4xf32>
    tpu.vector_store %arg10[%c0_48, %c8_49], %88 {strides = array<i32>} : memref<256x36xf32, #tpu.memory_space<vmem>>, vector<256x4xf32>,
    %90 = vector.extract_strided_slice %80 {offsets = [1, 0, 0], sizes = [16, 16, 4], strides = [1, 1, 1]} : vector<18x18x4xf32> to vector<16x16x4xf32>
    %91 = vector.shape_cast %90 : vector<16x16x4xf32> to vector<256x4xf32>
    %c0_50 = arith.constant 0 : index
    %c12_51 = arith.constant 12 : index
    %92 = vector.load %arg10[%c0_50, %c12_51] : memref<256x36xf32, #tpu.memory_space<vmem>>, vector<256x4xf32>
    tpu.vector_store %arg10[%c0_50, %c12_51], %91 {strides = array<i32>} : memref<256x36xf32, #tpu.memory_space<vmem>>, vector<256x4xf32>,
    %93 = vector.extract_strided_slice %80 {offsets = [1, 1, 0], sizes = [16, 16, 4], strides = [1, 1, 1]} : vector<18x18x4xf32> to vector<16x16x4xf32>
    %94 = vector.shape_cast %93 : vector<16x16x4xf32> to vector<256x4xf32>
    %c0_52 = arith.constant 0 : index
    %c16_53 = arith.constant 16 : index
    %95 = vector.load %arg10[%c0_52, %c16_53] : memref<256x36xf32, #tpu.memory_space<vmem>>, vector<256x4xf32>
    tpu.vector_store %arg10[%c0_52, %c16_53], %94 {strides = array<i32>} : memref<256x36xf32, #tpu.memory_space<vmem>>, vector<256x4xf32>,
    %96 = vector.extract_strided_slice %80 {offsets = [1, 2, 0], sizes = [16, 16, 4], strides = [1, 1, 1]} : vector<18x18x4xf32> to vector<16x16x4xf32>
    %97 = vector.shape_cast %96 : vector<16x16x4xf32> to vector<256x4xf32>
    %c0_54 = arith.constant 0 : index
    %c20_55 = arith.constant 20 : index
    %98 = vector.load %arg10[%c0_54, %c20_55] : memref<256x36xf32, #tpu.memory_space<vmem>>, vector<256x4xf32>
    tpu.vector_store %arg10[%c0_54, %c20_55], %97 {strides = array<i32>} : memref<256x36xf32, #tpu.memory_space<vmem>>, vector<256x4xf32>,
    %99 = vector.extract_strided_slice %80 {offsets = [2, 0, 0], sizes = [16, 16, 4], strides = [1, 1, 1]} : vector<18x18x4xf32> to vector<16x16x4xf32>
    %100 = vector.shape_cast %99 : vector<16x16x4xf32> to vector<256x4xf32>
    %c0_56 = arith.constant 0 : index
    %c24_57 = arith.constant 24 : index
    %101 = vector.load %arg10[%c0_56, %c24_57] : memref<256x36xf32, #tpu.memory_space<vmem>>, vector<256x4xf32>
    tpu.vector_store %arg10[%c0_56, %c24_57], %100 {strides = array<i32>} : memref<256x36xf32, #tpu.memory_space<vmem>>, vector<256x4xf32>,
    %102 = vector.extract_strided_slice %80 {offsets = [2, 1, 0], sizes = [16, 16, 4], strides = [1, 1, 1]} : vector<18x18x4xf32> to vector<16x16x4xf32>
    %103 = vector.shape_cast %102 : vector<16x16x4xf32> to vector<256x4xf32>
    %c0_58 = arith.constant 0 : index
    %c28_59 = arith.constant 28 : index
    %104 = vector.load %arg10[%c0_58, %c28_59] : memref<256x36xf32, #tpu.memory_space<vmem>>, vector<256x4xf32>
    tpu.vector_store %arg10[%c0_58, %c28_59], %103 {strides = array<i32>} : memref<256x36xf32, #tpu.memory_space<vmem>>, vector<256x4xf32>,
    %105 = vector.extract_strided_slice %80 {offsets = [2, 2, 0], sizes = [16, 16, 4], strides = [1, 1, 1]} : vector<18x18x4xf32> to vector<16x16x4xf32>
    %106 = vector.shape_cast %105 : vector<16x16x4xf32> to vector<256x4xf32>
    %c0_60 = arith.constant 0 : index
    %c32_61 = arith.constant 32 : index
    %107 = vector.load %arg10[%c0_60, %c32_61] : memref<256x36xf32, #tpu.memory_space<vmem>>, vector<256x4xf32>
    tpu.vector_store %arg10[%c0_60, %c32_61], %106 {strides = array<i32>} : memref<256x36xf32, #tpu.memory_space<vmem>>, vector<256x4xf32>,
    %c0_62 = arith.constant 0 : index
    %c0_63 = arith.constant 0 : index
    %108 = vector.load %arg10[%c0_62, %c0_63] : memref<256x36xf32, #tpu.memory_space<vmem>>, vector<256x36xf32>
    %109 = arith.truncf %108 : vector<256x36xf32> to vector<256x36xbf16>
    %c0_64 = arith.constant 0 : index
    %c0_65 = arith.constant 0 : index
    %110 = vector.load %arg2[%c0_64, %c0_65] : memref<36x128xbf16, #tpu.memory_space<vmem>>, vector<36x128xbf16>
    %cst_66 = arith.constant dense<0.000000e+00> : vector<256x128xf32>
    %111 = tpu.matmul %109, %110, %cst_66 {dimension_numbers = #tpu.dot_dimension_numbers<[1], [0], [0], [1], [0, 0, 1, 1], [], []>} : vector<256x36xbf16>, vector<36x128xbf16>, vector<256x128xf32> -> vector<256x128xf32>
    %c0_67 = arith.constant 0 : index
    %c0_68 = arith.constant 0 : index
    %112 = vector.load %arg3[%c0_67, %c0_68] : memref<1x128xf32, #tpu.memory_space<vmem>>, vector<1x128xf32>
    %113 = vector.broadcast %112 : vector<1x128xf32> to vector<256x128xf32>
    %114 = arith.mulf %111, %113 : vector<256x128xf32>
    %c0_69 = arith.constant 0 : index
    %c0_70 = arith.constant 0 : index
    %115 = vector.load %arg4[%c0_69, %c0_70] : memref<1x128xf32, #tpu.memory_space<vmem>>, vector<1x128xf32>
    %116 = vector.broadcast %115 : vector<1x128xf32> to vector<256x128xf32>
    %117 = arith.addf %114, %116 : vector<256x128xf32>
    %cst_71 = arith.constant 0.000000e+00 : f32
    %118 = vector.broadcast %cst_71 : f32 to vector<256x128xf32>
    %119 = arith.maximumf %117, %118 : vector<256x128xf32>
    %cst_72 = arith.constant dense<0.000000e+00> : vector<128xf32>
    %120 = vector.multi_reduction <add>, %119, %cst_72 [0] : vector<256x128xf32> to vector<128xf32>
    %121 = vector.shape_cast %120 : vector<128xf32> to vector<1x128xf32>
    %cst_73 = arith.constant 2.560000e+02 : f32
    %122 = vector.broadcast %cst_73 : f32 to vector<1x128xf32>
    %123 = arith.divf %121, %122 : vector<1x128xf32>
    %124 = arith.truncf %123 : vector<1x128xf32> to vector<1x128xbf16>
    %c0_74 = arith.constant 0 : index
    %c0_75 = arith.constant 0 : index
    %125 = vector.load %arg5[%c0_74, %c0_75] : memref<128x128xbf16, #tpu.memory_space<vmem>>, vector<128x128xbf16>
    %cst_76 = arith.constant dense<0.000000e+00> : vector<1x128xf32>
    %126 = tpu.matmul %124, %125, %cst_76 {dimension_numbers = #tpu.dot_dimension_numbers<[1], [0], [0], [1], [0, 0, 1, 1], [], []>} : vector<1x128xbf16>, vector<128x128xbf16>, vector<1x128xf32> -> vector<1x128xf32>
    %c0_77 = arith.constant 0 : index
    %c0_78 = arith.constant 0 : index
    %127 = vector.load %arg6[%c0_77, %c0_78] : memref<1x128xf32, #tpu.memory_space<vmem>>, vector<1x128xf32>
    %128 = arith.addf %126, %127 : vector<1x128xf32>
    %c1_79 = arith.constant 1 : index
    %c0_80 = arith.constant 0 : index
    %129 = vector.load %arg7[%c1_79, %c0_80] : memref<2x128xf32, #tpu.memory_space<vmem>>, vector<1x128xf32>
    tpu.vector_store %arg7[%c1_79, %c0_80], %128 {strides = array<i32>} : memref<2x128xf32, #tpu.memory_space<vmem>>, vector<1x128xf32>,
    %cst_81 = arith.constant dense<0xFF800000> : vector<1xf32>
    %130 = vector.multi_reduction <maximumf>, %128, %cst_81 [1] : vector<1x128xf32> to vector<1xf32>
    %131 = vector.shape_cast %130 : vector<1xf32> to vector<1x1xf32>
    %132 = vector.broadcast %131 : vector<1x1xf32> to vector<1x128xf32>
    %133 = arith.subf %128, %132 : vector<1x128xf32>
    %134 = math.exp %133 : vector<1x128xf32>
    %cst_82 = arith.constant dense<0.000000e+00> : vector<1xf32>
    %135 = vector.multi_reduction <add>, %134, %cst_82 [1] : vector<1x128xf32> to vector<1xf32>
    %136 = vector.shape_cast %135 : vector<1xf32> to vector<1x1xf32>
    %137 = vector.broadcast %136 : vector<1x1xf32> to vector<1x128xf32>
    %138 = arith.divf %134, %137 : vector<1x128xf32>
    %cst_83 = arith.constant 0.000000e+00 : f32
    %139 = vector.broadcast %cst_83 : f32 to vector<1x128xf32>
    %140 = arith.subf %139, %138 : vector<1x128xf32>
    %cst_84 = arith.constant 9.99999997E-7 : f32
    %141 = vector.broadcast %cst_84 : f32 to vector<1x128xf32>
    %142 = arith.addf %138, %141 : vector<1x128xf32>
    %143 = math.log %142 : vector<1x128xf32>
    %144 = arith.mulf %140, %143 : vector<1x128xf32>
    %cst_85 = arith.constant dense<0.000000e+00> : vector<1xf32>
    %145 = vector.multi_reduction <add>, %144, %cst_85 [1] : vector<1x128xf32> to vector<1xf32>
    %146 = vector.shape_cast %145 : vector<1xf32> to vector<1x1xf32>
    %c0_86 = arith.constant 0 : index
    %c1_87 = arith.constant 1 : index
    %147 = vector.load %arg8[%c0_86, %c1_87] : memref<1x2xf32, #tpu.memory_space<vmem>>, vector<1x1xf32>
    tpu.vector_store %arg8[%c0_86, %c1_87], %146 {strides = array<i32>} : memref<1x2xf32, #tpu.memory_space<vmem>>, vector<1x1xf32>,
    %148 = tpu.iota {dimensions = array<i32: 1>} : vector<1x128xi32>
    %149 = vector.broadcast %131 : vector<1x1xf32> to vector<1x128xf32>
    %150 = arith.cmpf oeq, %128, %149 : vector<1x128xf32>
    %c128_i32_88 = arith.constant 128 : i32
    %151 = vector.broadcast %c128_i32_88 : i32 to vector<1x128xi32>
    %152 = arith.select %150, %148, %151 : vector<1x128xi1>, vector<1x128xi32>
    %cst_89 = arith.constant dense<2147483647> : vector<1xi32>
    %153 = vector.multi_reduction <minsi>, %152, %cst_89 [1] : vector<1x128xi32> to vector<1xi32>
    %154 = vector.shape_cast %153 : vector<1xi32> to vector<1x1xi32>
    %c0_90 = arith.constant 0 : index
    %c1_91 = arith.constant 1 : index
    %155 = vector.load %arg9[%c0_90, %c1_91] : memref<1x2xi32, #tpu.memory_space<vmem>>, vector<1x1xi32>
    tpu.vector_store %arg9[%c0_90, %c1_91], %154 {strides = array<i32>} : memref<1x2xi32, #tpu.memory_space<vmem>>, vector<1x1xi32>,
    return
  }
  func.func @transform_0(%arg0: i32) -> (i32, i32, i32, i32) {
    %c0_i32 = arith.constant 0 : i32
    %c0_i32_0 = arith.constant 0 : i32
    %c0_i32_1 = arith.constant 0 : i32
    %c0_i32_2 = arith.constant 0 : i32
    return %arg0, %c0_i32, %c0_i32_0, %c0_i32_1 : i32, i32, i32, i32
  }
  func.func @transform_1(%arg0: i32) -> (i32, i32) {
    %c0_i32 = arith.constant 0 : i32
    %c0_i32_0 = arith.constant 0 : i32
    %c0_i32_1 = arith.constant 0 : i32
    return %c0_i32, %c0_i32_0 : i32, i32
  }
  func.func @transform_2(%arg0: i32) -> (i32, i32) {
    %c0_i32 = arith.constant 0 : i32
    %c0_i32_0 = arith.constant 0 : i32
    %c0_i32_1 = arith.constant 0 : i32
    return %c0_i32, %c0_i32_0 : i32, i32
  }
  func.func @transform_3(%arg0: i32) -> (i32, i32) {
    %c0_i32 = arith.constant 0 : i32
    %c0_i32_0 = arith.constant 0 : i32
    %c0_i32_1 = arith.constant 0 : i32
    return %c0_i32, %c0_i32_0 : i32, i32
  }
  func.func @transform_4(%arg0: i32) -> (i32, i32) {
    %c0_i32 = arith.constant 0 : i32
    %c0_i32_0 = arith.constant 0 : i32
    %c0_i32_1 = arith.constant 0 : i32
    return %c0_i32, %c0_i32_0 : i32, i32
  }
  func.func @transform_5(%arg0: i32) -> (i32, i32) {
    %c0_i32 = arith.constant 0 : i32
    %c0_i32_0 = arith.constant 0 : i32
    %c0_i32_1 = arith.constant 0 : i32
    return %c0_i32, %c0_i32_0 : i32, i32
  }
  func.func @transform_6(%arg0: i32) -> (i32, i32) {
    %c0_i32 = arith.constant 0 : i32
    %c0_i32_0 = arith.constant 0 : i32
    return %arg0, %c0_i32 : i32, i32
  }
  func.func @transform_7(%arg0: i32) -> (i32, i32) {
    %c0_i32 = arith.constant 0 : i32
    %c0_i32_0 = arith.constant 0 : i32
    return %arg0, %c0_i32 : i32, i32
  }
  func.func @transform_8(%arg0: i32) -> (i32, i32) {
    %c0_i32 = arith.constant 0 : i32
    %c0_i32_0 = arith.constant 0 : i32
    return %arg0, %c0_i32 : i32, i32
  }
}

</mosaic_0001>

<bundles_post_ra>
// kernel: tpu_custom_call.1
= control target key start
LH: loop header
LB: loop body
LE: loop exit
PB: predicated region body
PF: predicated region fallthrough
CT: control target
= control target key end

     0   :  { %14 = vsyncpa [#allocation4], 0  ;;  %vm218_vm0 = vcmask 1046528   ;;  %vm428_vm1 = vcmask 1045504   ;;  %s5806_s17 = smov 4   ;;  %s5807_s18 = smov 8   ;;  %s8101_s0 = inlined_call_operand.vmem [shape: bf16[2,18,18,4], index: 0, kind: input, shape index: {}]   ;;  %s8102_s1 = inlined_call_operand.vmem [shape: bf16[36,128], index: 1, kind: input, shape index: {}]   ;;  %s8103_s2 = inlined_call_operand.vmem [shape: f32[1,128], index: 2, kind: input, shape index: {}]   ;;  %s8104_s3 = inlined_call_operand.vmem [shape: f32[1,128], index: 3, kind: input, shape index: {}]   ;;  %s8105_s4 = inlined_call_operand.vmem [shape: bf16[128,128], index: 4, kind: input, shape index: {}]   ;;  %s8106_s5 = inlined_call_operand.vmem [shape: f32[1,128], index: 5, kind: input, shape index: {}]   ;;  %s8107_s6 = inlined_call_operand.hbm [shape: f32[2,128], index: 6, kind: output, shape index: {0}]   ;;  %s8108_s7 = inlined_call_operand.hbm [shape: f32[1,2], index: 7, kind: output, shape index: {1}]   ;;  %s8109_s8 = inlined_call_operand.hbm [shape: s32[1,2], index: 8, kind: output, shape index: {2}]  }
   0x1   :  { %v4145_v0 = vld [vmem:[%s8101_s0] sm:$0xff]   ;;  %v31_v1 = vld [vmem:[%s8101_s0 + $0x8] sm:$0x1]  ;;  %v32_v5 = vld [vmem:[%s8101_s0 + $0xc] sm:$0xff]   ;;  %s5808_s23 = smov 12   ;;  %s5809_s24 = smov 16  }
   0x2   :  { %v5870_v2 = vunpack.c.l.bf16 %v4145_v0  ;;  %v5872_v3 = vunpack.c.h.bf16 %v4145_v0  ;;  %v85_v4 = vunpack.c.l.bf16 %v31_v1  ;;  %v34_v6 = vld [vmem:[%s8101_s0 + $0x14] sm:$0x1]  ;;  %v4216_v7 = vld [vmem:[%s8101_s0 + $0x18] sm:$0xff]   ;;  %v5883_v8 = vunpack.c.l.bf16 %v32_v5  ;;  %v37_v28 = vld [vmem:[%s8101_s0 + $0x20] sm:$0x1]  ;;  %s5810_s29 = smov 20  }
   0x3   :  { %v5885_v9 = vunpack.c.h.bf16 %v32_v5  ;;  %v88_v10 = vunpack.c.l.bf16 %v34_v6  ;;  %v5887_v11 = vunpack.c.l.bf16 %v4216_v7  ;;  %v5907_v34 = vunpack.c.h.bf16 %v4216_v7  ;;  %v38_v44 = vld [vmem:[%s8101_s0 + $0x24] sm:$0xff]   ;;  %v40_v50 = vld [vmem:[%s8101_s0 + $0x2c] sm:$0x1]  ;;  %v4217_v61 = vld [vmem:[%s8101_s0 + $0x30] sm:$0xff]   ;;  %s5811_s10 = smov 24  }
   0x4   :  { %v219_v12 = vrot.slane %v5870_v2, 1  ;;  %v220_v13 = vrot.slane %v5872_v3, 1  ;;  %v222_v14 = vrot.slane %v85_v4, 1  ;;  %v429_v15 = vrot.slane %v5870_v2, 2  ;;  %v43_v62 = vld [vmem:[%s8101_s0 + $0x38] sm:$0x1] }
   0x5   :  { %v430_v16 = vrot.slane %v5872_v3, 2  ;;  %v432_v17 = vrot.slane %v85_v4, 2  ;;  %v224_v18 = vrot.slane %v5883_v8, 1  ;;  %v225_v19 = vrot.slane %v5885_v9, 1  ;;  %v5700_v6 = vld [vmem:[%s8102_s1] sm:$0xff]  }
   0x6   :  { %v221_v20 = vsel %vm218_vm0, %v219_v12, %v220_v13  ;;  %v223_v21 = vsel %vm218_vm0, %v220_v13, %v222_v14  ;;  %v227_v22 = vrot.slane %v88_v10, 1  ;;  %v434_v23 = vrot.slane %v5883_v8, 2  ;;  %4289 = vmatprep.subr.bf16.mxu0 %v5700_v6 }
   0x7   :  { %v4420_v24 = vpack.i.bf16 %v223_v21, %v221_v20  ;;  %v431_v25 = vsel %vm428_vm1, %v429_v15, %v430_v16  ;;  %v433_v26 = vsel %vm428_vm1, %v430_v16, %v432_v17  ;;  %v226_v27 = vsel %vm218_vm0, %v224_v18, %v225_v19  ;;  %4290 = vmatpush3.bf16.msra.mxu0 %v5700_v6  ;;  %v5701_v16 = vld [vmem:[%s8102_s1 + $0x8] sm:$0xff]   ;;  %v44_v21 = vld [vmem:[%s8101_s0 + $0x3c] sm:$0xff]  }
   0x8   :  { %v4435_v29 = vpack.i.bf16 %v433_v26, %v431_v25  ;;  %v228_v30 = vsel %vm218_vm0, %v225_v19, %v227_v22  ;;  %v435_v31 = vrot.slane %v5885_v9, 2  ;;  %v437_v32 = vrot.slane %v88_v10, 2 }
   0x9   :  { %4421 = vrot.lane.b32.xlu0 %v4420_v24, %s5806_s17  ;;  %v4425_v33 = vpack.i.bf16 %v228_v30, %v226_v27  ;;  %v91_v37 = vunpack.c.l.bf16 %v37_v28  ;;  %v229_v39 = vrot.slane %v5887_v11, 1  ;;  %v230_v40 = vrot.slane %v5907_v34, 1 }
   0xa   :  { %4436 = vrot.lane.b32.xlu1 %v4435_v29, %s5807_s18  ;;  %v436_v35 = vsel %vm428_vm1, %v434_v23, %v435_v31  ;;  %v438_v36 = vsel %vm428_vm1, %v435_v31, %v437_v32  ;;  %v4430_v42 = vpack.i.bf16 %v5885_v9, %v5883_v8  ;;  %v439_v43 = vrot.slane %v5887_v11, 2 }
   0xb   :  { %v4440_v38 = vpack.i.bf16 %v438_v36, %v436_v35  ;;  %v232_v41 = vrot.slane %v91_v37, 1  ;;  %v4445_v45 = vpack.i.bf16 %v5907_v34, %v5887_v11  ;;  %v440_v46 = vrot.slane %v5907_v34, 2 }
   0xc   :  { %v442_v47 = vrot.slane %v91_v37, 2  ;;  %v231_v48 = vsel %vm218_vm0, %v229_v39, %v230_v40  ;;  %v5934_v52 = vunpack.c.l.bf16 %v38_v44  ;;  %v5936_v53 = vunpack.c.h.bf16 %v38_v44 }
   0xd   :  { %4426 = vrot.lane.b32.xlu0 %v4425_v33, %s5806_s17  ;;  %v233_v49 = vsel %vm218_vm0, %v230_v40, %v232_v41  ;;  %v441_v54 = vsel %vm428_vm1, %v439_v43, %v440_v46  ;;  %v94_v56 = vunpack.c.l.bf16 %v40_v50  ;;  %v5967_v10 = vunpack.c.l.bf16 %v4217_v61 }
   0xe   :  { %4441 = vrot.lane.b32.xlu1 %v4440_v38, %s5807_s18  ;;  %v5932_v51 = vpack.i.bf16 %v233_v49, %v231_v48  ;;  %v443_v55 = vsel %vm428_vm1, %v440_v46, %v442_v47  ;;  %v234_v58 = vrot.slane %v5934_v52, 1  ;;  %v235_v59 = vrot.slane %v5936_v53, 1 }
   0xf   :  { %v5943_v57 = vpack.i.bf16 %v443_v55, %v441_v54  ;;  %v237_v60 = vrot.slane %v94_v56, 1  ;;  %v5956_v63 = vpack.i.bf16 %v5936_v53, %v5934_v52  ;;  %v444_v1 = vrot.slane %v5934_v52, 2 }
  0x10   :  { %v236_v0 = vsel %vm218_vm0, %v234_v58, %v235_v59  ;;  %v445_v4 = vrot.slane %v5936_v53, 2  ;;  %v447_v5 = vrot.slane %v94_v56, 2  ;;  %v5969_v12 = vunpack.c.h.bf16 %v4217_v61 }
  0x11   :  { %4431 = vrot.lane.b32.xlu0 %v4430_v42, %s5808_s23  ;;  %v238_v7 = vsel %vm218_vm0, %v235_v59, %v237_v60  ;;  %v97_v13 = vunpack.c.l.bf16 %v43_v62  ;;  %v239_v18 = vrot.slane %v5967_v10, 1 }
  0x12   :  { %4446 = vrot.lane.b32.xlu1 %v4445_v45, %s5808_s23  ;;  %v5974_v14 = vpack.i.bf16 %v238_v7, %v236_v0  ;;  %v446_v15 = vsel %vm428_vm1, %v444_v1, %v445_v4  ;;  %v448_v17 = vsel %vm428_vm1, %v445_v4, %v447_v5  ;;  %v240_v19 = vrot.slane %v5969_v12, 1 }
  0x13   :  { %v242_v20 = vrot.slane %v97_v13, 1 }
  0x15   :  { %4451 = vrot.lane.b32.xlu0 %v4425_v33, %s5809_s24 }
  0x16   :  { %4456 = vrot.lane.b32.xlu1 %v5932_v51, %s5809_s24 }
  0x19   :  { %4461 = vrot.lane.b32.xlu0 %v4440_v38, %s5810_s29 }
  0x1a   :  { %4466 = vrot.lane.b32.xlu1 %v5943_v57, %s5810_s29 }
  0x1d   :  { %4471 = vrot.lane.b32.xlu0 %v4445_v45, %s5811_s10 }
  0x1e   :  { %4476 = vrot.lane.b32.xlu1 %v5956_v63, %s5811_s10 }
  0x1f   :  { %15 = vsyncpa [#allocation6], 0  ;;  %v449_v22 = vrot.slane %v5967_v10, 2  ;;  %v450_v23 = vrot.slane %v5969_v12, 2  ;;  %v452_v24 = vrot.slane %v97_v13, 2  ;;  %4291 = vmatprep.subr.bf16.mxu0 %v5701_v16  ;;  %s5812_s15 = smov 28   ;;  %v5995_v26 = vpack.i.bf16 %v448_v17, %v446_v15 }
  0x20   :  { %v46_v25 = vld [vmem:[%s8101_s0 + $0x44] sm:$0x1]  ;;  %4292 = vmatpush3.bf16.msra.mxu0 %v5701_v16  ;;  %v5997_v27 = vunpack.c.l.bf16 %v44_v21  ;;  %v50_v28 = vld [vmem:[%s8101_s0 + $0x54] sm:$0xff]   ;;  %v241_v29 = vsel %vm218_vm0, %v239_v18, %v240_v19  ;;  %v243_v30 = vsel %vm218_vm0, %v240_v19, %v242_v20  ;;  %v6004_v31 = vunpack.c.h.bf16 %v44_v21  ;;  %s5813_s22 = smov 32   ;;  %v55_v43 = vld [vmem:[%s8101_s0 + $0x68] sm:$0x1] }
  0x21   :  { %4481 = vrot.lane.b32.xlu0 %v5932_v51, %s5812_s15  ;;  %v451_v32 = vsel %vm428_vm1, %v449_v22, %v450_v23  ;;  %v453_v33 = vsel %vm428_vm1, %v450_v23, %v452_v24  ;;  %v100_v35 = vunpack.c.l.bf16 %v46_v25  ;;  %v6012_v36 = vpack.i.bf16 %v5969_v12, %v5967_v10  ;;  %v4219_v39 = vld [vmem:[%s8101_s0 + $0x60] sm:$0xff]   ;;  %v4218_v46 = vld [vmem:[%s8101_s0 + $0x48] sm:$0xff]   ;;  %v58_v13 = vld [vmem:[%s8101_s0 + $0x74] sm:$0x1] }
  0x22   :  { %4486 = vrot.lane.b32.xlu1 %v5974_v14, %s5812_s15  ;;  %v6014_v37 = vunpack.c.l.bf16 %v50_v28  ;;  %v6016_v38 = vunpack.c.h.bf16 %v50_v28  ;;  %v6023_v40 = vpack.i.bf16 %v243_v30, %v241_v29  ;;  %v244_v41 = vrot.slane %v5997_v27, 1  ;;  %v56_v4 = vld [vmem:[%s8101_s0 + $0x6c] sm:$0xff]   ;;  %v4220_v22 = vld [vmem:[%s8101_s0 + $0x78] sm:$0xff]  }
  0x23   :  { %v454_v42 = vrot.slane %v5997_v27, 2  ;;  %v6030_v44 = vpack.i.bf16 %v453_v33, %v451_v32  ;;  %v6034_v45 = vpack.i.bf16 %v6004_v31, %v5997_v27  ;;  %v245_v48 = vrot.slane %v6004_v31, 1 }
  0x24   :  { %v6041_v47 = vpack.i.bf16 %v6016_v38, %v6014_v37  ;;  %v247_v49 = vrot.slane %v100_v35, 1  ;;  %v4162_v50 = vunpack.c.l.bf16 %v4219_v39  ;;  %v4163_v54 = vunpack.c.h.bf16 %v4219_v39  ;;  %v62_v39 = vld [vmem:[%s8101_s0 + $0x84] sm:$0xff]  }
  0x25   :  { %4491 = vrot.lane.b32.xlu0 %v5943_v57, %s5813_s22  ;;  %v109_v55 = vunpack.c.l.bf16 %v55_v43  ;;  %v457_v56 = vrot.slane %v100_v35, 2  ;;  %v6049_v58 = vunpack.c.l.bf16 %v4218_v46  ;;  %v6051_v59 = vunpack.c.h.bf16 %v4218_v46 }
  0x26   :  { %4496 = vrot.lane.b32.xlu1 %v5932_v51, %s5806_s17  ;;  %v455_v51 = vrot.slane %v6004_v31, 2  ;;  %v259_v60 = vrot.slane %v4162_v50, 1  ;;  %v6053_v61 = vpack.i.bf16 %v4163_v54, %v4162_v50  ;;  %v260_v62 = vrot.slane %v4163_v54, 1 }
  0x27   :  { %v262_v0 = vrot.slane %v109_v55, 1  ;;  %v469_v1 = vrot.slane %v4162_v50, 2  ;;  %v246_v5 = vsel %vm218_vm0, %v244_v41, %v245_v48  ;;  %v470_v6 = vrot.slane %v4163_v54, 2 }
  0x28   :  { %v472_v7 = vrot.slane %v109_v55, 2  ;;  %vm137_vm2 = vcmask 31744   ;;  %v248_v15 = vsel %vm218_vm0, %v245_v48, %v247_v49  ;;  %v261_v16 = vsel %vm218_vm0, %v259_v60, %v260_v62 }
  0x29   :  { %4501 = vrot.lane.b32.xlu0 %v5995_v26, %s5813_s22  ;;  %v263_v17 = vsel %vm218_vm0, %v260_v62, %v262_v0  ;;  %139 = vst.msk [vmem:[#allocation2 + $0x8] sm:$0xff] %vm137_vm2, %v5872_v3  ;;  %138 = vst.msk [vmem:[#allocation2] sm:$0xff] %vm137_vm2, %v5870_v2  ;;  %v471_v3 = vsel %vm428_vm1, %v469_v1, %v470_v6  ;;  %v456_v19 = vsel %vm428_vm1, %v454_v42, %v455_v51  ;;  %vm1555_vm3 = vcmask 1041408  }
  0x2a   :  { %4506 = vrot.lane.b32.xlu1 %v5974_v14, %s5806_s17  ;;  %140 = vst.msk [vmem:[#allocation2 + $0x10] sm:$0xff] %vm137_vm2, %v5883_v8  ;;  %141 = vst.msk [vmem:[#allocation2 + $0x18] sm:$0xff] %vm137_vm2, %v5885_v9  ;;  %v6103_v2 = vpack.i.bf16 %v263_v17, %v261_v16  ;;  %v473_v8 = vsel %vm428_vm1, %v470_v6, %v472_v7  ;;  %v110_v9 = vunpack.c.l.bf16 %v56_v4  ;;  %v4166_v32 = vunpack.c.l.bf16 %v4220_v22 }
  0x2b   :  { %142 = vst.msk [vmem:[#allocation2 + $0x20] sm:$0xff] %vm137_vm2, %v5887_v11  ;;  %143 = vst.msk [vmem:[#allocation2 + $0x28] sm:$0xff] %vm137_vm2, %v5907_v34  ;;  %v6107_v11 = vpack.i.bf16 %v473_v8, %v471_v3  ;;  %v111_v34 = vunpack.c.h.bf16 %v56_v4  ;;  %v458_v23 = vsel %vm428_vm1, %v455_v51, %v457_v56  ;;  %v4167_v33 = vunpack.c.h.bf16 %v4220_v22  ;;  %v6164_v56 = vld [vmem:[%s8101_s0 + $0x50] sm:$0x1] }
  0x2c   :  { %144 = vst.msk [vmem:[#allocation2 + $0x30] sm:$0xff] %vm137_vm2, %v5934_v52  ;;  %145 = vst.msk [vmem:[#allocation2 + $0x38] sm:$0xff] %vm137_vm2, %v5936_v53  ;;  %v112_v52 = vunpack.c.l.bf16 %v58_v13  ;;  %v264_v53 = vrot.slane %v110_v9, 1  ;;  %v474_v20 = vrot.slane %v110_v9, 2  ;;  %v6148_v41 = vpack.i.bf16 %v458_v23, %v456_v19  ;;  %v68_v19 = vld [vmem:[%s8101_s0 + $0x9c] sm:$0xff]  }
  0x2d   :  { %4511 = vrot.lane.b32.xlu0 %v5943_v57, %s5807_s18  ;;  %146 = vst.msk [vmem:[#allocation2 + $0x40] sm:$0xff] %vm137_vm2, %v5967_v10  ;;  %147 = vst.msk [vmem:[#allocation2 + $0x48] sm:$0xff] %vm137_vm2, %v5969_v12  ;;  %v6112_v57 = vpack.i.bf16 %v248_v15, %v246_v5  ;;  %v6114_v10 = vpack.i.bf16 %v111_v34, %v110_v9  ;;  %v265_v12 = vrot.slane %v111_v34, 1  ;;  %v475_v21 = vrot.slane %v111_v34, 2 }
  0x2e   :  { %148 = vst.msk [vmem:[#allocation2 + $0x50] sm:$0xff] %vm137_vm2, %v5997_v27  ;;  %149 = vst.msk [vmem:[#allocation2 + $0x58] sm:$0xff] %vm137_vm2, %v6004_v31  ;;  %4516 = vrot.lane.b32.xlu1 %v5995_v26, %s5807_s18  ;;  %v267_v18 = vrot.slane %v112_v52, 1  ;;  %v61_v27 = vld [vmem:[%s8101_s0 + $0x80] sm:$0x1]  ;;  %v269_v42 = vrot.slane %v4166_v32, 1  ;;  %v6154_v46 = vpack.i.bf16 %v4167_v33, %v4166_v32  ;;  %v117_v55 = vunpack.c.h.bf16 %v62_v39 }
  0x2f   :  { %150 = vst.msk [vmem:[#allocation2 + $0x60] sm:$0xff] %vm137_vm2, %v6049_v58  ;;  %151 = vst.msk [vmem:[#allocation2 + $0x68] sm:$0xff] %vm137_vm2, %v6051_v59  ;;  %v266_v24 = vsel %vm218_vm0, %v264_v53, %v265_v12  ;;  %v476_v29 = vsel %vm428_vm1, %v474_v20, %v475_v21  ;;  %v115_v35 = vunpack.c.l.bf16 %v61_v27  ;;  %v479_v43 = vrot.slane %v4166_v32, 2 }
  0x30   :  { %152 = vst.msk [vmem:[#allocation2 + $0x70] sm:$0xff] %vm137_vm2, %v6014_v37  ;;  %153 = vst.msk [vmem:[#allocation2 + $0x78] sm:$0xff] %vm137_vm2, %v6016_v38  ;;  %v268_v25 = vsel %vm218_vm0, %v265_v12, %v267_v18  ;;  %v270_v48 = vrot.slane %v4167_v33, 1  ;;  %v275_v15 = vrot.slane %v117_v55, 1  ;;  %v103_v17 = vunpack.c.l.bf16 %v6164_v56  ;;  %v67_v18 = vld [vmem:[%s8101_s0 + $0x98] sm:$0x1] }
  0x31   :  { %154 = vst.msk [vmem:[#allocation2 + $0x80] sm:$0xff] %vm137_vm2, %v4162_v50  ;;  %155 = vst.msk [vmem:[#allocation2 + $0x88] sm:$0xff] %vm137_vm2, %v4163_v54  ;;  %4521 = vrot.lane.b32.xlu0 %v5956_v63, %s5808_s23  ;;  %v477_v63 = vrot.slane %v112_v52, 2  ;;  %v6135_v28 = vpack.i.bf16 %v268_v25, %v266_v24  ;;  %v272_v49 = vrot.slane %v115_v35, 1  ;;  %v480_v50 = vrot.slane %v4167_v33, 2 }
  0x32   :  { %156 = vst.msk [vmem:[#allocation2 + $0x90] sm:$0xff] %vm137_vm2, %v110_v9  ;;  %157 = vst.msk [vmem:[#allocation2 + $0x98] sm:$0xff] %vm137_vm2, %v111_v34  ;;  %4526 = vrot.lane.b32.xlu1 %v6012_v36, %s5808_s23  ;;  %v482_v51 = vrot.slane %v115_v35, 2  ;;  %v116_v54 = vunpack.c.l.bf16 %v62_v39  ;;  %v271_v60 = vsel %vm218_vm0, %v269_v42, %v270_v48  ;;  %v249_v3 = vrot.slane %v6049_v58, 1 }
  0x33   :  { %v478_v30 = vsel %vm428_vm1, %v475_v21, %v477_v63  ;;  %158 = vst.msk [vmem:[#allocation2 + $0xa0] sm:$0xff] %vm137_vm2, %v4166_v32  ;;  %159 = vst.msk [vmem:[#allocation2 + $0xa8] sm:$0xff] %vm137_vm2, %v4167_v33  ;;  %v273_v62 = vsel %vm218_vm0, %v270_v48, %v272_v49  ;;  %v481_v0 = vsel %vm428_vm1, %v479_v43, %v480_v50  ;;  %v485_v12 = vrot.slane %v117_v55, 2  ;;  %v70_v33 = vld [vmem:[%s8101_s0 + $0xa4] sm:$0x1] }
  0x34   :  { %v6141_v31 = vpack.i.bf16 %v478_v30, %v476_v29  ;;  %v6172_v4 = vpack.i.bf16 %v273_v62, %v271_v60  ;;  %v483_v5 = vsel %vm428_vm1, %v480_v50, %v482_v51  ;;  %v6175_v6 = vpack.i.bf16 %v117_v55, %v116_v54  ;;  %160 = vst.msk [vmem:[#allocation2 + $0xb0] sm:$0xff] %vm137_vm2, %v116_v54 }
  0x35   :  { %4531 = vrot.lane.b32.xlu0 %v5974_v14, %s5809_s24  ;;  %v64_v14 = vld [vmem:[%s8101_s0 + $0x8c] sm:$0x1]  ;;  %161 = vst.msk [vmem:[#allocation2 + $0xb8] sm:$0xff] %vm137_vm2, %v117_v55  ;;  %v6179_v7 = vpack.i.bf16 %v483_v5, %v481_v0  ;;  %v274_v13 = vrot.slane %v116_v54, 1  ;;  %v484_v53 = vrot.slane %v116_v54, 2  ;;  %v121_v24 = vunpack.c.l.bf16 %v67_v18 }
  0x36   :  { %4536 = vrot.lane.b32.xlu1 %v6023_v40, %s5809_s24  ;;  %v118_v1 = vunpack.c.l.bf16 %v64_v14  ;;  %v122_v25 = vunpack.c.l.bf16 %v68_v19  ;;  %v123_v27 = vunpack.c.h.bf16 %v68_v19  ;;  %v124_v51 = vunpack.c.l.bf16 %v70_v33 }
  0x37   :  { %v276_v8 = vsel %vm218_vm0, %v274_v13, %v275_v15  ;;  %v486_v21 = vsel %vm428_vm1, %v484_v53, %v485_v12  ;;  %v282_v39 = vrot.slane %v121_v24, 1  ;;  %v492_v14 = vrot.slane %v121_v24, 2 }
  0x38   :  { %v277_v16 = vrot.slane %v118_v1, 1  ;;  %v487_v20 = vrot.slane %v118_v1, 2  ;;  %164 = vst.msk [vmem:[#allocation2 + $0xd0] sm:$0xff] %vm137_vm2, %v122_v25  ;;  %165 = vst.msk [vmem:[#allocation2 + $0xd8] sm:$0xff] %vm137_vm2, %v123_v27  ;;  %v6221_v48 = vpack.i.bf16 %v123_v27, %v122_v25  ;;  %v284_v54 = vrot.slane %v122_v25, 1 }
  0x39   :  { %4541 = vrot.lane.b32.xlu0 %v5995_v26, %s5810_s29  ;;  %v5702_v26 = vld [vmem:[%s8102_s1 + $0x10] ss:$0 sps:$4 sm:$0x33]   ;;  %v285_v1 = vrot.slane %v123_v27, 1  ;;  %v495_v5 = vrot.slane %v123_v27, 2  ;;  %v497_v13 = vrot.slane %v124_v51, 2  ;;  %v4605_v18 = vpack.i.bf16 %v6051_v59, %v6049_v58 }
  0x3a   :  { %4546 = vrot.lane.b32.xlu1 %v6030_v44, %s5810_s29  ;;  %v278_v9 = vsel %vm218_vm0, %v275_v15, %v277_v16  ;;  %4405 = vmatprep.subr.msk.bf16.mxu0 %vm1555_vm3, %v5702_v26  ;;  %v1557_v34 = vsel %vm1555_vm3, %v5702_v26, 0  ;;  %v488_v23 = vsel %vm428_vm1, %v485_v12, %v487_v20  ;;  %v287_v26 = vrot.slane %v124_v51, 1  ;;  %v4222_v20 = vld [vmem:[%s8101_s0 + $0xa8] sm:$0xff]   ;;  %v52_v27 = vld [vmem:[%s8101_s0 + $0x5c] sm:$0x1] }
  0x3b   :  { %v6194_v52 = vpack.i.bf16 %v278_v9, %v276_v8  ;;  %4294 = vmatpush3.bf16.msra.mxu0 %v1557_v34  ;;  %v6208_v29 = vpack.i.bf16 %v488_v23, %v486_v21  ;;  %v250_v15 = vrot.slane %v6051_v59, 1  ;;  %v252_v16 = vrot.slane %v103_v17, 1  ;;  %v73_v23 = vld [vmem:[%s8101_s0 + $0xb0] sm:$0x1] }
  0x3c   :  { %v286_v8 = vsel %vm218_vm0, %v284_v54, %v285_v1  ;;  %v288_v9 = vsel %vm218_vm0, %v285_v1, %v287_v26  ;;  %v498_v53 = vsel %vm428_vm1, %v495_v5, %v497_v13  ;;  %v459_v19 = vrot.slane %v6049_v58, 2 }
  0x3d   :  { %4551 = vrot.lane.b32.xlu0 %v6012_v36, %s5811_s10  ;;  %v4221_v36 = vld [vmem:[%s8101_s0 + $0x90] sm:$0xff]   ;;  %v6242_v34 = vpack.i.bf16 %v288_v9, %v286_v8  ;;  %v251_v21 = vsel %vm218_vm0, %v249_v3, %v250_v15  ;;  %v253_v24 = vsel %vm218_vm0, %v250_v15, %v252_v16  ;;  %v127_v58 = vunpack.c.l.bf16 %v73_v23  ;;  %v76_v15 = vld [vmem:[%s8101_s0 + $0xbc] sm:$0x1] }
  0x3e   :  { %4556 = vrot.lane.b32.xlu1 %v6034_v45, %s5811_s10  ;;  %v4170_v63 = vunpack.c.l.bf16 %v4221_v36  ;;  %v4171_v22 = vunpack.c.h.bf16 %v4221_v36  ;;  %v4615_v56 = vpack.i.bf16 %v253_v24, %v251_v21  ;;  %v254_v54 = vrot.slane %v6014_v37, 1 }
  0x3f   :  { %v292_v33 = vrot.slane %v127_v58, 1  ;;  %v130_v9 = vunpack.c.l.bf16 %v76_v15  ;;  %v464_v21 = vrot.slane %v6014_v37, 2  ;;  %vm395_vm4 = vcmask 64544  }
  0x40   :  { %v6210_v30 = vpack.i.bf16 %v4171_v22, %v4170_v63  ;;  %162 = vst.msk [vmem:[#allocation2 + $0xc0] sm:$0xff] %vm137_vm2, %v4170_v63  ;;  %163 = vst.msk [vmem:[#allocation2 + $0xc8] sm:$0xff] %vm137_vm2, %v4171_v22  ;;  %v279_v32 = vrot.slane %v4170_v63, 1  ;;  %v280_v35 = vrot.slane %v4171_v22, 1  ;;  %v489_v42 = vrot.slane %v4170_v63, 2 }
  0x41   :  { %4561 = vrot.lane.b32.xlu0 %v6023_v40, %s5812_s15  ;;  %v490_v43 = vrot.slane %v4171_v22, 2  ;;  %v460_v63 = vrot.slane %v6051_v59, 2  ;;  %v4174_v22 = vunpack.c.l.bf16 %v4222_v20  ;;  %v507_v37 = vrot.slane %v130_v9, 2 }
  0x42   :  { %4566 = vrot.lane.b32.xlu1 %v6112_v57, %s5812_s15  ;;  %v281_v49 = vsel %vm218_vm0, %v279_v32, %v280_v35  ;;  %v283_v50 = vsel %vm218_vm0, %v280_v35, %v282_v39  ;;  %v106_v35 = vunpack.c.l.bf16 %v52_v27  ;;  %vm605_vm5 = vcmask 97344  }
  0x43   :  { %v6227_v55 = vpack.i.bf16 %v283_v50, %v281_v49  ;;  %v491_v60 = vsel %vm428_vm1, %v489_v42, %v490_v43  ;;  %v493_v62 = vsel %vm428_vm1, %v490_v43, %v492_v14  ;;  %166 = vst.msk [vmem:[#allocation2 + $0xe0] sm:$0xff] %vm137_vm2, %v4174_v22  ;;  %v289_v59 = vrot.slane %v4174_v22, 1 }
  0x44   :  { %v6231_v0 = vpack.i.bf16 %v493_v62, %v491_v60  ;;  %v502_v50 = vrot.slane %v127_v58, 2  ;;  %v255_v60 = vrot.slane %v6016_v38, 1  ;;  %v257_v62 = vrot.slane %v106_v35, 1 }
  0x45   :  { %4571 = vrot.lane.b32.xlu0 %v6030_v44, %s5813_s22  ;;  %vm736_vm6 = vcmask 130144   ;;  %vm871_vm7 = vcmask 162944   ;;  %vm1005_vm8 = vcmask 195744   ;;  %vm1136_vm9 = vcmask 228544  }
  0x46   :  { %4576 = vrot.lane.b32.xlu1 %v6023_v40, %s5806_s17  ;;  %v494_v40 = vrot.slane %v122_v25, 2  ;;  %v462_v25 = vrot.slane %v103_v17, 2  ;;  %v461_v17 = vsel %vm428_vm1, %v459_v19, %v460_v63  ;;  %v256_v16 = vsel %vm218_vm0, %v254_v54, %v255_v60 }
  0x47   :  { %v258_v8 = vsel %vm218_vm0, %v255_v60, %v257_v62  ;;  %v297_v19 = vrot.slane %v130_v9, 1  ;;  %vm1271_vm10 = vcmask 261344   ;;  %vm1405_vm11 = vcmask 294144  }
  0x48   :  { %v496_v36 = vsel %vm428_vm1, %v494_v40, %v495_v5  ;;  %v463_v39 = vsel %vm428_vm1, %v460_v63, %v462_v25  ;;  %v465_v63 = vrot.slane %v6016_v38, 2  ;;  %vm1506_vm12 = vcmask 293888  }
  0x49   :  { %4581 = vrot.lane.b32.xlu0 %v6148_v41, %s5813_s22  ;;  %v6246_v12 = vpack.i.bf16 %v498_v53, %v496_v36  ;;  %v4625_v51 = vpack.i.bf16 %v463_v39, %v461_v17  ;;  %vm5815_vm13 = vmmov 0   ;;  %vm1976_vm14 = vcmask 1040384  }
  0x4a   :  { %4586 = vrot.lane.b32.xlu1 %v6112_v57, %s5806_s17 }
  0x4d   :  { %4591 = vrot.lane.b32.xlu0 %v6030_v44, %s5807_s18  ;;  %v4175_v44 = vunpack.c.h.bf16 %v4222_v20  ;;  %v4645_v20 = vpack.i.bf16 %v258_v8, %v256_v16 }
  0x4e   :  { %4596 = vrot.lane.b32.xlu1 %v6148_v41, %s5807_s18 }
  0x4f   :  { %v6271_v32 = vpack.i.bf16 %v4175_v44, %v4174_v22  ;;  %167 = vst.msk [vmem:[#allocation2 + $0xe8] sm:$0xff] %vm137_vm2, %v4175_v44  ;;  %v290_v3 = vrot.slane %v4175_v44, 1  ;;  %v500_v49 = vrot.slane %v4175_v44, 2 }
  0x51   :  { %4601 = vrot.lane.b32.xlu0 %v6034_v45, %s5808_s23  ;;  %v291_v42 = vsel %vm218_vm0, %v289_v59, %v290_v3  ;;  %v293_v43 = vsel %vm218_vm0, %v290_v3, %v292_v33  ;;  %v499_v45 = vrot.slane %v4174_v22, 2  ;;  %v503_v26 = vsel %vm428_vm1, %v500_v49, %v502_v50 }
  0x52   :  { %4606 = vrot.lane.b32.xlu1 %v4605_v18, %s5808_s23  ;;  %v6282_v14 = vpack.i.bf16 %v293_v43, %v291_v42  ;;  %v467_v22 = vrot.slane %v106_v35, 2 }
  0x53   :  { %v501_v1 = vsel %vm428_vm1, %v499_v45, %v500_v49 }
  0x54   :  { %v6291_v40 = vpack.i.bf16 %v503_v26, %v501_v1  ;;  %v468_v25 = vsel %vm428_vm1, %v465_v63, %v467_v22 }
  0x55   :  { %4611 = vrot.lane.b32.xlu0 %v6112_v57, %s5809_s24  ;;  %v74_v57 = vld [vmem:[%s8101_s0 + $0xb4] sm:$0xff]  }
  0x56   :  { %4616 = vrot.lane.b32.xlu1 %v4615_v56, %s5809_s24  ;;  %v128_v5 = vunpack.c.l.bf16 %v74_v57  ;;  %v129_v13 = vunpack.c.h.bf16 %v74_v57 }
  0x58   :  { %v6304_v36 = vpack.i.bf16 %v129_v13, %v128_v5  ;;  %168 = vst.msk [vmem:[#allocation2 + $0xf0] sm:$0xff] %vm137_vm2, %v128_v5  ;;  %169 = vst.msk [vmem:[#allocation2 + $0xf8] sm:$0xff] %vm137_vm2, %v129_v13  ;;  %v295_v53 = vrot.slane %v129_v13, 1  ;;  %v504_v27 = vrot.slane %v128_v5, 2  ;;  %v505_v58 = vrot.slane %v129_v13, 2 }
  0x59   :  { %4621 = vrot.lane.b32.xlu0 %v6148_v41, %s5810_s29  ;;  %v294_v41 = vrot.slane %v128_v5, 1 }
  0x5a   :  { %4626 = vrot.lane.b32.xlu1 %v4625_v51, %s5810_s29  ;;  %v298_v23 = vsel %vm218_vm0, %v295_v53, %v297_v19  ;;  %v506_v59 = vsel %vm428_vm1, %v504_v27, %v505_v58  ;;  %v508_v3 = vsel %vm428_vm1, %v505_v58, %v507_v37 }
  0x5b   :  { %v296_v44 = vsel %vm218_vm0, %v294_v41, %v295_v53  ;;  %v6325_v33 = vpack.i.bf16 %v508_v3, %v506_v59 }
  0x5c   :  { %v6315_v24 = vpack.i.bf16 %v298_v23, %v296_v44 }
  0x5d   :  { %4631 = vrot.lane.b32.xlu0 %v4605_v18, %s5811_s10  ;;  %v466_v18 = vsel %vm428_vm1, %v464_v21, %v465_v63 }
  0x5e   :  { %4636 = vrot.lane.b32.xlu1 %v6041_v47, %s5811_s10  ;;  %v4660_v38 = vpack.i.bf16 %v468_v25, %v466_v18 }
  0x61   :  { %4641 = vrot.lane.b32.xlu0 %v4615_v56, %s5812_s15 }
  0x62   :  { %4646 = vrot.lane.b32.xlu1 %v4645_v20, %s5812_s15 }
  0x65   :  { %4651 = vrot.lane.b32.xlu0 %v4625_v51, %s5813_s22 }
  0x66   :  { %4656 = vrot.lane.b32.xlu1 %v4615_v56, %s5806_s17 }
  0x69   :  { %4661 = vrot.lane.b32.xlu0 %v4660_v38, %s5813_s22 }
  0x6a   :  { %4666 = vrot.lane.b32.xlu1 %v4645_v20, %s5806_s17 }
  0x6d   :  { %4671 = vrot.lane.b32.xlu0 %v4625_v51, %s5807_s18 }
  0x6e   :  { %4676 = vrot.lane.b32.xlu1 %v4660_v38, %s5807_s18 }
  0x71   :  { %4681 = vrot.lane.b32.xlu0 %v6041_v47, %s5808_s23 }
  0x72   :  { %4686 = vrot.lane.b32.xlu1 %v6053_v61, %s5808_s23 }
  0x75   :  { %4691 = vrot.lane.b32.xlu0 %v4645_v20, %s5809_s24 }
  0x76   :  { %4696 = vrot.lane.b32.xlu1 %v6103_v2, %s5809_s24 }
  0x79   :  { %4701 = vrot.lane.b32.xlu0 %v4660_v38, %s5810_s29 }
  0x7a   :  { %4706 = vrot.lane.b32.xlu1 %v6107_v11, %s5810_s29 }
  0x7b   :  { %v4422_v56 = vpop.permute.xlu0 %4421 }
  0x7c   :  { %v4424_v17 = vunpack.i.h.bf16 %v4422_v56  ;;  %v4423_v35 = vunpack.i.l.bf16 %v4422_v56  ;;  %v4437_v39 = vpop.permute.xlu1 %4436 }
  0x7d   :  { %v4439_v47 = vunpack.i.h.bf16 %v4437_v39  ;;  %v4438_v42 = vunpack.i.l.bf16 %v4437_v39  ;;  %4711 = vrot.lane.b32.xlu0 %v6053_v61, %s5811_s10 }
  0x7e   :  { %397 = vst.msk [vmem:[#allocation2 + $0x8] sm:$0xff] %vm395_vm4, %v4424_v17  ;;  %396 = vst.msk [vmem:[#allocation2] sm:$0xff] %vm395_vm4, %v4423_v35  ;;  %4716 = vrot.lane.b32.xlu1 %v6114_v10, %s5811_s10 }
  0x7f   :  { %606 = vst.msk [vmem:[#allocation2] sm:$0xff] %vm605_vm5, %v4438_v42  ;;  %607 = vst.msk [vmem:[#allocation2 + $0x8] sm:$0xff] %vm605_vm5, %v4439_v47  ;;  %v4427_v43 = vpop.permute.xlu0 %4426 }
  0x80   :  { %v4429_v45 = vunpack.i.h.bf16 %v4427_v43  ;;  %v4428_v49 = vunpack.i.l.bf16 %v4427_v43  ;;  %v4442_v50 = vpop.permute.xlu1 %4441 }
  0x81   :  { %v4444_v51 = vunpack.i.h.bf16 %v4442_v50  ;;  %v4443_v54 = vunpack.i.l.bf16 %v4442_v50  ;;  %4721 = vrot.lane.b32.xlu0 %v6103_v2, %s5812_s15 }
  0x82   :  { %399 = vst.msk [vmem:[#allocation2 + $0x18] sm:$0xff] %vm395_vm4, %v4429_v45  ;;  %398 = vst.msk [vmem:[#allocation2 + $0x10] sm:$0xff] %vm395_vm4, %v4428_v49  ;;  %4726 = vrot.lane.b32.xlu1 %v6135_v28, %s5812_s15 }
  0x83   :  { %608 = vst.msk [vmem:[#allocation2 + $0x10] sm:$0xff] %vm605_vm5, %v4443_v54  ;;  %609 = vst.msk [vmem:[#allocation2 + $0x18] sm:$0xff] %vm605_vm5, %v4444_v51  ;;  %v4432_v61 = vpop.permute.xlu0 %4431 }
  0x84   :  { %v4434_v60 = vunpack.i.h.bf16 %v4432_v61  ;;  %v4433_v62 = vunpack.i.l.bf16 %v4432_v61  ;;  %v4447_v1 = vpop.permute.xlu1 %4446 }
  0x85   :  { %v4449_v26 = vunpack.i.h.bf16 %v4447_v1  ;;  %v4448_v57 = vunpack.i.l.bf16 %v4447_v1  ;;  %4731 = vrot.lane.b32.xlu0 %v6107_v11, %s5813_s22 }
  0x86   :  { %737 = vst.msk [vmem:[#allocation2] sm:$0xff] %vm736_vm6, %v4433_v62  ;;  %738 = vst.msk [vmem:[#allocation2 + $0x8] sm:$0xff] %vm736_vm6, %v4434_v60  ;;  %4736 = vrot.lane.b32.xlu1 %v6103_v2, %s5806_s17 }
  0x87   :  { %739 = vst.msk [vmem:[#allocation2 + $0x10] sm:$0xff] %vm736_vm6, %v4448_v57  ;;  %740 = vst.msk [vmem:[#allocation2 + $0x18] sm:$0xff] %vm736_vm6, %v4449_v26  ;;  %v4452_v5 = vpop.permute.xlu0 %4451 }
  0x88   :  { %v4454_v13 = vunpack.i.h.bf16 %v4452_v5  ;;  %v4453_v15 = vunpack.i.l.bf16 %v4452_v5  ;;  %v4457_v16 = vpop.permute.xlu1 %4456 }
  0x89   :  { %v4459_v8 = vunpack.i.h.bf16 %v4457_v16  ;;  %v4458_v9 = vunpack.i.l.bf16 %v4457_v16  ;;  %4741 = vrot.lane.b32.xlu0 %v6141_v31, %s5813_s22 }
  0x8a   :  { %872 = vst.msk [vmem:[#allocation2] sm:$0xff] %vm871_vm7, %v4453_v15  ;;  %873 = vst.msk [vmem:[#allocation2 + $0x8] sm:$0xff] %vm871_vm7, %v4454_v13  ;;  %4746 = vrot.lane.b32.xlu1 %v6135_v28, %s5806_s17 }
  0x8b   :  { %874 = vst.msk [vmem:[#allocation2 + $0x10] sm:$0xff] %vm871_vm7, %v4458_v9  ;;  %875 = vst.msk [vmem:[#allocation2 + $0x18] sm:$0xff] %vm871_vm7, %v4459_v8  ;;  %v4462_v2 = vpop.permute.xlu0 %4461 }
  0x8c   :  { %v4464_v41 = vunpack.i.h.bf16 %v4462_v2  ;;  %v4463_v53 = vunpack.i.l.bf16 %v4462_v2  ;;  %v4467_v19 = vpop.permute.xlu1 %4466 }
  0x8d   :  { %v4469_v20 = vunpack.i.h.bf16 %v4467_v19  ;;  %v4468_v21 = vunpack.i.l.bf16 %v4467_v19  ;;  %4751 = vrot.lane.b32.xlu0 %v6107_v11, %s5807_s18 }
  0x8e   :  { %1006 = vst.msk [vmem:[#allocation2] sm:$0xff] %vm1005_vm8, %v4463_v53  ;;  %1007 = vst.msk [vmem:[#allocation2 + $0x8] sm:$0xff] %vm1005_vm8, %v4464_v41  ;;  %4756 = vrot.lane.b32.xlu1 %v6141_v31, %s5807_s18 }
  0x8f   :  { %1008 = vst.msk [vmem:[#allocation2 + $0x10] sm:$0xff] %vm1005_vm8, %v4468_v21  ;;  %1009 = vst.msk [vmem:[#allocation2 + $0x18] sm:$0xff] %vm1005_vm8, %v4469_v20  ;;  %v4472_v63 = vpop.permute.xlu0 %4471 }
  0x90   :  { %v4474_v22 = vunpack.i.h.bf16 %v4472_v63  ;;  %v4473_v44 = vunpack.i.l.bf16 %v4472_v63  ;;  %v4477_v23 = vpop.permute.xlu1 %4476 }
  0x91   :  { %v4479_v18 = vunpack.i.h.bf16 %v4477_v23  ;;  %v4478_v25 = vunpack.i.l.bf16 %v4477_v23  ;;  %4761 = vrot.lane.b32.xlu0 %v6114_v10, %s5808_s23 }
  0x92   :  { %1137 = vst.msk [vmem:[#allocation2] sm:$0xff] %vm1136_vm9, %v4473_v44  ;;  %1138 = vst.msk [vmem:[#allocation2 + $0x8] sm:$0xff] %vm1136_vm9, %v4474_v22  ;;  %4766 = vrot.lane.b32.xlu1 %v6154_v46, %s5808_s23 }
  0x93   :  { %1139 = vst.msk [vmem:[#allocation2 + $0x10] sm:$0xff] %vm1136_vm9, %v4478_v25  ;;  %1140 = vst.msk [vmem:[#allocation2 + $0x18] sm:$0xff] %vm1136_vm9, %v4479_v18  ;;  %v4482_v11 = vpop.permute.xlu0 %4481 }
  0x94   :  { %v4484_v27 = vunpack.i.h.bf16 %v4482_v11  ;;  %v4483_v58 = vunpack.i.l.bf16 %v4482_v11  ;;  %v4487_v37 = vpop.permute.xlu1 %4486 }
  0x95   :  { %v4489_v38 = vunpack.i.h.bf16 %v4487_v37  ;;  %v4488_v59 = vunpack.i.l.bf16 %v4487_v37  ;;  %4771 = vrot.lane.b32.xlu0 %v6135_v28, %s5809_s24 }
  0x96   :  { %1272 = vst.msk [vmem:[#allocation2] sm:$0xff] %vm1271_vm10, %v4483_v58  ;;  %1273 = vst.msk [vmem:[#allocation2 + $0x8] sm:$0xff] %vm1271_vm10, %v4484_v27  ;;  %4776 = vrot.lane.b32.xlu1 %v6172_v4, %s5809_s24 }
  0x97   :  { %1274 = vst.msk [vmem:[#allocation2 + $0x10] sm:$0xff] %vm1271_vm10, %v4488_v59  ;;  %1275 = vst.msk [vmem:[#allocation2 + $0x18] sm:$0xff] %vm1271_vm10, %v4489_v38  ;;  %v4492_v10 = vpop.permute.xlu0 %4491 }
  0x98   :  { %v4494_v3 = vunpack.i.h.bf16 %v4492_v10  ;;  %v4493_v56 = vunpack.i.l.bf16 %v4492_v10  ;;  %v4497_v17 = vpop.permute.xlu1 %4496 }
  0x99   :  { %v4499_v35 = vunpack.i.h.bf16 %v4497_v17  ;;  %v4498_v39 = vunpack.i.l.bf16 %v4497_v17  ;;  %4781 = vrot.lane.b32.xlu0 %v6141_v31, %s5810_s29  ;;  %v4224_v31 = vld [vmem:[%s8101_s0 + $0xd8] sm:$0xff]  }
  0x9a   :  { %1406 = vst.msk [vmem:[#allocation2] sm:$0xff] %vm1405_vm11, %v4493_v56  ;;  %1407 = vst.msk [vmem:[#allocation2 + $0x8] sm:$0xff] %vm1405_vm11, %v4494_v3  ;;  %4786 = vrot.lane.b32.xlu1 %v6179_v7, %s5810_s29  ;;  %v6418_v60 = vunpack.c.h.bf16 %v4224_v31 }
  0x9b   :  { %401 = vst.msk [vmem:[#allocation2 + $0x28] sm:$0xff] %vm395_vm4, %v4499_v35  ;;  %400 = vst.msk [vmem:[#allocation2 + $0x20] sm:$0xff] %vm395_vm4, %v4498_v39  ;;  %v4502_v28 = vpop.permute.xlu0 %4501 }
  0x9c   :  { %v4504_v47 = vunpack.i.h.bf16 %v4502_v28  ;;  %v4503_v42 = vunpack.i.l.bf16 %v4502_v28  ;;  %v4507_v43 = vpop.permute.xlu1 %4506 }
  0x9d   :  { %v4509_v45 = vunpack.i.h.bf16 %v4507_v43  ;;  %v4508_v49 = vunpack.i.l.bf16 %v4507_v43  ;;  %4791 = vrot.lane.b32.xlu0 %v6154_v46, %s5811_s10  ;;  %v6416_v46 = vunpack.c.l.bf16 %v4224_v31  ;;  %v4064_v31 = vld [vmem:[%s8101_s0 + $0xe4] sm:$0xff]  }
  0x9e   :  { %1408 = vst.msk [vmem:[#allocation2 + $0x10] sm:$0xff] %vm1405_vm11, %v4503_v42  ;;  %1409 = vst.msk [vmem:[#allocation2 + $0x18] sm:$0xff] %vm1405_vm11, %v4504_v47  ;;  %4796 = vrot.lane.b32.xlu1 %v6175_v6, %s5811_s10  ;;  %v4063_v42 = vld [vmem:[%s8101_s0 + $0xe0] sm:$0x1] }
  0x9f   :  { %403 = vst.msk [vmem:[#allocation2 + $0x38] sm:$0xff] %vm395_vm4, %v4509_v45  ;;  %402 = vst.msk [vmem:[#allocation2 + $0x30] sm:$0xff] %vm395_vm4, %v4508_v49  ;;  %v4512_v50 = vpop.permute.xlu0 %4511 }
  0xa0   :  { %v4514_v51 = vunpack.i.h.bf16 %v4512_v50  ;;  %v4513_v54 = vunpack.i.l.bf16 %v4512_v50  ;;  %v4517_v61 = vpop.permute.xlu1 %4516  ;;  %v4066_v50 = vld [vmem:[%s8101_s0 + $0xec] sm:$0x1] }
  0xa1   :  { %v4519_v62 = vunpack.i.h.bf16 %v4517_v61  ;;  %v4518_v1 = vunpack.i.l.bf16 %v4517_v61  ;;  %4801 = vrot.lane.b32.xlu0 %v6172_v4, %s5812_s15  ;;  %v1438_v26 = vld [vmem:[#allocation2] sm:$0xff]  ;;  %v1439_v57 = vld [vmem:[#allocation2 + $0x8] sm:$0xff]  ;;  %v6485_v61 = vunpack.c.l.bf16 %v4064_v31 }
  0xa2   :  { %611 = vst.msk [vmem:[#allocation2 + $0x28] sm:$0xff] %vm605_vm5, %v4514_v51  ;;  %610 = vst.msk [vmem:[#allocation2 + $0x20] sm:$0xff] %vm605_vm5, %v4513_v54  ;;  %4806 = vrot.lane.b32.xlu1 %v6194_v52, %s5812_s15  ;;  %v1470_v5 = vpack.c.bf16 %v1439_v57, %v1438_v26  ;;  %v2208_v26 = vrot.slane %v6418_v60, 1 }
  0xa3   :  { %2127 = vst.msk [vmem:[#allocation2] sm:$0xff] %vm137_vm2, %v6416_v46  ;;  %2128 = vst.msk [vmem:[#allocation2 + $0x8] sm:$0xff] %vm137_vm2, %v6418_v60  ;;  %v4522_v13 = vpop.permute.xlu0 %4521 }
  0xa4   :  { %612 = vst.msk [vmem:[#allocation2 + $0x30] sm:$0xff] %vm605_vm5, %v4518_v1  ;;  %613 = vst.msk [vmem:[#allocation2 + $0x38] sm:$0xff] %vm605_vm5, %v4519_v62  ;;  %v4524_v15 = vunpack.i.h.bf16 %v4522_v13  ;;  %v4523_v16 = vunpack.i.l.bf16 %v4522_v13  ;;  %v4527_v8 = vpop.permute.xlu1 %4526  ;;  %4295 = vmatprep.mubr.msk.bf16.mxu0 %vm1506_vm12, %v1470_v5  ;;  %v6487_v62 = vunpack.c.h.bf16 %v4064_v31  ;;  %v2207_v1 = vrot.slane %v6416_v46, 1  ;;  %v4069_v31 = vld [vmem:[%s8101_s0 + $0xf8] sm:$0x1] }
  0xa5   :  { %v4529_v9 = vunpack.i.h.bf16 %v4527_v8  ;;  %v4528_v2 = vunpack.i.l.bf16 %v4527_v8  ;;  %4811 = vrot.lane.b32.xlu0 %v6179_v7, %s5813_s22  ;;  %v1440_v41 = vld [vmem:[#allocation2 + $0x10] sm:$0xff]  ;;  %v1441_v53 = vld [vmem:[#allocation2 + $0x18] sm:$0xff]  ;;  %v2078_v5 = vunpack.c.l.bf16 %v4066_v50  ;;  %v2212_v13 = vrot.slane %v6485_v61, 1 }
  0xa6   :  { %741 = vst.msk [vmem:[#allocation2 + $0x20] sm:$0xff] %vm736_vm6, %v4523_v16  ;;  %742 = vst.msk [vmem:[#allocation2 + $0x28] sm:$0xff] %vm736_vm6, %v4524_v15  ;;  %4816 = vrot.lane.b32.xlu1 %v6172_v4, %s5806_s17  ;;  %v1471_v19 = vpack.c.bf16 %v1441_v53, %v1440_v41  ;;  %v2213_v15 = vrot.slane %v6487_v62, 1 }
  0xa7   :  { %743 = vst.msk [vmem:[#allocation2 + $0x30] sm:$0xff] %vm736_vm6, %v4528_v2  ;;  %744 = vst.msk [vmem:[#allocation2 + $0x38] sm:$0xff] %vm736_vm6, %v4529_v9  ;;  %v4532_v20 = vpop.permute.xlu0 %4531  ;;  %v6504_v2 = vsel %vm218_vm0, %v2207_v1, %v2208_v26 }
  0xa8   :  { %v4534_v21 = vunpack.i.h.bf16 %v4532_v20  ;;  %v4533_v63 = vunpack.i.l.bf16 %v4532_v20  ;;  %v4537_v22 = vpop.permute.xlu1 %4536  ;;  %4296 = vmatmul.mubr.msk.bf16.vlgmr.msra.gmra.mrb[0].mxu0 %vm1506_vm12, %v1471_v19  ;;  %2129 = vst.msk [vmem:[#allocation2 + $0x10] sm:$0xff] %vm137_vm2, %v6485_v61  ;;  %2130 = vst.msk [vmem:[#allocation2 + $0x18] sm:$0xff] %vm137_vm2, %v6487_v62 }
  0xa9   :  { %v4539_v44 = vunpack.i.h.bf16 %v4537_v22  ;;  %v4538_v23 = vunpack.i.l.bf16 %v4537_v22  ;;  %4821 = vrot.lane.b32.xlu0 %v6208_v29, %s5813_s22  ;;  %v2415_v22 = vrot.slane %v6416_v46, 2 }
  0xaa   :  { %876 = vst.msk [vmem:[#allocation2 + $0x20] sm:$0xff] %vm871_vm7, %v4533_v63  ;;  %877 = vst.msk [vmem:[#allocation2 + $0x28] sm:$0xff] %vm871_vm7, %v4534_v21  ;;  %4826 = vrot.lane.b32.xlu1 %v6194_v52, %s5806_s17  ;;  %v2214_v21 = vsel %vm218_vm0, %v2212_v13, %v2213_v15  ;;  %v2215_v63 = vrot.slane %v2078_v5, 1 }
  0xab   :  { %878 = vst.msk [vmem:[#allocation2 + $0x30] sm:$0xff] %vm871_vm7, %v4538_v23  ;;  %879 = vst.msk [vmem:[#allocation2 + $0x38] sm:$0xff] %vm871_vm7, %v4539_v44  ;;  %v4542_v4 = vpop.permute.xlu0 %4541  ;;  %v2416_v44 = vrot.slane %v6418_v60, 2 }
  0xac   :  { %v4544_v18 = vunpack.i.h.bf16 %v4542_v4  ;;  %v4543_v25 = vunpack.i.l.bf16 %v4542_v4  ;;  %v4547_v11 = vpop.permute.xlu1 %4546  ;;  %v2420_v4 = vrot.slane %v6485_v61, 2 }
  0xad   :  { %v4549_v27 = vunpack.i.h.bf16 %v4547_v11  ;;  %v4548_v58 = vunpack.i.l.bf16 %v4547_v11  ;;  %4831 = vrot.lane.b32.xlu0 %v6179_v7, %s5807_s18  ;;  %v6526_v46 = vsel %vm428_vm1, %v2415_v22, %v2416_v44 }
  0xae   :  { %1010 = vst.msk [vmem:[#allocation2 + $0x20] sm:$0xff] %vm1005_vm8, %v4543_v25  ;;  %1011 = vst.msk [vmem:[#allocation2 + $0x28] sm:$0xff] %vm1005_vm8, %v4544_v18  ;;  %4836 = vrot.lane.b32.xlu1 %v6208_v29, %s5807_s18  ;;  %v2421_v18 = vrot.slane %v6487_v62, 2  ;;  %v2423_v25 = vrot.slane %v2078_v5, 2 }
  0xaf   :  { %1012 = vst.msk [vmem:[#allocation2 + $0x30] sm:$0xff] %vm1005_vm8, %v4548_v58  ;;  %1013 = vst.msk [vmem:[#allocation2 + $0x38] sm:$0xff] %vm1005_vm8, %v4549_v27  ;;  %v4552_v37 = vpop.permute.xlu0 %4551 }
  0xb0   :  { %v4554_v38 = vunpack.i.h.bf16 %v4552_v37  ;;  %v4553_v59 = vunpack.i.l.bf16 %v4552_v37  ;;  %v4557_v10 = vpop.permute.xlu1 %4556  ;;  %v2216_v37 = vsel %vm218_vm0, %v2213_v15, %v2215_v63 }
  0xb1   :  { %v4559_v3 = vunpack.i.h.bf16 %v4557_v10  ;;  %v4558_v56 = vunpack.i.l.bf16 %v4557_v10  ;;  %4841 = vrot.lane.b32.xlu0 %v6175_v6, %s5808_s23 }
  0xb2   :  { %1141 = vst.msk [vmem:[#allocation2 + $0x20] sm:$0xff] %vm1136_vm9, %v4553_v59  ;;  %1142 = vst.msk [vmem:[#allocation2 + $0x28] sm:$0xff] %vm1136_vm9, %v4554_v38  ;;  %4846 = vrot.lane.b32.xlu1 %v6210_v30, %s5808_s23 }
  0xb3   :  { %1143 = vst.msk [vmem:[#allocation2 + $0x30] sm:$0xff] %vm1136_vm9, %v4558_v56  ;;  %1144 = vst.msk [vmem:[#allocation2 + $0x38] sm:$0xff] %vm1136_vm9, %v4559_v3  ;;  %v4562_v7 = vpop.permute.xlu0 %4561  ;;  %v6530_v3 = vpack.i.bf16 %v2216_v37, %v2214_v21 }
  0xb4   :  { %v4564_v17 = vunpack.i.h.bf16 %v4562_v7  ;;  %v4563_v35 = vunpack.i.l.bf16 %v4562_v7  ;;  %v4567_v39 = vpop.permute.xlu1 %4566 }
  0xb5   :  { %v4569_v28 = vunpack.i.h.bf16 %v4567_v39  ;;  %v4568_v47 = vunpack.i.l.bf16 %v4567_v39  ;;  %4851 = vrot.lane.b32.xlu0 %v6194_v52, %s5809_s24  ;;  %v2075_v52 = vunpack.c.l.bf16 %v4063_v42  ;;  %v2424_v39 = vsel %vm428_vm1, %v2421_v18, %v2423_v25 }
  0xb6   :  { %1276 = vst.msk [vmem:[#allocation2 + $0x20] sm:$0xff] %vm1271_vm10, %v4563_v35  ;;  %1277 = vst.msk [vmem:[#allocation2 + $0x28] sm:$0xff] %vm1271_vm10, %v4564_v17  ;;  %4856 = vrot.lane.b32.xlu1 %v6227_v55, %s5809_s24  ;;  %v2422_v35 = vsel %vm428_vm1, %v2420_v4, %v2421_v18 }
  0xb7   :  { %1278 = vst.msk [vmem:[#allocation2 + $0x30] sm:$0xff] %vm1271_vm10, %v4568_v47  ;;  %1279 = vst.msk [vmem:[#allocation2 + $0x38] sm:$0xff] %vm1271_vm10, %v4569_v28  ;;  %v4572_v6 = vpop.permute.xlu0 %4571  ;;  %v2210_v57 = vrot.slane %v2075_v52, 1  ;;  %v2418_v23 = vrot.slane %v2075_v52, 2  ;;  %v6545_v47 = vpack.i.bf16 %v2424_v39, %v2422_v35 }
  0xb8   :  { %v4574_v43 = vunpack.i.h.bf16 %v4572_v6  ;;  %v4573_v45 = vunpack.i.l.bf16 %v4572_v6  ;;  %v4577_v49 = vpop.permute.xlu1 %4576  ;;  %v4225_v6 = vld [vmem:[%s8101_s0 + $0xf0] sm:$0xff]  }
  0xb9   :  { %v4579_v51 = vunpack.i.h.bf16 %v4577_v49  ;;  %v4578_v54 = vunpack.i.l.bf16 %v4577_v49  ;;  %4861 = vrot.lane.b32.xlu0 %v6208_v29, %s5810_s29  ;;  %v6507_v41 = vsel %vm218_vm0, %v2208_v26, %v2210_v57  ;;  %v6533_v56 = vsel %vm428_vm1, %v2416_v44, %v2418_v23 }
  0xba   :  { %1410 = vst.msk [vmem:[#allocation2 + $0x20] sm:$0xff] %vm1405_vm11, %v4573_v45  ;;  %1411 = vst.msk [vmem:[#allocation2 + $0x28] sm:$0xff] %vm1405_vm11, %v4574_v43  ;;  %4866 = vrot.lane.b32.xlu1 %v6231_v0, %s5810_s29  ;;  %v5060_v20 = vpack.i.bf16 %v6507_v41, %v6504_v2  ;;  %v5070_v17 = vpack.i.bf16 %v6533_v56, %v6526_v46  ;;  %v4186_v49 = vunpack.c.l.bf16 %v4225_v6  ;;  %v4187_v52 = vunpack.c.h.bf16 %v4225_v6 }
  0xbb   :  { %405 = vst.msk [vmem:[#allocation2 + $0x48] sm:$0xff] %vm395_vm4, %v4579_v51  ;;  %404 = vst.msk [vmem:[#allocation2 + $0x40] sm:$0xff] %vm395_vm4, %v4578_v54  ;;  %v4582_v29 = vpop.permute.xlu0 %4581  ;;  %v5080_v26 = vpack.i.bf16 %v6487_v62, %v6485_v61  ;;  %v2081_v57 = vunpack.c.l.bf16 %v4069_v31 }
  0xbc   :  { %v4584_v16 = vunpack.i.h.bf16 %v4582_v29  ;;  %v4583_v8 = vunpack.i.l.bf16 %v4582_v29  ;;  %v4587_v9 = vpop.permute.xlu1 %4586  ;;  %v6562_v29 = vpack.i.bf16 %v4187_v52, %v4186_v49  ;;  %v2217_v15 = vrot.slane %v4186_v49, 1 }
  0xbd   :  { %v4589_v53 = vunpack.i.h.bf16 %v4587_v9  ;;  %v4588_v19 = vunpack.i.l.bf16 %v4587_v9  ;;  %4871 = vrot.lane.b32.xlu0 %v6210_v30, %s5811_s10  ;;  %v2426_v4 = vrot.slane %v4187_v52, 2  ;;  %v2428_v18 = vrot.slane %v2081_v57, 2 }
  0xbe   :  { %1413 = vst.msk [vmem:[#allocation2 + $0x38] sm:$0xff] %vm1405_vm11, %v4584_v16  ;;  %1412 = vst.msk [vmem:[#allocation2 + $0x30] sm:$0xff] %vm1405_vm11, %v4583_v8  ;;  %4876 = vrot.lane.b32.xlu1 %v6221_v48, %s5811_s10  ;;  %v2218_v16 = vrot.slane %v4187_v52, 1  ;;  %v2220_v8 = vrot.slane %v2081_v57, 1 }
  0xbf   :  { %407 = vst.msk [vmem:[#allocation2 + $0x58] sm:$0xff] %vm395_vm4, %v4589_v53  ;;  %406 = vst.msk [vmem:[#allocation2 + $0x50] sm:$0xff] %vm395_vm4, %v4588_v19  ;;  %v4592_v30 = vpop.permute.xlu0 %4591 }
  0xc0   :  { %v4594_v11 = vunpack.i.h.bf16 %v4592_v30  ;;  %v4593_v27 = vunpack.i.l.bf16 %v4592_v30  ;;  %v4597_v58 = vpop.permute.xlu1 %4596  ;;  %v2219_v63 = vsel %vm218_vm0, %v2217_v15, %v2218_v16  ;;  %v2221_v22 = vsel %vm218_vm0, %v2218_v16, %v2220_v8 }
  0xc1   :  { %v4599_v60 = vunpack.i.h.bf16 %v4597_v58  ;;  %v4598_v38 = vunpack.i.l.bf16 %v4597_v58  ;;  %4881 = vrot.lane.b32.xlu0 %v6227_v55, %s5812_s15  ;;  %v1442_v59 = vld [vmem:[#allocation2 + $0x20] sm:$0xff]  ;;  %v1443_v10 = vld [vmem:[#allocation2 + $0x28] sm:$0xff]  ;;  %v6579_v23 = vpack.i.bf16 %v2221_v22, %v2219_v63  ;;  %v2425_v30 = vrot.slane %v4186_v49, 2 }
  0xc2   :  { %615 = vst.msk [vmem:[#allocation2 + $0x48] sm:$0xff] %vm605_vm5, %v4594_v11  ;;  %614 = vst.msk [vmem:[#allocation2 + $0x40] sm:$0xff] %vm605_vm5, %v4593_v27  ;;  %4886 = vrot.lane.b32.xlu1 %v6242_v34, %s5812_s15  ;;  %v1472_v7 = vpack.c.bf16 %v1443_v10, %v1442_v59 }
  0xc3   :  { %616 = vst.msk [vmem:[#allocation2 + $0x50] sm:$0xff] %vm605_vm5, %v4598_v38  ;;  %617 = vst.msk [vmem:[#allocation2 + $0x58] sm:$0xff] %vm605_vm5, %v4599_v60  ;;  %v4602_v28 = vpop.permute.xlu0 %4601  ;;  %v2427_v60 = vsel %vm428_vm1, %v2425_v30, %v2426_v4  ;;  %v2429_v38 = vsel %vm428_vm1, %v2426_v4, %v2428_v18 }
  0xc4   :  { %v4604_v42 = vunpack.i.h.bf16 %v4602_v28  ;;  %v4603_v43 = vunpack.i.l.bf16 %v4602_v28  ;;  %v4607_v45 = vpop.permute.xlu1 %4606  ;;  %4299 = vmatprep.mubr.msk.bf16.mxu0 %vm1506_vm12, %v1472_v7  ;;  %2131 = vst.msk [vmem:[#allocation2 + $0x20] sm:$0xff] %vm137_vm2, %v4186_v49  ;;  %2132 = vst.msk [vmem:[#allocation2 + $0x28] sm:$0xff] %vm137_vm2, %v4187_v52  ;;  %v6591_v10 = vpack.i.bf16 %v2429_v38, %v2427_v60 }
  0xc5   :  { %v4609_v50 = vunpack.i.h.bf16 %v4607_v45  ;;  %v4608_v51 = vunpack.i.l.bf16 %v4607_v45  ;;  %4891 = vrot.lane.b32.xlu0 %v6231_v0, %s5813_s22  ;;  %v1444_v54 = vld [vmem:[#allocation2 + $0x30] sm:$0xff]  ;;  %v1445_v1 = vld [vmem:[#allocation2 + $0x38] sm:$0xff] }
  0xc6   :  { %745 = vst.msk [vmem:[#allocation2 + $0x40] sm:$0xff] %vm736_vm6, %v4603_v43  ;;  %746 = vst.msk [vmem:[#allocation2 + $0x48] sm:$0xff] %vm736_vm6, %v4604_v42  ;;  %4896 = vrot.lane.b32.xlu1 %v6227_v55, %s5806_s17  ;;  %v1473_v5 = vpack.c.bf16 %v1445_v1, %v1444_v54  ;;  %v4072_v42 = vld [vmem:[%s8101_s0 + $0x104] sm:$0x1] }
  0xc7   :  { %747 = vst.msk [vmem:[#allocation2 + $0x50] sm:$0xff] %vm736_vm6, %v4608_v51  ;;  %748 = vst.msk [vmem:[#allocation2 + $0x58] sm:$0xff] %vm736_vm6, %v4609_v50  ;;  %v4612_v13 = vpop.permute.xlu0 %4611  ;;  %v2084_v49 = vunpack.c.l.bf16 %v4072_v42 }
  0xc8   :  { %v4614_v9 = vunpack.i.h.bf16 %v4612_v13  ;;  %v4613_v53 = vunpack.i.l.bf16 %v4612_v13  ;;  %v4617_v19 = vpop.permute.xlu1 %4616  ;;  %4300 = vmatmul.mubr.msk.bf16.gmra.mrb[4].mxu0 %vm1506_vm12, %v1473_v5 }
  0xc9   :  { %v4619_v55 = vunpack.i.h.bf16 %v4617_v19  ;;  %v4618_v21 = vunpack.i.l.bf16 %v4617_v19  ;;  %4901 = vrot.lane.b32.xlu0 %v6246_v12, %s5813_s22  ;;  %v2225_v51 = vrot.slane %v2084_v49, 1 }
  0xca   :  { %880 = vst.msk [vmem:[#allocation2 + $0x40] sm:$0xff] %vm871_vm7, %v4613_v53  ;;  %881 = vst.msk [vmem:[#allocation2 + $0x48] sm:$0xff] %vm871_vm7, %v4614_v9  ;;  %4906 = vrot.lane.b32.xlu1 %v6242_v34, %s5806_s17 }
  0xcb   :  { %882 = vst.msk [vmem:[#allocation2 + $0x50] sm:$0xff] %vm871_vm7, %v4618_v21  ;;  %883 = vst.msk [vmem:[#allocation2 + $0x58] sm:$0xff] %vm871_vm7, %v4619_v55  ;;  %v4622_v44 = vpop.permute.xlu0 %4621 }
  0xcc   :  { %v4624_v25 = vunpack.i.h.bf16 %v4622_v44  ;;  %v4623_v11 = vunpack.i.l.bf16 %v4622_v44  ;;  %v4627_v27 = vpop.permute.xlu1 %4626  ;;  %v2433_v44 = vrot.slane %v2084_v49, 2  ;;  %v6661_v49 = vld [vmem:[%s8101_s0 + $0xc8] sm:$0x1] }
  0xcd   :  { %v4629_v58 = vunpack.i.h.bf16 %v4627_v27  ;;  %v4628_v37 = vunpack.i.l.bf16 %v4627_v27  ;;  %4911 = vrot.lane.b32.xlu0 %v6231_v0, %s5807_s18  ;;  %v4070_v0 = vld [vmem:[%s8101_s0 + $0xfc] sm:$0xff]  }
  0xce   :  { %1014 = vst.msk [vmem:[#allocation2 + $0x40] sm:$0xff] %vm1005_vm8, %v4623_v11  ;;  %1015 = vst.msk [vmem:[#allocation2 + $0x48] sm:$0xff] %vm1005_vm8, %v4624_v25  ;;  %4916 = vrot.lane.b32.xlu1 %v6246_v12, %s5807_s18  ;;  %v2082_v28 = vunpack.c.l.bf16 %v4070_v0  ;;  %v2083_v6 = vunpack.c.h.bf16 %v4070_v0 }
  0xcf   :  { %1016 = vst.msk [vmem:[#allocation2 + $0x50] sm:$0xff] %vm1005_vm8, %v4628_v37  ;;  %1017 = vst.msk [vmem:[#allocation2 + $0x58] sm:$0xff] %vm1005_vm8, %v4629_v58  ;;  %v4632_v59 = vpop.permute.xlu0 %4631 }
  0xd0   :  { %v4634_v7 = vunpack.i.h.bf16 %v4632_v59  ;;  %v4633_v35 = vunpack.i.l.bf16 %v4632_v59  ;;  %v4637_v39 = vpop.permute.xlu1 %4636  ;;  %v6605_v52 = vpack.i.bf16 %v2083_v6, %v2082_v28  ;;  %2133 = vst.msk [vmem:[#allocation2 + $0x30] sm:$0xff] %vm137_vm2, %v2082_v28  ;;  %2134 = vst.msk [vmem:[#allocation2 + $0x38] sm:$0xff] %vm137_vm2, %v2083_v6  ;;  %v2223_v50 = vrot.slane %v2083_v6, 1 }
  0xd1   :  { %v4639_v43 = vunpack.i.h.bf16 %v4637_v39  ;;  %v4638_v45 = vunpack.i.l.bf16 %v4637_v39  ;;  %4921 = vrot.lane.b32.xlu0 %v6221_v48, %s5808_s23  ;;  %v2222_v48 = vrot.slane %v2082_v28, 1  ;;  %v2430_v63 = vrot.slane %v2082_v28, 2 }
  0xd2   :  { %1145 = vst.msk [vmem:[#allocation2 + $0x40] sm:$0xff] %vm1136_vm9, %v4633_v35  ;;  %1146 = vst.msk [vmem:[#allocation2 + $0x48] sm:$0xff] %vm1136_vm9, %v4634_v7  ;;  %4926 = vrot.lane.b32.xlu1 %v6271_v32, %s5808_s23  ;;  %v2226_v16 = vsel %vm218_vm0, %v2223_v50, %v2225_v51  ;;  %v2431_v22 = vrot.slane %v2083_v6, 2 }
  0xd3   :  { %1147 = vst.msk [vmem:[#allocation2 + $0x50] sm:$0xff] %vm1136_vm9, %v4638_v45  ;;  %1148 = vst.msk [vmem:[#allocation2 + $0x58] sm:$0xff] %vm1136_vm9, %v4639_v43  ;;  %v4642_v31 = vpop.permute.xlu0 %4641  ;;  %v2224_v15 = vsel %vm218_vm0, %v2222_v48, %v2223_v50 }
  0xd4   :  { %v4644_v54 = vunpack.i.h.bf16 %v4642_v31  ;;  %v4643_v1 = vunpack.i.l.bf16 %v4642_v31  ;;  %v4647_v57 = vpop.permute.xlu1 %4646  ;;  %v6621_v9 = vpack.i.bf16 %v2226_v16, %v2224_v15  ;;  %v2434_v11 = vsel %vm428_vm1, %v2431_v22, %v2433_v44  ;;  %v4226_v31 = vld [vmem:[%s8101_s0 + $0x108] sm:$0xff]  }
  0xd5   :  { %v4649_v5 = vunpack.i.h.bf16 %v4647_v57  ;;  %v4648_v13 = vunpack.i.l.bf16 %v4647_v57  ;;  %4931 = vrot.lane.b32.xlu0 %v6242_v34, %s5809_s24  ;;  %v4075_v57 = vld [vmem:[%s8101_s0 + $0x110] sm:$0x1] }
  0xd6   :  { %1280 = vst.msk [vmem:[#allocation2 + $0x40] sm:$0xff] %vm1271_vm10, %v4643_v1  ;;  %1281 = vst.msk [vmem:[#allocation2 + $0x48] sm:$0xff] %vm1271_vm10, %v4644_v54  ;;  %4936 = vrot.lane.b32.xlu1 %v6282_v14, %s5809_s24  ;;  %v4190_v54 = vunpack.c.l.bf16 %v4226_v31  ;;  %v4191_v1 = vunpack.c.h.bf16 %v4226_v31 }
  0xd7   :  { %1282 = vst.msk [vmem:[#allocation2 + $0x50] sm:$0xff] %vm1271_vm10, %v4648_v13  ;;  %1283 = vst.msk [vmem:[#allocation2 + $0x58] sm:$0xff] %vm1271_vm10, %v4649_v5  ;;  %v4652_v8 = vpop.permute.xlu0 %4651 }
  0xd8   :  { %v4654_v53 = vunpack.i.h.bf16 %v4652_v8  ;;  %v4653_v34 = vunpack.i.l.bf16 %v4652_v8  ;;  %v4657_v19 = vpop.permute.xlu1 %4656  ;;  %v2087_v8 = vunpack.c.l.bf16 %v4075_v57 }
  0xd9   :  { %v4659_v55 = vunpack.i.h.bf16 %v4657_v19  ;;  %v4658_v21 = vunpack.i.l.bf16 %v4657_v19  ;;  %4941 = vrot.lane.b32.xlu0 %v6246_v12, %s5810_s29  ;;  %v2432_v12 = vsel %vm428_vm1, %v2430_v63, %v2431_v22  ;;  %v6677_v19 = vpack.i.bf16 %v4191_v1, %v4190_v54 }
  0xda   :  { %1414 = vst.msk [vmem:[#allocation2 + $0x40] sm:$0xff] %vm1405_vm11, %v4653_v34  ;;  %1415 = vst.msk [vmem:[#allocation2 + $0x48] sm:$0xff] %vm1405_vm11, %v4654_v53  ;;  %4946 = vrot.lane.b32.xlu1 %v6291_v40, %s5810_s29  ;;  %v6635_v37 = vpack.i.bf16 %v2434_v11, %v2432_v12  ;;  %v133_v34 = vunpack.c.l.bf16 %v6661_v49  ;;  %v2228_v63 = vrot.slane %v4191_v1, 1  ;;  %v2230_v22 = vrot.slane %v2087_v8, 1 }
  0xdb   :  { %409 = vst.msk [vmem:[#allocation2 + $0x68] sm:$0xff] %vm395_vm4, %v4659_v55  ;;  %408 = vst.msk [vmem:[#allocation2 + $0x60] sm:$0xff] %vm395_vm4, %v4658_v21  ;;  %v4662_v30 = vpop.permute.xlu0 %4661  ;;  %v2227_v21 = vrot.slane %v4190_v54, 1 }
  0xdc   :  { %v4664_v4 = vunpack.i.h.bf16 %v4662_v30  ;;  %v4663_v18 = vunpack.i.l.bf16 %v4662_v30  ;;  %v4667_v25 = vpop.permute.xlu1 %4666 }
  0xdd   :  { %v4669_v27 = vunpack.i.h.bf16 %v4667_v25  ;;  %v4668_v58 = vunpack.i.l.bf16 %v4667_v25  ;;  %4951 = vrot.lane.b32.xlu0 %v6271_v32, %s5811_s10  ;;  %v4223_v32 = vld [vmem:[%s8101_s0 + $0xc0] sm:$0xff]   ;;  %v2229_v11 = vsel %vm218_vm0, %v2227_v21, %v2228_v63  ;;  %v4078_v21 = vld [vmem:[%s8101_s0 + $0x11c] sm:$0x1] }
  0xde   :  { %1417 = vst.msk [vmem:[#allocation2 + $0x58] sm:$0xff] %vm1405_vm11, %v4664_v4  ;;  %1416 = vst.msk [vmem:[#allocation2 + $0x50] sm:$0xff] %vm1405_vm11, %v4663_v18  ;;  %4956 = vrot.lane.b32.xlu1 %v6304_v36, %s5811_s10  ;;  %v6654_v43 = vunpack.c.l.bf16 %v4223_v32  ;;  %v6656_v45 = vunpack.c.h.bf16 %v4223_v32  ;;  %v2438_v32 = vrot.slane %v2087_v8, 2 }
  0xdf   :  { %411 = vst.msk [vmem:[#allocation2 + $0x78] sm:$0xff] %vm395_vm4, %v4669_v27  ;;  %410 = vst.msk [vmem:[#allocation2 + $0x70] sm:$0xff] %vm395_vm4, %v4668_v58  ;;  %v4672_v60 = vpop.permute.xlu0 %4671  ;;  %v773_v27 = vrot.slane %v133_v34, 1  ;;  %v2231_v58 = vsel %vm218_vm0, %v2228_v63, %v2230_v22 }
  0xe0   :  { %v4674_v38 = vunpack.i.h.bf16 %v4672_v60  ;;  %v4673_v59 = vunpack.i.l.bf16 %v4672_v60  ;;  %v4677_v0 = vpop.permute.xlu1 %4676  ;;  %v770_v4 = vrot.slane %v6654_v43, 1  ;;  %v771_v18 = vrot.slane %v6656_v45, 1 }
  0xe1   :  { %v4679_v7 = vunpack.i.h.bf16 %v4677_v0  ;;  %v4678_v35 = vunpack.i.l.bf16 %v4677_v0  ;;  %4961 = vrot.lane.b32.xlu0 %v6282_v14, %s5812_s15  ;;  %v1446_v39 = vld [vmem:[#allocation2 + $0x40] sm:$0xff]  ;;  %v1447_v28 = vld [vmem:[#allocation2 + $0x48] sm:$0xff]  ;;  %v2436_v0 = vrot.slane %v4191_v1, 2 }
  0xe2   :  { %619 = vst.msk [vmem:[#allocation2 + $0x68] sm:$0xff] %vm605_vm5, %v4674_v38  ;;  %618 = vst.msk [vmem:[#allocation2 + $0x60] sm:$0xff] %vm605_vm5, %v4673_v59  ;;  %4966 = vrot.lane.b32.xlu1 %v6315_v24, %s5812_s15  ;;  %v1474_v6 = vpack.c.bf16 %v1447_v28, %v1446_v39  ;;  %v6696_v38 = vpack.i.bf16 %v2231_v58, %v2229_v11  ;;  %v2435_v59 = vrot.slane %v4190_v54, 2 }
  0xe3   :  { %620 = vst.msk [vmem:[#allocation2 + $0x70] sm:$0xff] %vm605_vm5, %v4678_v35  ;;  %621 = vst.msk [vmem:[#allocation2 + $0x78] sm:$0xff] %vm605_vm5, %v4679_v7  ;;  %v4682_v42 = vpop.permute.xlu0 %4681  ;;  %v6700_v28 = vpack.i.bf16 %v6656_v45, %v6654_v43  ;;  %v774_v57 = vsel %vm218_vm0, %v771_v18, %v773_v27 }
  0xe4   :  { %v4684_v48 = vunpack.i.h.bf16 %v4682_v42  ;;  %v4683_v50 = vunpack.i.l.bf16 %v4682_v42  ;;  %v4687_v51 = vpop.permute.xlu1 %4686  ;;  %4303 = vmatprep.mubr.msk.bf16.mxu0 %vm1506_vm12, %v1474_v6  ;;  %2135 = vst.msk [vmem:[#allocation2 + $0x40] sm:$0xff] %vm137_vm2, %v4190_v54  ;;  %2136 = vst.msk [vmem:[#allocation2 + $0x48] sm:$0xff] %vm137_vm2, %v4191_v1  ;;  %v772_v6 = vsel %vm218_vm0, %v770_v4, %v771_v18  ;;  %v80_v42 = vld [vmem:[%s8101_s0 + $0xcc] sm:$0xff]   ;;  %v907_v54 = vrot.slane %v133_v34, 2 }
  0xe5   :  { %v4689_v5 = vunpack.i.h.bf16 %v4687_v51  ;;  %v4688_v13 = vunpack.i.l.bf16 %v4687_v51  ;;  %4971 = vrot.lane.b32.xlu0 %v6291_v40, %s5813_s22  ;;  %v1448_v15 = vld [vmem:[#allocation2 + $0x50] sm:$0xff]  ;;  %v1449_v16 = vld [vmem:[#allocation2 + $0x58] sm:$0xff]  ;;  %v905_v51 = vrot.slane %v6656_v45, 2  ;;  %v2439_v1 = vsel %vm428_vm1, %v2436_v0, %v2438_v32 }
  0xe6   :  { %749 = vst.msk [vmem:[#allocation2 + $0x60] sm:$0xff] %vm736_vm6, %v4683_v50  ;;  %750 = vst.msk [vmem:[#allocation2 + $0x68] sm:$0xff] %vm736_vm6, %v4684_v48  ;;  %4976 = vrot.lane.b32.xlu1 %v6282_v14, %s5806_s17  ;;  %v1475_v53 = vpack.c.bf16 %v1449_v16, %v1448_v15  ;;  %v2437_v48 = vsel %vm428_vm1, %v2435_v59, %v2436_v0  ;;  %v904_v50 = vrot.slane %v6654_v43, 2  ;;  %v4076_v43 = vld [vmem:[%s8101_s0 + $0x114] sm:$0xff]  }
  0xe7   :  { %751 = vst.msk [vmem:[#allocation2 + $0x70] sm:$0xff] %vm736_vm6, %v4688_v13  ;;  %752 = vst.msk [vmem:[#allocation2 + $0x78] sm:$0xff] %vm736_vm6, %v4689_v5  ;;  %v4692_v55 = vpop.permute.xlu0 %4691  ;;  %v6719_v5 = vunpack.c.l.bf16 %v80_v42  ;;  %v6721_v13 = vunpack.c.h.bf16 %v80_v42  ;;  %v6723_v15 = vpack.i.bf16 %v2439_v1, %v2437_v48  ;;  %v6733_v34 = vunpack.c.l.bf16 %v4076_v43 }
  0xe8   :  { %v4694_v44 = vunpack.i.h.bf16 %v4692_v55  ;;  %v4693_v30 = vunpack.i.l.bf16 %v4692_v55  ;;  %v4697_v14 = vpop.permute.xlu1 %4696  ;;  %4304 = vmatmul.mubr.msk.bf16.gmra.mrb[8].mxu0 %vm1506_vm12, %v1475_v53  ;;  %v6731_v53 = vld [vmem:[%s8101_s0 + $0xd4] sm:$0x1]  ;;  %v6735_v55 = vunpack.c.h.bf16 %v4076_v43  ;;  %v908_v4 = vsel %vm428_vm1, %v905_v51, %v907_v54 }
  0xe9   :  { %v4699_v25 = vunpack.i.h.bf16 %v4697_v14  ;;  %v4698_v12 = vunpack.i.l.bf16 %v4697_v14  ;;  %4981 = vrot.lane.b32.xlu0 %v6325_v33, %s5813_s22  ;;  %v906_v14 = vsel %vm428_vm1, %v904_v50, %v905_v51  ;;  %2137 = vst.msk [vmem:[#allocation2 + $0x50] sm:$0xff] %vm137_vm2, %v6733_v34  ;;  %v1170_v0 = vrot.slane %v6719_v5, 1 }
  0xea   :  { %884 = vst.msk [vmem:[#allocation2 + $0x60] sm:$0xff] %vm871_vm7, %v4693_v30  ;;  %885 = vst.msk [vmem:[#allocation2 + $0x68] sm:$0xff] %vm871_vm7, %v4694_v44  ;;  %4986 = vrot.lane.b32.xlu1 %v6315_v24, %s5806_s17  ;;  %v2090_v44 = vunpack.c.l.bf16 %v4078_v21  ;;  %v6746_v30 = vpack.i.bf16 %v774_v57, %v772_v6  ;;  %v6752_v18 = vpack.i.bf16 %v6735_v55, %v6733_v34  ;;  %v2233_v11 = vrot.slane %v6735_v55, 1 }
  0xeb   :  { %886 = vst.msk [vmem:[#allocation2 + $0x70] sm:$0xff] %vm871_vm7, %v4698_v12  ;;  %887 = vst.msk [vmem:[#allocation2 + $0x78] sm:$0xff] %vm871_vm7, %v4699_v25  ;;  %v4702_v60 = vpop.permute.xlu0 %4701  ;;  %v136_v25 = vunpack.c.l.bf16 %v6731_v53  ;;  %v2232_v12 = vrot.slane %v6733_v34, 1  ;;  %v1171_v32 = vrot.slane %v6721_v13, 1  ;;  %v6772_v6 = vpack.i.bf16 %v908_v4, %v906_v14 }
  0xec   :  { %v4704_v7 = vunpack.i.h.bf16 %v4702_v60  ;;  %v4703_v35 = vunpack.i.l.bf16 %v4702_v60  ;;  %v4707_v39 = vpop.permute.xlu1 %4706  ;;  %2138 = vst.msk [vmem:[#allocation2 + $0x58] sm:$0xff] %vm137_vm2, %v6735_v55  ;;  %v2235_v27 = vrot.slane %v2090_v44, 1  ;;  %v5035_v54 = vpack.i.bf16 %v6721_v13, %v6719_v5 }
  0xed   :  { %v4709_v49 = vunpack.i.h.bf16 %v4707_v39  ;;  %v4708_v31 = vunpack.i.l.bf16 %v4707_v39  ;;  %4991 = vrot.lane.b32.xlu0 %v6291_v40, %s5807_s18  ;;  %v2234_v39 = vsel %vm218_vm0, %v2232_v12, %v2233_v11  ;;  %v1172_v57 = vsel %vm218_vm0, %v1170_v0, %v1171_v32 }
  0xee   :  { %1018 = vst.msk [vmem:[#allocation2 + $0x60] sm:$0xff] %vm1005_vm8, %v4703_v35  ;;  %1019 = vst.msk [vmem:[#allocation2 + $0x68] sm:$0xff] %vm1005_vm8, %v4704_v7  ;;  %4996 = vrot.lane.b32.xlu1 %v6325_v33, %s5807_s18  ;;  %v2236_v42 = vsel %vm218_vm0, %v2233_v11, %v2235_v27  ;;  %v2440_v43 = vrot.slane %v6733_v34, 2  ;;  %v1304_v53 = vrot.slane %v6719_v5, 2  ;;  %v1305_v21 = vrot.slane %v6721_v13, 2 }
  0xef   :  { %1020 = vst.msk [vmem:[#allocation2 + $0x70] sm:$0xff] %vm1005_vm8, %v4708_v31  ;;  %1021 = vst.msk [vmem:[#allocation2 + $0x78] sm:$0xff] %vm1005_vm8, %v4709_v49  ;;  %v4712_v40 = vpop.permute.xlu0 %4711  ;;  %v1173_v31 = vrot.slane %v136_v25, 1 }
  0xf0   :  { %v4714_v45 = vunpack.i.h.bf16 %v4712_v40  ;;  %v4713_v16 = vunpack.i.l.bf16 %v4712_v40  ;;  %v4717_v8 = vpop.permute.xlu1 %4716 }
  0xf1   :  { %v4719_v63 = vunpack.i.h.bf16 %v4717_v8  ;;  %v4718_v22 = vunpack.i.l.bf16 %v4717_v8  ;;  %5001 = vrot.lane.b32.xlu0 %v6304_v36, %s5808_s23 }
  0xf2   :  { %1149 = vst.msk [vmem:[#allocation2 + $0x60] sm:$0xff] %vm1136_vm9, %v4713_v16  ;;  %1150 = vst.msk [vmem:[#allocation2 + $0x68] sm:$0xff] %vm1136_vm9, %v4714_v45  ;;  %5006 = vrot.lane.b32.xlu1 %v6700_v28, %s5808_s23  ;;  %v2441_v45 = vrot.slane %v6735_v55, 2  ;;  %v2443_v16 = vrot.slane %v2090_v44, 2 }
  0xf3   :  { %1151 = vst.msk [vmem:[#allocation2 + $0x70] sm:$0xff] %vm1136_vm9, %v4718_v22  ;;  %1152 = vst.msk [vmem:[#allocation2 + $0x78] sm:$0xff] %vm1136_vm9, %v4719_v63  ;;  %v4722_v36 = vpop.permute.xlu0 %4721  ;;  %v1307_v63 = vrot.slane %v136_v25, 2  ;;  %v1306_v25 = vsel %vm428_vm1, %v1304_v53, %v1305_v21 }
  0xf4   :  { %v4724_v58 = vunpack.i.h.bf16 %v4722_v36  ;;  %v4723_v60 = vunpack.i.l.bf16 %v4722_v36  ;;  %v4727_v59 = vpop.permute.xlu1 %4726  ;;  %v2442_v34 = vsel %vm428_vm1, %v2440_v43, %v2441_v45  ;;  %v2444_v55 = vsel %vm428_vm1, %v2441_v45, %v2443_v16 }
  0xf5   :  { %v4729_v7 = vunpack.i.h.bf16 %v4727_v59  ;;  %v4728_v35 = vunpack.i.l.bf16 %v4727_v59  ;;  %5011 = vrot.lane.b32.xlu0 %v6315_v24, %s5809_s24  ;;  %v6777_v24 = vpack.i.bf16 %v2236_v42, %v2234_v39  ;;  %v6799_v12 = vpack.i.bf16 %v2444_v55, %v2442_v34  ;;  %v4227_v42 = vld [vmem:[%s8101_s0 + $0x120] sm:$0xff]   ;;  %v6840_v34 = vld [vmem:[%s8101_s0 + $0x134] sm:$0x1] }
  0xf6   :  { %1284 = vst.msk [vmem:[#allocation2 + $0x60] sm:$0xff] %vm1271_vm10, %v4723_v60  ;;  %1285 = vst.msk [vmem:[#allocation2 + $0x68] sm:$0xff] %vm1271_vm10, %v4724_v58  ;;  %5016 = vrot.lane.b32.xlu1 %v6746_v30, %s5809_s24  ;;  %v1308_v11 = vsel %vm428_vm1, %v1305_v21, %v1307_v63 }
  0xf7   :  { %1286 = vst.msk [vmem:[#allocation2 + $0x70] sm:$0xff] %vm1271_vm10, %v4728_v35  ;;  %1287 = vst.msk [vmem:[#allocation2 + $0x78] sm:$0xff] %vm1271_vm10, %v4729_v7  ;;  %v4732_v49 = vpop.permute.xlu0 %4731  ;;  %v5055_v35 = vpack.i.bf16 %v1308_v11, %v1306_v25 }
  0xf8   :  { %v4734_v48 = vunpack.i.h.bf16 %v4732_v49  ;;  %v4733_v50 = vunpack.i.l.bf16 %v4732_v49  ;;  %v4737_v51 = vpop.permute.xlu1 %4736 }
  0xf9   :  { %v4739_v1 = vunpack.i.h.bf16 %v4737_v51  ;;  %v4738_v40 = vunpack.i.l.bf16 %v4737_v51  ;;  %5021 = vrot.lane.b32.xlu0 %v6325_v33, %s5810_s29  ;;  %v1174_v33 = vsel %vm218_vm0, %v1171_v32, %v1173_v31  ;;  %v4081_v51 = vld [vmem:[%s8101_s0 + $0x128] sm:$0x1] }
  0xfa   :  { %1418 = vst.msk [vmem:[#allocation2 + $0x60] sm:$0xff] %vm1405_vm11, %v4733_v50  ;;  %1419 = vst.msk [vmem:[#allocation2 + $0x68] sm:$0xff] %vm1405_vm11, %v4734_v48  ;;  %5026 = vrot.lane.b32.xlu1 %v6772_v6, %s5810_s29  ;;  %v5045_v5 = vpack.i.bf16 %v1174_v33, %v1172_v57  ;;  %v4194_v48 = vunpack.c.l.bf16 %v4227_v42  ;;  %v4195_v50 = vunpack.c.h.bf16 %v4227_v42  ;;  %v2093_v43 = vunpack.c.l.bf16 %v4081_v51 }
  0xfb   :  { %413 = vst.msk [vmem:[#allocation2 + $0x88] sm:$0xff] %vm395_vm4, %v4739_v1  ;;  %412 = vst.msk [vmem:[#allocation2 + $0x80] sm:$0xff] %vm395_vm4, %v4738_v40  ;;  %v4742_v8 = vpop.permute.xlu0 %4741 }
  0xfc   :  { %v4744_v22 = vunpack.i.h.bf16 %v4742_v8  ;;  %v4743_v14 = vunpack.i.l.bf16 %v4742_v8  ;;  %v4747_v4 = vpop.permute.xlu1 %4746  ;;  %v6827_v16 = vpack.i.bf16 %v4195_v50, %v4194_v48  ;;  %v2237_v8 = vrot.slane %v4194_v48, 1 }
  0xfd   :  { %v4749_v44 = vunpack.i.h.bf16 %v4747_v4  ;;  %v4748_v36 = vunpack.i.l.bf16 %v4747_v4  ;;  %5031 = vrot.lane.b32.xlu0 %v6700_v28, %s5811_s10  ;;  %v2238_v33 = vrot.slane %v4195_v50, 1  ;;  %v2240_v53 = vrot.slane %v2093_v43, 1  ;;  %v4082_v4 = vld [vmem:[%s8101_s0 + $0x12c] sm:$0xff]  }
  0xfe   :  { %1421 = vst.msk [vmem:[#allocation2 + $0x78] sm:$0xff] %vm1405_vm11, %v4744_v22  ;;  %1420 = vst.msk [vmem:[#allocation2 + $0x70] sm:$0xff] %vm1405_vm11, %v4743_v14  ;;  %5036 = vrot.lane.b32.xlu1 %v5035_v54, %s5811_s10  ;;  %v2445_v14 = vrot.slane %v4194_v48, 2  ;;  %v2446_v25 = vrot.slane %v4195_v50, 2  ;;  %v2448_v11 = vrot.slane %v2093_v43, 2  ;;  %v6856_v41 = vunpack.c.l.bf16 %v4082_v4 }
  0xff   :  { %415 = vst.msk [vmem:[#allocation2 + $0x98] sm:$0xff] %vm395_vm4, %v4749_v44  ;;  %414 = vst.msk [vmem:[#allocation2 + $0x90] sm:$0xff] %vm395_vm4, %v4748_v36  ;;  %v4752_v13 = vpop.permute.xlu0 %4751  ;;  %v2239_v36 = vsel %vm218_vm0, %v2237_v8, %v2238_v33 }
 0x100   :  { %v4754_v27 = vunpack.i.h.bf16 %v4752_v13  ;;  %v4753_v28 = vunpack.i.l.bf16 %v4752_v13  ;;  %v4757_v58 = vpop.permute.xlu1 %4756  ;;  %v2242_v46 = vrot.slane %v6856_v41, 1 }
 0x101   :  { %v4759_v60 = vunpack.i.h.bf16 %v4757_v58  ;;  %v4758_v59 = vunpack.i.l.bf16 %v4757_v58  ;;  %5041 = vrot.lane.b32.xlu0 %v6746_v30, %s5812_s15  ;;  %v1450_v0 = vld [vmem:[#allocation2 + $0x60] sm:$0xff]  ;;  %v1451_v32 = vld [vmem:[#allocation2 + $0x68] sm:$0xff] }
 0x102   :  { %623 = vst.msk [vmem:[#allocation2 + $0x88] sm:$0xff] %vm605_vm5, %v4754_v27  ;;  %622 = vst.msk [vmem:[#allocation2 + $0x80] sm:$0xff] %vm605_vm5, %v4753_v28  ;;  %5046 = vrot.lane.b32.xlu1 %v5045_v5, %s5812_s15  ;;  %v1476_v7 = vpack.c.bf16 %v1451_v32, %v1450_v0  ;;  %v2241_v5 = vsel %vm218_vm0, %v2238_v33, %v2240_v53  ;;  %v2096_v27 = vunpack.c.l.bf16 %v6840_v34 }
 0x103   :  { %624 = vst.msk [vmem:[#allocation2 + $0x90] sm:$0xff] %vm605_vm5, %v4758_v59  ;;  %625 = vst.msk [vmem:[#allocation2 + $0x98] sm:$0xff] %vm605_vm5, %v4759_v60  ;;  %v4762_v39 = vpop.permute.xlu0 %4761  ;;  %v6852_v13 = vpack.i.bf16 %v2241_v5, %v2239_v36  ;;  %v2447_v59 = vsel %vm428_vm1, %v2445_v14, %v2446_v25  ;;  %v2449_v0 = vsel %vm428_vm1, %v2446_v25, %v2448_v11 }
 0x104   :  { %v4764_v30 = vunpack.i.h.bf16 %v4762_v39  ;;  %v4763_v49 = vunpack.i.l.bf16 %v4762_v39  ;;  %v4767_v31 = vpop.permute.xlu1 %4766  ;;  %4307 = vmatprep.mubr.msk.bf16.mxu0 %vm1506_vm12, %v1476_v7  ;;  %2139 = vst.msk [vmem:[#allocation2 + $0x60] sm:$0xff] %vm137_vm2, %v4194_v48  ;;  %2140 = vst.msk [vmem:[#allocation2 + $0x68] sm:$0xff] %vm137_vm2, %v4195_v50 }
 0x105   :  { %v4769_v54 = vunpack.i.h.bf16 %v4767_v31  ;;  %v4768_v1 = vunpack.i.l.bf16 %v4767_v31  ;;  %5051 = vrot.lane.b32.xlu0 %v6772_v6, %s5813_s22  ;;  %v1452_v40 = vld [vmem:[#allocation2 + $0x70] sm:$0xff]  ;;  %v1453_v57 = vld [vmem:[#allocation2 + $0x78] sm:$0xff] }
 0x106   :  { %753 = vst.msk [vmem:[#allocation2 + $0x80] sm:$0xff] %vm736_vm6, %v4763_v49  ;;  %754 = vst.msk [vmem:[#allocation2 + $0x88] sm:$0xff] %vm736_vm6, %v4764_v30  ;;  %5056 = vrot.lane.b32.xlu1 %v5055_v35, %s5813_s22  ;;  %v1477_v45 = vpack.c.bf16 %v1453_v57, %v1452_v40  ;;  %v6867_v35 = vpack.i.bf16 %v2449_v0, %v2447_v59  ;;  %v4228_v0 = vld [vmem:[%s8101_s0 + $0x138] sm:$0xff]  }
 0x107   :  { %755 = vst.msk [vmem:[#allocation2 + $0x90] sm:$0xff] %vm736_vm6, %v4768_v1  ;;  %756 = vst.msk [vmem:[#allocation2 + $0x98] sm:$0xff] %vm736_vm6, %v4769_v54  ;;  %v4772_v6 = vpop.permute.xlu0 %4771 }
 0x108   :  { %v4774_v21 = vunpack.i.h.bf16 %v4772_v6  ;;  %v4773_v63 = vunpack.i.l.bf16 %v4772_v6  ;;  %v4777_v22 = vpop.permute.xlu1 %4776  ;;  %4308 = vmatmul.mubr.msk.bf16.gmra.mrb[12].mxu0 %vm1506_vm12, %v1477_v45  ;;  %2141 = vst.msk [vmem:[#allocation2 + $0x70] sm:$0xff] %vm137_vm2, %v6856_v41 }
 0x109   :  { %v4779_v55 = vunpack.i.h.bf16 %v4777_v22  ;;  %v4778_v44 = vunpack.i.l.bf16 %v4777_v22  ;;  %5061 = vrot.lane.b32.xlu0 %v5060_v20, %s5806_s17  ;;  %v6858_v20 = vunpack.c.h.bf16 %v4082_v4  ;;  %v2453_v22 = vrot.slane %v2096_v27, 2 }
 0x10a   :  { %888 = vst.msk [vmem:[#allocation2 + $0x80] sm:$0xff] %vm871_vm7, %v4773_v63  ;;  %889 = vst.msk [vmem:[#allocation2 + $0x88] sm:$0xff] %vm871_vm7, %v4774_v21  ;;  %5066 = vrot.lane.b32.xlu1 %v6530_v3, %s5806_s17 }
 0x10b   :  { %890 = vst.msk [vmem:[#allocation2 + $0x90] sm:$0xff] %vm871_vm7, %v4778_v44  ;;  %891 = vst.msk [vmem:[#allocation2 + $0x98] sm:$0xff] %vm871_vm7, %v4779_v55  ;;  %v4782_v2 = vpop.permute.xlu0 %4781  ;;  %v6871_v39 = vpack.i.bf16 %v6858_v20, %v6856_v41  ;;  %v2243_v56 = vrot.slane %v6858_v20, 1  ;;  %v2451_v63 = vrot.slane %v6858_v20, 2 }
 0x10c   :  { %v4784_v28 = vunpack.i.h.bf16 %v4782_v2  ;;  %v4783_v58 = vunpack.i.l.bf16 %v4782_v2  ;;  %v4787_v60 = vpop.permute.xlu1 %4786  ;;  %2142 = vst.msk [vmem:[#allocation2 + $0x78] sm:$0xff] %vm137_vm2, %v6858_v20 }
 0x10d   :  { %v4789_v32 = vunpack.i.h.bf16 %v4787_v60  ;;  %v4788_v7 = vunpack.i.l.bf16 %v4787_v60  ;;  %5071 = vrot.lane.b32.xlu0 %v5070_v17, %s5807_s18  ;;  %v2245_v17 = vrot.slane %v2096_v27, 1  ;;  %v2244_v48 = vsel %vm218_vm0, %v2242_v46, %v2243_v56 }
 0x10e   :  { %1022 = vst.msk [vmem:[#allocation2 + $0x80] sm:$0xff] %vm1005_vm8, %v4783_v58  ;;  %1023 = vst.msk [vmem:[#allocation2 + $0x88] sm:$0xff] %vm1005_vm8, %v4784_v28  ;;  %5076 = vrot.lane.b32.xlu1 %v6545_v47, %s5807_s18  ;;  %v2454_v44 = vsel %vm428_vm1, %v2451_v63, %v2453_v22 }
 0x10f   :  { %1024 = vst.msk [vmem:[#allocation2 + $0x90] sm:$0xff] %vm1005_vm8, %v4788_v7  ;;  %1025 = vst.msk [vmem:[#allocation2 + $0x98] sm:$0xff] %vm1005_vm8, %v4789_v32  ;;  %v4792_v42 = vpop.permute.xlu0 %4791  ;;  %v2246_v50 = vsel %vm218_vm0, %v2243_v56, %v2245_v17  ;;  %v4198_v56 = vunpack.c.l.bf16 %v4228_v0  ;;  %v4199_v17 = vunpack.c.h.bf16 %v4228_v0 }
 0x110   :  { %v4794_v30 = vunpack.i.h.bf16 %v4792_v42  ;;  %v4793_v49 = vunpack.i.l.bf16 %v4792_v42  ;;  %v4797_v31 = vpop.permute.xlu1 %4796  ;;  %v6891_v1 = vpack.i.bf16 %v2246_v50, %v2244_v48  ;;  %v4087_v42 = vld [vmem:[%s8101_s0 + $0x140] sm:$0x1] }
 0x111   :  { %v4799_v51 = vunpack.i.h.bf16 %v4797_v31  ;;  %v4798_v54 = vunpack.i.l.bf16 %v4797_v31  ;;  %5081 = vrot.lane.b32.xlu0 %v5080_v26, %s5808_s23  ;;  %v2099_v50 = vunpack.c.l.bf16 %v4087_v42  ;;  %v2456_v22 = vrot.slane %v4199_v17, 2 }
 0x112   :  { %1153 = vst.msk [vmem:[#allocation2 + $0x80] sm:$0xff] %vm1136_vm9, %v4793_v49  ;;  %1154 = vst.msk [vmem:[#allocation2 + $0x88] sm:$0xff] %vm1136_vm9, %v4794_v30  ;;  %5086 = vrot.lane.b32.xlu1 %v6562_v29, %s5808_s23 }
 0x113   :  { %1155 = vst.msk [vmem:[#allocation2 + $0x90] sm:$0xff] %vm1136_vm9, %v4798_v54  ;;  %1156 = vst.msk [vmem:[#allocation2 + $0x98] sm:$0xff] %vm1136_vm9, %v4799_v51  ;;  %v4802_v40 = vpop.permute.xlu0 %4801  ;;  %v6950_v54 = vpack.i.bf16 %v4199_v17, %v4198_v56 }
 0x114   :  { %v4804_v57 = vunpack.i.h.bf16 %v4802_v40  ;;  %v4803_v43 = vunpack.i.l.bf16 %v4802_v40  ;;  %v4807_v45 = vpop.permute.xlu1 %4806 }
 0x115   :  { %v4809_v6 = vunpack.i.h.bf16 %v4807_v45  ;;  %v4808_v61 = vunpack.i.l.bf16 %v4807_v45  ;;  %5091 = vrot.lane.b32.xlu0 %v6530_v3, %s5809_s24  ;;  %v2450_v3 = vrot.slane %v6856_v41, 2  ;;  %v2250_v45 = vrot.slane %v2099_v50, 1 }
 0x116   :  { %1288 = vst.msk [vmem:[#allocation2 + $0x80] sm:$0xff] %vm1271_vm10, %v4803_v43  ;;  %1289 = vst.msk [vmem:[#allocation2 + $0x88] sm:$0xff] %vm1271_vm10, %v4804_v57  ;;  %5096 = vrot.lane.b32.xlu1 %v6579_v23, %s5809_s24  ;;  %v2247_v57 = vrot.slane %v4198_v56, 1  ;;  %v2248_v43 = vrot.slane %v4199_v17, 1 }
 0x117   :  { %1290 = vst.msk [vmem:[#allocation2 + $0x90] sm:$0xff] %vm1271_vm10, %v4808_v61  ;;  %1291 = vst.msk [vmem:[#allocation2 + $0x98] sm:$0xff] %vm1271_vm10, %v4809_v6  ;;  %v4812_v62 = vpop.permute.xlu0 %4811  ;;  %v2452_v55 = vsel %vm428_vm1, %v2450_v3, %v2451_v63 }
 0x118   :  { %v4814_v26 = vunpack.i.h.bf16 %v4812_v62  ;;  %v4813_v8 = vunpack.i.l.bf16 %v4812_v62  ;;  %v4817_v33 = vpop.permute.xlu1 %4816  ;;  %v6921_v25 = vpack.i.bf16 %v2454_v44, %v2452_v55  ;;  %v2251_v3 = vsel %vm218_vm0, %v2248_v43, %v2250_v45 }
 0x119   :  { %v4819_v53 = vunpack.i.h.bf16 %v4817_v33  ;;  %v4818_v21 = vunpack.i.l.bf16 %v4817_v33  ;;  %5101 = vrot.lane.b32.xlu0 %v6545_v47, %s5810_s29 }
 0x11a   :  { %1422 = vst.msk [vmem:[#allocation2 + $0x80] sm:$0xff] %vm1405_vm11, %v4813_v8  ;;  %1423 = vst.msk [vmem:[#allocation2 + $0x88] sm:$0xff] %vm1405_vm11, %v4814_v26  ;;  %5106 = vrot.lane.b32.xlu1 %v6591_v10, %s5810_s29  ;;  %v4088_v26 = vld [vmem:[%s8101_s0 + $0x144] sm:$0xff]   ;;  %v6963_v8 = vld [vmem:[%s8101_s0 + $0x14c] sm:$0x1] }
 0x11b   :  { %417 = vst.msk [vmem:[#allocation2 + $0xa8] sm:$0xff] %vm395_vm4, %v4819_v53  ;;  %416 = vst.msk [vmem:[#allocation2 + $0xa0] sm:$0xff] %vm395_vm4, %v4818_v21  ;;  %v4822_v14 = vpop.permute.xlu0 %4821  ;;  %v2249_v21 = vsel %vm218_vm0, %v2247_v57, %v2248_v43  ;;  %v2102_v55 = vunpack.c.l.bf16 %v6963_v8 }
 0x11c   :  { %v4824_v4 = vunpack.i.h.bf16 %v4822_v14  ;;  %v4823_v34 = vunpack.i.l.bf16 %v4822_v14  ;;  %v4827_v47 = vpop.permute.xlu1 %4826  ;;  %v6973_v63 = vpack.i.bf16 %v2251_v3, %v2249_v21  ;;  %v2458_v14 = vrot.slane %v2099_v50, 2 }
 0x11d   :  { %v4829_v36 = vunpack.i.h.bf16 %v4827_v47  ;;  %v4828_v5 = vunpack.i.l.bf16 %v4827_v47  ;;  %5111 = vrot.lane.b32.xlu0 %v6562_v29, %s5811_s10  ;;  %v6979_v47 = vunpack.c.h.bf16 %v4088_v26 }
 0x11e   :  { %1425 = vst.msk [vmem:[#allocation2 + $0x98] sm:$0xff] %vm1405_vm11, %v4824_v4  ;;  %1424 = vst.msk [vmem:[#allocation2 + $0x90] sm:$0xff] %vm1405_vm11, %v4823_v34  ;;  %5116 = vrot.lane.b32.xlu1 %v6605_v52, %s5811_s10  ;;  %v6977_v34 = vunpack.c.l.bf16 %v4088_v26 }
 0x11f   :  { %419 = vst.msk [vmem:[#allocation2 + $0xb8] sm:$0xff] %vm395_vm4, %v4829_v36  ;;  %418 = vst.msk [vmem:[#allocation2 + $0xb0] sm:$0xff] %vm395_vm4, %v4828_v5  ;;  %v4832_v11 = vpop.permute.xlu0 %4831 }
 0x120   :  { %v4834_v2 = vunpack.i.h.bf16 %v4832_v11  ;;  %v4833_v41 = vunpack.i.l.bf16 %v4832_v11  ;;  %v4837_v20 = vpop.permute.xlu1 %4836 }
 0x121   :  { %v4839_v27 = vunpack.i.h.bf16 %v4837_v20  ;;  %v4838_v28 = vunpack.i.l.bf16 %v4837_v20  ;;  %v1454_v29 = vld [vmem:[#allocation2 + $0x80] sm:$0xff]  ;;  %v1455_v58 = vld [vmem:[#allocation2 + $0x88] sm:$0xff]  ;;  %5121 = vrot.lane.b32.xlu0 %v6579_v23, %s5812_s15 }
 0x122   :  { %627 = vst.msk [vmem:[#allocation2 + $0xa8] sm:$0xff] %vm605_vm5, %v4834_v2  ;;  %626 = vst.msk [vmem:[#allocation2 + $0xa0] sm:$0xff] %vm605_vm5, %v4833_v41  ;;  %v1478_v60 = vpack.c.bf16 %v1455_v58, %v1454_v29  ;;  %5126 = vrot.lane.b32.xlu1 %v6621_v9, %s5812_s15  ;;  %v2459_v2 = vsel %vm428_vm1, %v2456_v22, %v2458_v14  ;;  %v2253_v29 = vrot.slane %v6979_v47, 1  ;;  %v2255_v58 = vrot.slane %v2102_v55, 1 }
 0x123   :  { %628 = vst.msk [vmem:[#allocation2 + $0xb0] sm:$0xff] %vm605_vm5, %v4838_v28  ;;  %629 = vst.msk [vmem:[#allocation2 + $0xb8] sm:$0xff] %vm605_vm5, %v4839_v27  ;;  %v4842_v59 = vpop.permute.xlu0 %4841  ;;  %v6990_v28 = vpack.i.bf16 %v6979_v47, %v6977_v34 }
 0x124   :  { %v4844_v32 = vunpack.i.h.bf16 %v4842_v59  ;;  %v4843_v7 = vunpack.i.l.bf16 %v4842_v59  ;;  %v4847_v46 = vpop.permute.xlu1 %4846  ;;  %4311 = vmatprep.mubr.msk.bf16.mxu0 %vm1506_vm12, %v1478_v60  ;;  %2143 = vst.msk [vmem:[#allocation2 + $0x80] sm:$0xff] %vm137_vm2, %v4198_v56  ;;  %2144 = vst.msk [vmem:[#allocation2 + $0x88] sm:$0xff] %vm137_vm2, %v4199_v17 }
 0x125   :  { %v4849_v30 = vunpack.i.h.bf16 %v4847_v46  ;;  %v4848_v49 = vunpack.i.l.bf16 %v4847_v46  ;;  %v1456_v31 = vld [vmem:[#allocation2 + $0x90] sm:$0xff]  ;;  %v1457_v48 = vld [vmem:[#allocation2 + $0x98] sm:$0xff]  ;;  %5131 = vrot.lane.b32.xlu0 %v6591_v10, %s5813_s22  ;;  %v2256_v46 = vsel %vm218_vm0, %v2253_v29, %v2255_v58 }
 0x126   :  { %757 = vst.msk [vmem:[#allocation2 + $0xa0] sm:$0xff] %vm736_vm6, %v4843_v7  ;;  %758 = vst.msk [vmem:[#allocation2 + $0xa8] sm:$0xff] %vm736_vm6, %v4844_v32  ;;  %v1479_v51 = vpack.c.bf16 %v1457_v48, %v1456_v31  ;;  %5136 = vrot.lane.b32.xlu1 %v6579_v23, %s5806_s17  ;;  %v2455_v23 = vrot.slane %v4198_v56, 2 }
 0x127   :  { %759 = vst.msk [vmem:[#allocation2 + $0xb0] sm:$0xff] %vm736_vm6, %v4848_v49  ;;  %760 = vst.msk [vmem:[#allocation2 + $0xb8] sm:$0xff] %vm736_vm6, %v4849_v30  ;;  %v4852_v40 = vpop.permute.xlu0 %4851 }
 0x128   :  { %v4854_v6 = vunpack.i.h.bf16 %v4852_v40  ;;  %v4853_v61 = vunpack.i.l.bf16 %v4852_v40  ;;  %v4857_v62 = vpop.permute.xlu1 %4856  ;;  %4312 = vmatmul.mubr.msk.bf16.gmra.mrb[16].mxu0 %vm1506_vm12, %v1479_v51  ;;  %v2457_v11 = vsel %vm428_vm1, %v2455_v23, %v2456_v22  ;;  %2145 = vst.msk [vmem:[#allocation2 + $0x90] sm:$0xff] %vm137_vm2, %v6977_v34  ;;  %2146 = vst.msk [vmem:[#allocation2 + $0x98] sm:$0xff] %vm137_vm2, %v6979_v47 }
 0x129   :  { %v4859_v33 = vunpack.i.h.bf16 %v4857_v62  ;;  %v4858_v53 = vunpack.i.l.bf16 %v4857_v62  ;;  %5141 = vrot.lane.b32.xlu0 %v6635_v37, %s5813_s22  ;;  %v6986_v27 = vpack.i.bf16 %v2459_v2, %v2457_v11  ;;  %v2463_v62 = vrot.slane %v2102_v55, 2  ;;  %v4229_v2 = vld [vmem:[%s8101_s0 + $0x150] sm:$0xff]  }
 0x12a   :  { %892 = vst.msk [vmem:[#allocation2 + $0xa0] sm:$0xff] %vm871_vm7, %v4853_v61  ;;  %893 = vst.msk [vmem:[#allocation2 + $0xa8] sm:$0xff] %vm871_vm7, %v4854_v6  ;;  %5146 = vrot.lane.b32.xlu1 %v6621_v9, %s5806_s17  ;;  %v2461_v61 = vrot.slane %v6979_v47, 2  ;;  %v4203_v58 = vunpack.c.h.bf16 %v4229_v2 }
 0x12b   :  { %894 = vst.msk [vmem:[#allocation2 + $0xb0] sm:$0xff] %vm871_vm7, %v4858_v53  ;;  %895 = vst.msk [vmem:[#allocation2 + $0xb8] sm:$0xff] %vm871_vm7, %v4859_v33  ;;  %v4862_v4 = vpop.permute.xlu0 %4861 }
 0x12c   :  { %v4864_v44 = vunpack.i.h.bf16 %v4862_v4  ;;  %v4863_v36 = vunpack.i.l.bf16 %v4862_v4  ;;  %v4867_v5 = vpop.permute.xlu1 %4866  ;;  %v2464_v53 = vsel %vm428_vm1, %v2461_v61, %v2463_v62  ;;  %v2466_v62 = vrot.slane %v4203_v58, 2 }
 0x12d   :  { %v4869_v41 = vunpack.i.h.bf16 %v4867_v5  ;;  %v4868_v20 = vunpack.i.l.bf16 %v4867_v5  ;;  %5151 = vrot.lane.b32.xlu0 %v6591_v10, %s5807_s18  ;;  %v2252_v10 = vrot.slane %v6977_v34, 1 }
 0x12e   :  { %1026 = vst.msk [vmem:[#allocation2 + $0xa0] sm:$0xff] %vm1005_vm8, %v4863_v36  ;;  %1027 = vst.msk [vmem:[#allocation2 + $0xa8] sm:$0xff] %vm1005_vm8, %v4864_v44  ;;  %5156 = vrot.lane.b32.xlu1 %v6635_v37, %s5807_s18 }
 0x12f   :  { %1028 = vst.msk [vmem:[#allocation2 + $0xb0] sm:$0xff] %vm1005_vm8, %v4868_v20  ;;  %1029 = vst.msk [vmem:[#allocation2 + $0xb8] sm:$0xff] %vm1005_vm8, %v4869_v41  ;;  %v4872_v60 = vpop.permute.xlu0 %4871  ;;  %v2254_v7 = vsel %vm218_vm0, %v2252_v10, %v2253_v29  ;;  %v4202_v29 = vunpack.c.l.bf16 %v4229_v2 }
 0x130   :  { %v4874_v59 = vunpack.i.h.bf16 %v4872_v60  ;;  %v4873_v0 = vunpack.i.l.bf16 %v4872_v60  ;;  %v4877_v32 = vpop.permute.xlu1 %4876  ;;  %v7008_v42 = vpack.i.bf16 %v2256_v46, %v2254_v7  ;;  %v4093_v60 = vld [vmem:[%s8101_s0 + $0x158] sm:$0x1] }
 0x131   :  { %v4879_v56 = vunpack.i.h.bf16 %v4877_v32  ;;  %v4878_v17 = vunpack.i.l.bf16 %v4877_v32  ;;  %5161 = vrot.lane.b32.xlu0 %v6605_v52, %s5808_s23  ;;  %v2105_v46 = vunpack.c.l.bf16 %v4093_v60 }
 0x132   :  { %1157 = vst.msk [vmem:[#allocation2 + $0xa0] sm:$0xff] %vm1136_vm9, %v4873_v0  ;;  %1158 = vst.msk [vmem:[#allocation2 + $0xa8] sm:$0xff] %vm1136_vm9, %v4874_v59  ;;  %5166 = vrot.lane.b32.xlu1 %v6677_v19, %s5808_s23 }
 0x133   :  { %1159 = vst.msk [vmem:[#allocation2 + $0xb0] sm:$0xff] %vm1136_vm9, %v4878_v17  ;;  %1160 = vst.msk [vmem:[#allocation2 + $0xb8] sm:$0xff] %vm1136_vm9, %v4879_v56  ;;  %v4882_v30 = vpop.permute.xlu0 %4881  ;;  %v7067_v17 = vpack.i.bf16 %v4203_v58, %v4202_v29 }
 0x134   :  { %v4884_v49 = vunpack.i.h.bf16 %v4882_v30  ;;  %v4883_v31 = vunpack.i.l.bf16 %v4882_v30  ;;  %v4887_v48 = vpop.permute.xlu1 %4886 }
 0x135   :  { %v4889_v50 = vunpack.i.h.bf16 %v4887_v48  ;;  %v4888_v51 = vunpack.i.l.bf16 %v4887_v48  ;;  %5171 = vrot.lane.b32.xlu0 %v6621_v9, %s5809_s24  ;;  %v2460_v9 = vrot.slane %v6977_v34, 2  ;;  %v2260_v48 = vrot.slane %v2105_v46, 1 }
 0x136   :  { %1292 = vst.msk [vmem:[#allocation2 + $0xa0] sm:$0xff] %vm1271_vm10, %v4883_v31  ;;  %1293 = vst.msk [vmem:[#allocation2 + $0xa8] sm:$0xff] %vm1271_vm10, %v4884_v49  ;;  %5176 = vrot.lane.b32.xlu1 %v6696_v38, %s5809_s24  ;;  %v2257_v49 = vrot.slane %v4202_v29, 1  ;;  %v2258_v31 = vrot.slane %v4203_v58, 1 }
 0x137   :  { %1294 = vst.msk [vmem:[#allocation2 + $0xb0] sm:$0xff] %vm1271_vm10, %v4888_v51  ;;  %1295 = vst.msk [vmem:[#allocation2 + $0xb8] sm:$0xff] %vm1271_vm10, %v4889_v50  ;;  %v4892_v52 = vpop.permute.xlu0 %4891  ;;  %v2462_v33 = vsel %vm428_vm1, %v2460_v9, %v2461_v61 }
 0x138   :  { %v4894_v40 = vunpack.i.h.bf16 %v4892_v52  ;;  %v4893_v57 = vunpack.i.l.bf16 %v4892_v52  ;;  %v4897_v43 = vpop.permute.xlu1 %4896  ;;  %v7038_v22 = vpack.i.bf16 %v2464_v53, %v2462_v33  ;;  %v2261_v9 = vsel %vm218_vm0, %v2258_v31, %v2260_v48 }
 0x139   :  { %v4899_v45 = vunpack.i.h.bf16 %v4897_v43  ;;  %v4898_v6 = vunpack.i.l.bf16 %v4897_v43  ;;  %5181 = vrot.lane.b32.xlu0 %v6635_v37, %s5810_s29 }
 0x13a   :  { %1426 = vst.msk [vmem:[#allocation2 + $0xa0] sm:$0xff] %vm1405_vm11, %v4893_v57  ;;  %1427 = vst.msk [vmem:[#allocation2 + $0xa8] sm:$0xff] %vm1405_vm11, %v4894_v40  ;;  %5186 = vrot.lane.b32.xlu1 %v6723_v15, %s5810_s29  ;;  %v4094_v40 = vld [vmem:[%s8101_s0 + $0x15c] sm:$0xff]   ;;  %v7080_v57 = vld [vmem:[%s8101_s0 + $0x164] sm:$0x1] }
 0x13b   :  { %421 = vst.msk [vmem:[#allocation2 + $0xc8] sm:$0xff] %vm395_vm4, %v4899_v45  ;;  %420 = vst.msk [vmem:[#allocation2 + $0xc0] sm:$0xff] %vm395_vm4, %v4898_v6  ;;  %v4902_v23 = vpop.permute.xlu0 %4901  ;;  %v2259_v6 = vsel %vm218_vm0, %v2257_v49, %v2258_v31  ;;  %v2108_v33 = vunpack.c.l.bf16 %v7080_v57 }
 0x13c   :  { %v4904_v26 = vunpack.i.h.bf16 %v4902_v23  ;;  %v4903_v8 = vunpack.i.l.bf16 %v4902_v23  ;;  %v4907_v37 = vpop.permute.xlu1 %4906  ;;  %v7090_v61 = vpack.i.bf16 %v2261_v9, %v2259_v6  ;;  %v2468_v23 = vrot.slane %v2105_v46, 2 }
 0x13d   :  { %v4909_v21 = vunpack.i.h.bf16 %v4907_v37  ;;  %v4908_v3 = vunpack.i.l.bf16 %v4907_v37  ;;  %5191 = vrot.lane.b32.xlu0 %v6677_v19, %s5811_s10  ;;  %v7096_v37 = vunpack.c.h.bf16 %v4094_v40 }
 0x13e   :  { %1429 = vst.msk [vmem:[#allocation2 + $0xb8] sm:$0xff] %vm1405_vm11, %v4904_v26  ;;  %1428 = vst.msk [vmem:[#allocation2 + $0xb0] sm:$0xff] %vm1405_vm11, %v4903_v8  ;;  %5196 = vrot.lane.b32.xlu1 %v6752_v18, %s5811_s10  ;;  %v7094_v8 = vunpack.c.l.bf16 %v4094_v40 }
 0x13f   :  { %423 = vst.msk [vmem:[#allocation2 + $0xd8] sm:$0xff] %vm395_vm4, %v4909_v21  ;;  %422 = vst.msk [vmem:[#allocation2 + $0xd0] sm:$0xff] %vm395_vm4, %v4908_v3  ;;  %v4912_v14 = vpop.permute.xlu0 %4911 }
 0x140   :  { %v4914_v4 = vunpack.i.h.bf16 %v4912_v14  ;;  %v4913_v34 = vunpack.i.l.bf16 %v4912_v14  ;;  %v4917_v47 = vpop.permute.xlu1 %4916 }
 0x141   :  { %v4919_v55 = vunpack.i.h.bf16 %v4917_v47  ;;  %v4918_v44 = vunpack.i.l.bf16 %v4917_v47  ;;  %v1458_v19 = vld [vmem:[#allocation2 + $0xa0] sm:$0xff]  ;;  %v1459_v36 = vld [vmem:[#allocation2 + $0xa8] sm:$0xff]  ;;  %5201 = vrot.lane.b32.xlu0 %v6696_v38, %s5812_s15 }
 0x142   :  { %631 = vst.msk [vmem:[#allocation2 + $0xc8] sm:$0xff] %vm605_vm5, %v4914_v4  ;;  %630 = vst.msk [vmem:[#allocation2 + $0xc0] sm:$0xff] %vm605_vm5, %v4913_v34  ;;  %v1480_v5 = vpack.c.bf16 %v1459_v36, %v1458_v19  ;;  %5206 = vrot.lane.b32.xlu1 %v6777_v24, %s5812_s15  ;;  %v2469_v4 = vsel %vm428_vm1, %v2466_v62, %v2468_v23  ;;  %v2263_v19 = vrot.slane %v7096_v37, 1  ;;  %v2265_v36 = vrot.slane %v2108_v33, 1 }
 0x143   :  { %632 = vst.msk [vmem:[#allocation2 + $0xd0] sm:$0xff] %vm605_vm5, %v4918_v44  ;;  %633 = vst.msk [vmem:[#allocation2 + $0xd8] sm:$0xff] %vm605_vm5, %v4919_v55  ;;  %v4922_v11 = vpop.permute.xlu0 %4921  ;;  %v7107_v44 = vpack.i.bf16 %v7096_v37, %v7094_v8 }
 0x144   :  { %v4924_v41 = vunpack.i.h.bf16 %v4922_v11  ;;  %v4923_v20 = vunpack.i.l.bf16 %v4922_v11  ;;  %v4927_v10 = vpop.permute.xlu1 %4926  ;;  %4315 = vmatprep.mubr.msk.bf16.mxu0 %vm1506_vm12, %v1480_v5  ;;  %2147 = vst.msk [vmem:[#allocation2 + $0xa0] sm:$0xff] %vm137_vm2, %v4202_v29  ;;  %2148 = vst.msk [vmem:[#allocation2 + $0xa8] sm:$0xff] %vm137_vm2, %v4203_v58 }
 0x145   :  { %v4929_v59 = vunpack.i.h.bf16 %v4927_v10  ;;  %v4928_v0 = vunpack.i.l.bf16 %v4927_v10  ;;  %v1460_v32 = vld [vmem:[#allocation2 + $0xb0] sm:$0xff]  ;;  %v1461_v7 = vld [vmem:[#allocation2 + $0xb8] sm:$0xff]  ;;  %5211 = vrot.lane.b32.xlu0 %v6723_v15, %s5813_s22  ;;  %v2266_v10 = vsel %vm218_vm0, %v2263_v19, %v2265_v36 }
 0x146   :  { %761 = vst.msk [vmem:[#allocation2 + $0xc0] sm:$0xff] %vm736_vm6, %v4923_v20  ;;  %762 = vst.msk [vmem:[#allocation2 + $0xc8] sm:$0xff] %vm736_vm6, %v4924_v41  ;;  %v1481_v56 = vpack.c.bf16 %v1461_v7, %v1460_v32  ;;  %5216 = vrot.lane.b32.xlu1 %v6696_v38, %s5806_s17  ;;  %v2465_v38 = vrot.slane %v4202_v29, 2 }
 0x147   :  { %763 = vst.msk [vmem:[#allocation2 + $0xd0] sm:$0xff] %vm736_vm6, %v4928_v0  ;;  %764 = vst.msk [vmem:[#allocation2 + $0xd8] sm:$0xff] %vm736_vm6, %v4929_v59  ;;  %v4932_v30 = vpop.permute.xlu0 %4931 }
 0x148   :  { %v4934_v50 = vunpack.i.h.bf16 %v4932_v30  ;;  %v4933_v51 = vunpack.i.l.bf16 %v4932_v30  ;;  %v4937_v52 = vpop.permute.xlu1 %4936  ;;  %4316 = vmatmul.mubr.msk.bf16.gmra.mrb[20].mxu0 %vm1506_vm12, %v1481_v56  ;;  %v2467_v14 = vsel %vm428_vm1, %v2465_v38, %v2466_v62  ;;  %2149 = vst.msk [vmem:[#allocation2 + $0xb0] sm:$0xff] %vm137_vm2, %v7094_v8  ;;  %2150 = vst.msk [vmem:[#allocation2 + $0xb8] sm:$0xff] %vm137_vm2, %v7096_v37 }
 0x149   :  { %v4939_v43 = vunpack.i.h.bf16 %v4937_v52  ;;  %v4938_v45 = vunpack.i.l.bf16 %v4937_v52  ;;  %5221 = vrot.lane.b32.xlu0 %v6799_v12, %s5813_s22  ;;  %v7103_v55 = vpack.i.bf16 %v2469_v4, %v2467_v14  ;;  %v2473_v52 = vrot.slane %v2108_v33, 2  ;;  %v4230_v4 = vld [vmem:[%s8101_s0 + $0x168] sm:$0xff]  }
 0x14a   :  { %896 = vst.msk [vmem:[#allocation2 + $0xc0] sm:$0xff] %vm871_vm7, %v4933_v51  ;;  %897 = vst.msk [vmem:[#allocation2 + $0xc8] sm:$0xff] %vm871_vm7, %v4934_v50  ;;  %5226 = vrot.lane.b32.xlu1 %v6777_v24, %s5806_s17  ;;  %v2471_v51 = vrot.slane %v7096_v37, 2  ;;  %v4207_v36 = vunpack.c.h.bf16 %v4230_v4 }
 0x14b   :  { %898 = vst.msk [vmem:[#allocation2 + $0xd0] sm:$0xff] %vm871_vm7, %v4938_v45  ;;  %899 = vst.msk [vmem:[#allocation2 + $0xd8] sm:$0xff] %vm871_vm7, %v4939_v43  ;;  %v4942_v26 = vpop.permute.xlu0 %4941 }
 0x14c   :  { %v4944_v53 = vunpack.i.h.bf16 %v4942_v26  ;;  %v4943_v21 = vunpack.i.l.bf16 %v4942_v26  ;;  %v4947_v3 = vpop.permute.xlu1 %4946  ;;  %v2474_v45 = vsel %vm428_vm1, %v2471_v51, %v2473_v52  ;;  %v2476_v52 = vrot.slane %v4207_v36, 2 }
 0x14d   :  { %v4949_v34 = vunpack.i.h.bf16 %v4947_v3  ;;  %v4948_v47 = vunpack.i.l.bf16 %v4947_v3  ;;  %5231 = vrot.lane.b32.xlu0 %v6723_v15, %s5807_s18  ;;  %v2262_v15 = vrot.slane %v7094_v8, 1 }
 0x14e   :  { %1030 = vst.msk [vmem:[#allocation2 + $0xc0] sm:$0xff] %vm1005_vm8, %v4943_v21  ;;  %1031 = vst.msk [vmem:[#allocation2 + $0xc8] sm:$0xff] %vm1005_vm8, %v4944_v53  ;;  %5236 = vrot.lane.b32.xlu1 %v6799_v12, %s5807_s18 }
 0x14f   :  { %1032 = vst.msk [vmem:[#allocation2 + $0xd0] sm:$0xff] %vm1005_vm8, %v4948_v47  ;;  %1033 = vst.msk [vmem:[#allocation2 + $0xd8] sm:$0xff] %vm1005_vm8, %v4949_v34  ;;  %v4952_v5 = vpop.permute.xlu0 %4951  ;;  %v2264_v20 = vsel %vm218_vm0, %v2262_v15, %v2263_v19  ;;  %v4206_v19 = vunpack.c.l.bf16 %v4230_v4 }
 0x150   :  { %v4954_v11 = vunpack.i.h.bf16 %v4952_v5  ;;  %v4953_v2 = vunpack.i.l.bf16 %v4952_v5  ;;  %v4957_v41 = vpop.permute.xlu1 %4956  ;;  %v7125_v60 = vpack.i.bf16 %v2266_v10, %v2264_v20  ;;  %v4099_v5 = vld [vmem:[%s8101_s0 + $0x170] sm:$0x1] }
 0x151   :  { %v4959_v29 = vunpack.i.h.bf16 %v4957_v41  ;;  %v4958_v58 = vunpack.i.l.bf16 %v4957_v41  ;;  %5241 = vrot.lane.b32.xlu0 %v6752_v18, %s5808_s23  ;;  %v2111_v10 = vunpack.c.l.bf16 %v4099_v5 }
 0x152   :  { %1161 = vst.msk [vmem:[#allocation2 + $0xc0] sm:$0xff] %vm1136_vm9, %v4953_v2  ;;  %1162 = vst.msk [vmem:[#allocation2 + $0xc8] sm:$0xff] %vm1136_vm9, %v4954_v11  ;;  %5246 = vrot.lane.b32.xlu1 %v6827_v16, %s5808_s23 }
 0x153   :  { %1163 = vst.msk [vmem:[#allocation2 + $0xd0] sm:$0xff] %vm1136_vm9, %v4958_v58  ;;  %1164 = vst.msk [vmem:[#allocation2 + $0xd8] sm:$0xff] %vm1136_vm9, %v4959_v29  ;;  %v4962_v59 = vpop.permute.xlu0 %4961  ;;  %v7184_v58 = vpack.i.bf16 %v4207_v36, %v4206_v19 }
 0x154   :  { %v4964_v0 = vunpack.i.h.bf16 %v4962_v59  ;;  %v4963_v32 = vunpack.i.l.bf16 %v4962_v59  ;;  %v4967_v7 = vpop.permute.xlu1 %4966 }
 0x155   :  { %v4969_v46 = vunpack.i.h.bf16 %v4967_v7  ;;  %v4968_v56 = vunpack.i.l.bf16 %v4967_v7  ;;  %5251 = vrot.lane.b32.xlu0 %v6777_v24, %s5809_s24  ;;  %v2470_v24 = vrot.slane %v7094_v8, 2  ;;  %v2270_v7 = vrot.slane %v2111_v10, 1 }
 0x156   :  { %1296 = vst.msk [vmem:[#allocation2 + $0xc0] sm:$0xff] %vm1271_vm10, %v4963_v32  ;;  %1297 = vst.msk [vmem:[#allocation2 + $0xc8] sm:$0xff] %vm1271_vm10, %v4964_v0  ;;  %5256 = vrot.lane.b32.xlu1 %v6852_v13, %s5809_s24  ;;  %v2267_v0 = vrot.slane %v4206_v19, 1  ;;  %v2268_v32 = vrot.slane %v4207_v36, 1 }
 0x157   :  { %1298 = vst.msk [vmem:[#allocation2 + $0xd0] sm:$0xff] %vm1271_vm10, %v4968_v56  ;;  %1299 = vst.msk [vmem:[#allocation2 + $0xd8] sm:$0xff] %vm1271_vm10, %v4969_v46  ;;  %v4972_v18 = vpop.permute.xlu0 %4971  ;;  %v2472_v43 = vsel %vm428_vm1, %v2470_v24, %v2471_v51 }
 0x158   :  { %v4974_v30 = vunpack.i.h.bf16 %v4972_v18  ;;  %v4973_v49 = vunpack.i.l.bf16 %v4972_v18  ;;  %v4977_v31 = vpop.permute.xlu1 %4976  ;;  %v7155_v62 = vpack.i.bf16 %v2474_v45, %v2472_v43  ;;  %v2271_v24 = vsel %vm218_vm0, %v2268_v32, %v2270_v7 }
 0x159   :  { %v4979_v48 = vunpack.i.h.bf16 %v4977_v31  ;;  %v4978_v50 = vunpack.i.l.bf16 %v4977_v31  ;;  %5261 = vrot.lane.b32.xlu0 %v6799_v12, %s5810_s29 }
 0x15a   :  { %1430 = vst.msk [vmem:[#allocation2 + $0xc0] sm:$0xff] %vm1405_vm11, %v4973_v49  ;;  %1431 = vst.msk [vmem:[#allocation2 + $0xc8] sm:$0xff] %vm1405_vm11, %v4974_v30  ;;  %5266 = vrot.lane.b32.xlu1 %v6867_v35, %s5810_s29  ;;  %v4100_v30 = vld [vmem:[%s8101_s0 + $0x174] sm:$0xff]   ;;  %v7197_v49 = vld [vmem:[%s8101_s0 + $0x17c] sm:$0x1] }
 0x15b   :  { %425 = vst.msk [vmem:[#allocation2 + $0xe8] sm:$0xff] %vm395_vm4, %v4979_v48  ;;  %424 = vst.msk [vmem:[#allocation2 + $0xe0] sm:$0xff] %vm395_vm4, %v4978_v50  ;;  %v4982_v38 = vpop.permute.xlu0 %4981  ;;  %v2269_v50 = vsel %vm218_vm0, %v2267_v0, %v2268_v32  ;;  %v2114_v43 = vunpack.c.l.bf16 %v7197_v49 }
 0x15c   :  { %v4984_v40 = vunpack.i.h.bf16 %v4982_v38  ;;  %v4983_v57 = vunpack.i.l.bf16 %v4982_v38  ;;  %v4987_v12 = vpop.permute.xlu1 %4986  ;;  %v7207_v51 = vpack.i.bf16 %v2271_v24, %v2269_v50  ;;  %v2478_v38 = vrot.slane %v2111_v10, 2 }
 0x15d   :  { %v4989_v6 = vunpack.i.h.bf16 %v4987_v12  ;;  %v4988_v9 = vunpack.i.l.bf16 %v4987_v12  ;;  %5271 = vrot.lane.b32.xlu0 %v6827_v16, %s5811_s10  ;;  %v7213_v12 = vunpack.c.h.bf16 %v4100_v30 }
 0x15e   :  { %1433 = vst.msk [vmem:[#allocation2 + $0xd8] sm:$0xff] %vm1405_vm11, %v4984_v40  ;;  %1432 = vst.msk [vmem:[#allocation2 + $0xd0] sm:$0xff] %vm1405_vm11, %v4983_v57  ;;  %5276 = vrot.lane.b32.xlu1 %v6871_v39, %s5811_s10  ;;  %v7211_v57 = vunpack.c.l.bf16 %v4100_v30 }
 0x15f   :  { %427 = vst.msk [vmem:[#allocation2 + $0xf8] sm:$0xff] %vm395_vm4, %v4989_v6  ;;  %426 = vst.msk [vmem:[#allocation2 + $0xf0] sm:$0xff] %vm395_vm4, %v4988_v9  ;;  %v4992_v23 = vpop.permute.xlu0 %4991 }
 0x160   :  { %v4994_v26 = vunpack.i.h.bf16 %v4992_v23  ;;  %v4993_v8 = vunpack.i.l.bf16 %v4992_v23  ;;  %v4997_v37 = vpop.permute.xlu1 %4996 }
 0x161   :  { %v4999_v33 = vunpack.i.h.bf16 %v4997_v37  ;;  %v4998_v53 = vunpack.i.l.bf16 %v4997_v37  ;;  %v1462_v16 = vld [vmem:[#allocation2 + $0xc0] sm:$0xff]  ;;  %v1463_v21 = vld [vmem:[#allocation2 + $0xc8] sm:$0xff]  ;;  %5281 = vrot.lane.b32.xlu0 %v6852_v13, %s5812_s15 }
 0x162   :  { %635 = vst.msk [vmem:[#allocation2 + $0xe8] sm:$0xff] %vm605_vm5, %v4994_v26  ;;  %634 = vst.msk [vmem:[#allocation2 + $0xe0] sm:$0xff] %vm605_vm5, %v4993_v8  ;;  %v1482_v3 = vpack.c.bf16 %v1463_v21, %v1462_v16  ;;  %5286 = vrot.lane.b32.xlu1 %v6891_v1, %s5812_s15  ;;  %v2479_v26 = vsel %vm428_vm1, %v2476_v52, %v2478_v38  ;;  %v2273_v16 = vrot.slane %v7213_v12, 1  ;;  %v2275_v21 = vrot.slane %v2114_v43, 1 }
 0x163   :  { %636 = vst.msk [vmem:[#allocation2 + $0xf0] sm:$0xff] %vm605_vm5, %v4998_v53  ;;  %637 = vst.msk [vmem:[#allocation2 + $0xf8] sm:$0xff] %vm605_vm5, %v4999_v33  ;;  %v5002_v14 = vpop.permute.xlu0 %5001  ;;  %v7224_v53 = vpack.i.bf16 %v7213_v12, %v7211_v57 }
 0x164   :  { %v5004_v34 = vunpack.i.h.bf16 %v5002_v14  ;;  %v5003_v47 = vunpack.i.l.bf16 %v5002_v14  ;;  %v5007_v15 = vpop.permute.xlu1 %5006  ;;  %4319 = vmatprep.mubr.msk.bf16.mxu0 %vm1506_vm12, %v1482_v3  ;;  %2151 = vst.msk [vmem:[#allocation2 + $0xc0] sm:$0xff] %vm137_vm2, %v4206_v19  ;;  %2152 = vst.msk [vmem:[#allocation2 + $0xc8] sm:$0xff] %vm137_vm2, %v4207_v36 }
 0x165   :  { %v5009_v11 = vunpack.i.h.bf16 %v5007_v15  ;;  %v5008_v2 = vunpack.i.l.bf16 %v5007_v15  ;;  %v1464_v41 = vld [vmem:[#allocation2 + $0xd0] sm:$0xff]  ;;  %v1465_v20 = vld [vmem:[#allocation2 + $0xd8] sm:$0xff]  ;;  %5291 = vrot.lane.b32.xlu0 %v6867_v35, %s5813_s22  ;;  %v2276_v15 = vsel %vm218_vm0, %v2273_v16, %v2275_v21 }
 0x166   :  { %765 = vst.msk [vmem:[#allocation2 + $0xe0] sm:$0xff] %vm736_vm6, %v5003_v47  ;;  %766 = vst.msk [vmem:[#allocation2 + $0xe8] sm:$0xff] %vm736_vm6, %v5004_v34  ;;  %v1483_v29 = vpack.c.bf16 %v1465_v20, %v1464_v41  ;;  %5296 = vrot.lane.b32.xlu1 %v6852_v13, %s5806_s17  ;;  %v2475_v13 = vrot.slane %v4206_v19, 2 }
 0x167   :  { %767 = vst.msk [vmem:[#allocation2 + $0xf0] sm:$0xff] %vm736_vm6, %v5008_v2  ;;  %768 = vst.msk [vmem:[#allocation2 + $0xf8] sm:$0xff] %vm736_vm6, %v5009_v11  ;;  %v5012_v59 = vpop.permute.xlu0 %5011 }
 0x168   :  { %v5014_v46 = vunpack.i.h.bf16 %v5012_v59  ;;  %v5013_v56 = vunpack.i.l.bf16 %v5012_v59  ;;  %v5017_v18 = vpop.permute.xlu1 %5016  ;;  %4320 = vmatmul.mubr.msk.bf16.gmra.mrb[24].mxu0 %vm1506_vm12, %v1483_v29  ;;  %v2477_v23 = vsel %vm428_vm1, %v2475_v13, %v2476_v52  ;;  %2153 = vst.msk [vmem:[#allocation2 + $0xd0] sm:$0xff] %vm137_vm2, %v7211_v57  ;;  %2154 = vst.msk [vmem:[#allocation2 + $0xd8] sm:$0xff] %vm137_vm2, %v7213_v12  ;;  %v2483_v13 = vrot.slane %v2114_v43, 2 }
 0x169   :  { %v5019_v31 = vunpack.i.h.bf16 %v5017_v18  ;;  %v5018_v48 = vunpack.i.l.bf16 %v5017_v18  ;;  %5301 = vrot.lane.b32.xlu0 %v6921_v25, %s5813_s22  ;;  %v7220_v33 = vpack.i.bf16 %v2479_v26, %v2477_v23  ;;  %v2481_v18 = vrot.slane %v7213_v12, 2 }
 0x16a   :  { %900 = vst.msk [vmem:[#allocation2 + $0xe0] sm:$0xff] %vm871_vm7, %v5013_v56  ;;  %901 = vst.msk [vmem:[#allocation2 + $0xe8] sm:$0xff] %vm871_vm7, %v5014_v46  ;;  %5306 = vrot.lane.b32.xlu1 %v6891_v1, %s5806_s17  ;;  %v2480_v56 = vrot.slane %v7211_v57, 2 }
 0x16b   :  { %902 = vst.msk [vmem:[#allocation2 + $0xf0] sm:$0xff] %vm871_vm7, %v5018_v48  ;;  %903 = vst.msk [vmem:[#allocation2 + $0xf8] sm:$0xff] %vm871_vm7, %v5019_v31  ;;  %v5022_v40 = vpop.permute.xlu0 %5021  ;;  %v7277_v31 = vld [vmem:[%s8104_s3] ss:$0 sm:$0xff] }
 0x16c   :  { %v5024_v45 = vunpack.i.h.bf16 %v5022_v40  ;;  %v5023_v6 = vunpack.i.l.bf16 %v5022_v40  ;;  %v5027_v9 = vpop.permute.xlu1 %5026  ;;  %v2482_v38 = vsel %vm428_vm1, %v2480_v56, %v2481_v18  ;;  %v4105_v56 = vld [vmem:[%s8101_s0 + $0x188] sm:$0x1] }
 0x16d   :  { %v5029_v8 = vunpack.i.h.bf16 %v5027_v9  ;;  %v5028_v37 = vunpack.i.l.bf16 %v5027_v9  ;;  %5311 = vrot.lane.b32.xlu0 %v6867_v35, %s5807_s18  ;;  %v2272_v35 = vrot.slane %v7211_v57, 1 }
 0x16e   :  { %1034 = vst.msk [vmem:[#allocation2 + $0xe0] sm:$0xff] %vm1005_vm8, %v5023_v6  ;;  %1035 = vst.msk [vmem:[#allocation2 + $0xe8] sm:$0xff] %vm1005_vm8, %v5024_v45  ;;  %5316 = vrot.lane.b32.xlu1 %v6921_v25, %s5807_s18  ;;  %v2484_v45 = vsel %vm428_vm1, %v2481_v18, %v2483_v13 }
 0x16f   :  { %1036 = vst.msk [vmem:[#allocation2 + $0xf0] sm:$0xff] %vm1005_vm8, %v5028_v37  ;;  %1037 = vst.msk [vmem:[#allocation2 + $0xf8] sm:$0xff] %vm1005_vm8, %v5029_v8  ;;  %v5032_v3 = vpop.permute.xlu0 %5031  ;;  %v2274_v47 = vsel %vm218_vm0, %v2272_v35, %v2273_v16  ;;  %v7289_v23 = vpack.i.bf16 %v2484_v45, %v2482_v38 }
 0x170   :  { %v5034_v14 = vunpack.i.h.bf16 %v5032_v3  ;;  %v5033_v4 = vunpack.i.l.bf16 %v5032_v3  ;;  %v5037_v34 = vpop.permute.xlu1 %5036  ;;  %v7242_v5 = vpack.i.bf16 %v2276_v15, %v2274_v47 }
 0x171   :  { %v5039_v19 = vunpack.i.h.bf16 %v5037_v34  ;;  %v5038_v36 = vunpack.i.l.bf16 %v5037_v34  ;;  %5321 = vrot.lane.b32.xlu0 %v6871_v39, %s5808_s23 }
 0x172   :  { %1165 = vst.msk [vmem:[#allocation2 + $0xe0] sm:$0xff] %vm1136_vm9, %v5033_v4  ;;  %1166 = vst.msk [vmem:[#allocation2 + $0xe8] sm:$0xff] %vm1136_vm9, %v5034_v14  ;;  %5326 = vrot.lane.b32.xlu1 %v6950_v54, %s5808_s23 }
 0x173   :  { %1167 = vst.msk [vmem:[#allocation2 + $0xf0] sm:$0xff] %vm1136_vm9, %v5038_v36  ;;  %1168 = vst.msk [vmem:[#allocation2 + $0xf8] sm:$0xff] %vm1136_vm9, %v5039_v19  ;;  %v5042_v11 = vpop.permute.xlu0 %5041 }
 0x174   :  { %v5044_v2 = vunpack.i.h.bf16 %v5042_v11  ;;  %v5043_v41 = vunpack.i.l.bf16 %v5042_v11  ;;  %v5047_v20 = vpop.permute.xlu1 %5046 }
 0x175   :  { %v5049_v10 = vunpack.i.h.bf16 %v5047_v20  ;;  %v5048_v29 = vunpack.i.l.bf16 %v5047_v20  ;;  %5331 = vrot.lane.b32.xlu0 %v6891_v1, %s5809_s24  ;;  %v7261_v1 = vld [vmem:[%s8103_s2] ss:$0 sm:$0xff] }
 0x176   :  { %1300 = vst.msk [vmem:[#allocation2 + $0xe0] sm:$0xff] %vm1271_vm10, %v5043_v41  ;;  %1301 = vst.msk [vmem:[#allocation2 + $0xe8] sm:$0xff] %vm1271_vm10, %v5044_v2  ;;  %5336 = vrot.lane.b32.xlu1 %v6973_v63, %s5809_s24 }
 0x177   :  { %1302 = vst.msk [vmem:[#allocation2 + $0xf0] sm:$0xff] %vm1271_vm10, %v5048_v29  ;;  %1303 = vst.msk [vmem:[#allocation2 + $0xf8] sm:$0xff] %vm1271_vm10, %v5049_v10  ;;  %v5052_v39 = vpop.permute.xlu0 %5051 }
 0x178   :  { %v5054_v59 = vunpack.i.h.bf16 %v5052_v39  ;;  %v5053_v0 = vunpack.i.l.bf16 %v5052_v39  ;;  %v5057_v32 = vpop.permute.xlu1 %5056  ;;  %v4231_v39 = vld [vmem:[%s8101_s0 + $0x180] sm:$0xff]  }
 0x179   :  { %v5059_v7 = vunpack.i.h.bf16 %v5057_v32  ;;  %v5058_v46 = vunpack.i.l.bf16 %v5057_v32  ;;  %5341 = vrot.lane.b32.xlu0 %v6921_v25, %s5810_s29 }
 0x17a   :  { %1434 = vst.msk [vmem:[#allocation2 + $0xe0] sm:$0xff] %vm1405_vm11, %v5053_v0  ;;  %1435 = vst.msk [vmem:[#allocation2 + $0xe8] sm:$0xff] %vm1405_vm11, %v5054_v59  ;;  %5346 = vrot.lane.b32.xlu1 %v6986_v27, %s5810_s29 }
 0x17b   :  { %1436 = vst.msk [vmem:[#allocation2 + $0xf0] sm:$0xff] %vm1405_vm11, %v5058_v46  ;;  %1437 = vst.msk [vmem:[#allocation2 + $0xf8] sm:$0xff] %vm1405_vm11, %v5059_v7  ;;  %v4297_v30 = vpop.f32.mrb[0].mxu0  ;;  %v5062_v49 = vpop.permute.xlu0 %5061  ;;  %v4210_v7 = vunpack.c.l.bf16 %v4231_v39  ;;  %v4211_v46 = vunpack.c.h.bf16 %v4231_v39 }
 0x17c   :  { %v1729_v25 = vmul.f32 %v4297_v30, %v7261_v1  ;;  %v1593_v48 = vpop.f32.mrb[1].mxu0  ;;  %v5064_v50 = vunpack.i.h.bf16 %v5062_v49  ;;  %v5063_v24 = vunpack.i.l.bf16 %v5062_v49  ;;  %v5067_v52 = vpop.permute.xlu1 %5066 }
 0x17d   :  { %v1727_v40 = vmul.f32 %v7261_v1, %v1593_v48  ;;  %v4298_v57 = vpop.f32.mrb[2].mxu0  ;;  %v5069_v12 = vunpack.i.h.bf16 %v5067_v52  ;;  %v5068_v43 = vunpack.i.l.bf16 %v5067_v52  ;;  %5351 = vrot.lane.b32.xlu0 %v6950_v54, %s5811_s10  ;;  %v2117_v48 = vunpack.c.l.bf16 %v4105_v56 }
 0x17e   :  { %v1730_v6 = vmul.f32 %v4298_v57, %v7261_v1  ;;  %v1596_v9 = vpop.f32.mrb[3].mxu0  ;;  %2383 = vst.msk [vmem:[#allocation2] sm:$0xff] %vm395_vm4, %v5063_v24  ;;  %2384 = vst.msk [vmem:[#allocation2 + $0x8] sm:$0xff] %vm395_vm4, %v5064_v50  ;;  %5356 = vrot.lane.b32.xlu1 %v6990_v28, %s5811_s10  ;;  %v1768_v26 = vadd.f32 %v7277_v31, %v1729_v25  ;;  %v7320_v25 = vpack.i.bf16 %v4211_v46, %v4210_v7 }
 0x17f   :  { %v1766_v8 = vadd.f32 %v7277_v31, %v1727_v40  ;;  %v1728_v54 = vmul.f32 %v7261_v1, %v1596_v9  ;;  %2385 = vst.msk [vmem:[#allocation2 + $0x10] sm:$0xff] %vm395_vm4, %v5068_v43  ;;  %2386 = vst.msk [vmem:[#allocation2 + $0x18] sm:$0xff] %vm395_vm4, %v5069_v12  ;;  %v5072_v37 = vpop.permute.xlu0 %5071  ;;  %v2277_v52 = vrot.slane %v4210_v7, 1  ;;  %v2278_v38 = vrot.slane %v4211_v46, 1 }
 0x180   :  { %v5074_v35 = vunpack.i.h.bf16 %v5072_v37  ;;  %v5073_v16 = vunpack.i.l.bf16 %v5072_v37  ;;  %v5077_v21 = vpop.permute.xlu1 %5076  ;;  %v1769_v15 = vadd.f32 %v7277_v31, %v1730_v6  ;;  %v1800_v2 = vmax.f32 %v1768_v26, 0.0 }
 0x181   :  { %v1767_v3 = vadd.f32 %v7277_v31, %v1728_v54  ;;  %v1466_v14 = vld [vmem:[#allocation2 + $0xe0] sm:$0xff]  ;;  %v1467_v4 = vld [vmem:[#allocation2 + $0xe8] sm:$0xff]  ;;  %v5079_v34 = vunpack.i.h.bf16 %v5077_v21  ;;  %v5078_v47 = vunpack.i.l.bf16 %v5077_v21  ;;  %5361 = vrot.lane.b32.xlu0 %v6973_v63, %s5812_s15  ;;  %v1798_v41 = vmax.f32 %v1766_v8, 0.0 }
 0x182   :  { %v1484_v19 = vpack.c.bf16 %v1467_v4, %v1466_v14  ;;  %v1468_v36 = vld [vmem:[#allocation2 + $0xf0] sm:$0xff]  ;;  %v1469_v11 = vld [vmem:[#allocation2 + $0xf8] sm:$0xff]  ;;  %2591 = vst.msk [vmem:[#allocation2] sm:$0xff] %vm605_vm5, %v5073_v16  ;;  %2592 = vst.msk [vmem:[#allocation2 + $0x8] sm:$0xff] %vm605_vm5, %v5074_v35  ;;  %5366 = vrot.lane.b32.xlu1 %v7008_v42, %s5812_s15  ;;  %v1801_v49 = vmax.f32 %v1769_v15, 0.0  ;;  %v2280_v43 = vrot.slane %v2117_v48, 1  ;;  %v2279_v26 = vsel %vm218_vm0, %v2277_v52, %v2278_v38 }
 0x183   :  { %v1799_v20 = vmax.f32 %v1767_v3, 0.0  ;;  %v1485_v10 = vpack.c.bf16 %v1469_v11, %v1468_v36  ;;  %2593 = vst.msk [vmem:[#allocation2 + $0x10] sm:$0xff] %vm605_vm5, %v5078_v47  ;;  %2594 = vst.msk [vmem:[#allocation2 + $0x18] sm:$0xff] %vm605_vm5, %v5079_v34  ;;  %v5082_v29 = vpop.permute.xlu0 %5081  ;;  %v2485_v54 = vrot.slane %v4210_v7, 2  ;;  %v2486_v37 = vrot.slane %v4211_v46, 2 }
 0x184   :  { %4323 = vmatprep.mubr.msk.bf16.mxu0 %vm1506_vm12, %v1484_v19  ;;  %v5084_v59 = vunpack.i.h.bf16 %v5082_v29  ;;  %v5083_v0 = vunpack.i.l.bf16 %v5082_v29  ;;  %v5087_v32 = vpop.permute.xlu1 %5086  ;;  %2155 = vst.msk [vmem:[#allocation2 + $0xe0] sm:$0xff] %vm137_vm2, %v4210_v7  ;;  %2156 = vst.msk [vmem:[#allocation2 + $0xe8] sm:$0xff] %vm137_vm2, %v4211_v46  ;;  %v2281_v8 = vsel %vm218_vm0, %v2278_v38, %v2280_v43  ;;  %v2488_v35 = vrot.slane %v2117_v48, 2  ;;  %v4108_v4 = vld [vmem:[%s8101_s0 + $0x194] sm:$0x1] }
 0x185   :  { %v1830_v18 = vadd.f32 %v1799_v20, %v1798_v41  ;;  %4324 = vmatmul.mubr.msk.bf16.gmra.mrb[28].mxu0 %vm1506_vm12, %v1485_v10  ;;  %v5089_v13 = vunpack.i.h.bf16 %v5087_v32  ;;  %v5088_v30 = vunpack.i.l.bf16 %v5087_v32  ;;  %5371 = vrot.lane.b32.xlu0 %v6986_v27, %s5813_s22  ;;  %v7341_v21 = vpack.i.bf16 %v2281_v8, %v2279_v26 }
 0x186   :  { %2721 = vst.msk [vmem:[#allocation2] sm:$0xff] %vm736_vm6, %v5083_v0  ;;  %2722 = vst.msk [vmem:[#allocation2 + $0x8] sm:$0xff] %vm736_vm6, %v5084_v59  ;;  %5376 = vrot.lane.b32.xlu1 %v6973_v63, %s5806_s17  ;;  %v4106_v63 = vld [vmem:[%s8101_s0 + $0x18c] sm:$0xff]   ;;  %v2487_v19 = vsel %vm428_vm1, %v2485_v54, %v2486_v37  ;;  %v2489_v36 = vsel %vm428_vm1, %v2486_v37, %v2488_v35 }
 0x187   :  { %v1831_v50 = vadd.f32 %v1830_v18, %v1800_v2  ;;  %2723 = vst.msk [vmem:[#allocation2 + $0x10] sm:$0xff] %vm736_vm6, %v5088_v30  ;;  %2724 = vst.msk [vmem:[#allocation2 + $0x18] sm:$0xff] %vm736_vm6, %v5089_v13  ;;  %v5092_v24 = vpop.permute.xlu0 %5091  ;;  %v7343_v3 = vunpack.c.l.bf16 %v4106_v63  ;;  %v7345_v14 = vunpack.c.h.bf16 %v4106_v63  ;;  %v7354_v41 = vpack.i.bf16 %v2489_v36, %v2487_v19 }
 0x188   :  { %v5094_v40 = vunpack.i.h.bf16 %v5092_v24  ;;  %v5093_v57 = vunpack.i.l.bf16 %v5092_v24  ;;  %v5097_v12 = vpop.permute.xlu1 %5096 }
 0x189   :  { %v7329_v45 = vadd.f32 %v1831_v50, %v1801_v49  ;;  %v5099_v6 = vunpack.i.h.bf16 %v5097_v12  ;;  %v5098_v9 = vunpack.i.l.bf16 %v5097_v12  ;;  %5381 = vrot.lane.b32.xlu0 %v7038_v22, %s5813_s22  ;;  %v7358_v20 = vpack.i.bf16 %v7345_v14, %v7343_v3  ;;  %2157 = vst.msk [vmem:[#allocation2 + $0xf0] sm:$0xff] %vm137_vm2, %v7343_v3  ;;  %2158 = vst.msk [vmem:[#allocation2 + $0xf8] sm:$0xff] %vm137_vm2, %v7345_v14 }
 0x18a   :  { %2855 = vst.msk [vmem:[#allocation2] sm:$0xff] %vm871_vm7, %v5093_v57  ;;  %2856 = vst.msk [vmem:[#allocation2 + $0x8] sm:$0xff] %vm871_vm7, %v5094_v40  ;;  %5386 = vrot.lane.b32.xlu1 %v7008_v42, %s5806_s17  ;;  %v2282_v10 = vrot.slane %v7343_v3, 1  ;;  %v2283_v29 = vrot.slane %v7345_v14, 1  ;;  %vm1996_vm2 = vcmask 0  }
 0x18b   :  { %2857 = vst.msk [vmem:[#allocation2 + $0x10] sm:$0xff] %vm871_vm7, %v5098_v9  ;;  %2858 = vst.msk [vmem:[#allocation2 + $0x18] sm:$0xff] %vm871_vm7, %v5099_v6  ;;  %v5102_v16 = vpop.permute.xlu0 %5101  ;;  %v2491_v6 = vrot.slane %v7345_v14, 2 }
 0x18c   :  { %v5104_v34 = vunpack.i.h.bf16 %v5102_v16  ;;  %v5103_v47 = vunpack.i.l.bf16 %v5102_v16  ;;  %v5107_v15 = vpop.permute.xlu1 %5106  ;;  %v2284_v7 = vsel %vm218_vm0, %v2282_v10, %v2283_v29 }
 0x18d   :  { %v5109_v11 = vunpack.i.h.bf16 %v5107_v15  ;;  %v5108_v2 = vunpack.i.l.bf16 %v5107_v15  ;;  %5391 = vrot.lane.b32.xlu0 %v6986_v27, %s5807_s18  ;;  %v2120_v27 = vunpack.c.l.bf16 %v4108_v4 }
 0x18e   :  { %2988 = vst.msk [vmem:[#allocation2] sm:$0xff] %vm1005_vm8, %v5103_v47  ;;  %2989 = vst.msk [vmem:[#allocation2 + $0x8] sm:$0xff] %vm1005_vm8, %v5104_v34  ;;  %5396 = vrot.lane.b32.xlu1 %v7038_v22, %s5807_s18 }
 0x18f   :  { %2990 = vst.msk [vmem:[#allocation2 + $0x10] sm:$0xff] %vm1005_vm8, %v5108_v2  ;;  %2991 = vst.msk [vmem:[#allocation2 + $0x18] sm:$0xff] %vm1005_vm8, %v5109_v11  ;;  %v5112_v39 = vpop.permute.xlu0 %5111  ;;  %v2285_v46 = vrot.slane %v2120_v27, 1  ;;  %v2493_v9 = vrot.slane %v2120_v27, 2 }
 0x190   :  { %v5114_v59 = vunpack.i.h.bf16 %v5112_v39  ;;  %v5113_v0 = vunpack.i.l.bf16 %v5112_v39  ;;  %v5117_v32 = vpop.permute.xlu1 %5116 }
 0x191   :  { %v5119_v56 = vunpack.i.h.bf16 %v5117_v32  ;;  %v5118_v18 = vunpack.i.l.bf16 %v5117_v32  ;;  %5401 = vrot.lane.b32.xlu0 %v6990_v28, %s5808_s23  ;;  %v2286_v13 = vsel %vm218_vm0, %v2283_v29, %v2285_v46  ;;  %v2494_v15 = vsel %vm428_vm1, %v2491_v6, %v2493_v9 }
 0x192   :  { %3118 = vst.msk [vmem:[#allocation2] sm:$0xff] %vm1136_vm9, %v5113_v0  ;;  %3119 = vst.msk [vmem:[#allocation2 + $0x8] sm:$0xff] %vm1136_vm9, %v5114_v59  ;;  %5406 = vrot.lane.b32.xlu1 %v7067_v17, %s5808_s23  ;;  %v7382_v49 = vpack.i.bf16 %v2286_v13, %v2284_v7 }
 0x193   :  { %3120 = vst.msk [vmem:[#allocation2 + $0x10] sm:$0xff] %vm1136_vm9, %v5118_v18  ;;  %3121 = vst.msk [vmem:[#allocation2 + $0x18] sm:$0xff] %vm1136_vm9, %v5119_v56  ;;  %v5122_v30 = vpop.permute.xlu0 %5121 }
 0x194   :  { %v5124_v48 = vunpack.i.h.bf16 %v5122_v30  ;;  %v5123_v50 = vunpack.i.l.bf16 %v5122_v30  ;;  %v5127_v24 = vpop.permute.xlu1 %5126 }
 0x195   :  { %v5129_v28 = vunpack.i.h.bf16 %v5127_v24  ;;  %v5128_v52 = vunpack.i.l.bf16 %v5127_v24  ;;  %5411 = vrot.lane.b32.xlu0 %v7008_v42, %s5809_s24  ;;  %v2490_v42 = vrot.slane %v7343_v3, 2 }
 0x196   :  { %3252 = vst.msk [vmem:[#allocation2] sm:$0xff] %vm1271_vm10, %v5123_v50  ;;  %3253 = vst.msk [vmem:[#allocation2 + $0x8] sm:$0xff] %vm1271_vm10, %v5124_v48  ;;  %5416 = vrot.lane.b32.xlu1 %v7090_v61, %s5809_s24 }
 0x197   :  { %3254 = vst.msk [vmem:[#allocation2 + $0x10] sm:$0xff] %vm1271_vm10, %v5128_v52  ;;  %3255 = vst.msk [vmem:[#allocation2 + $0x18] sm:$0xff] %vm1271_vm10, %v5129_v28  ;;  %v5132_v38 = vpop.permute.xlu0 %5131  ;;  %v2492_v4 = vsel %vm428_vm1, %v2490_v42, %v2491_v6 }
 0x198   :  { %v5134_v40 = vunpack.i.h.bf16 %v5132_v38  ;;  %v5133_v57 = vunpack.i.l.bf16 %v5132_v38  ;;  %v5137_v12 = vpop.permute.xlu1 %5136  ;;  %v7412_v36 = vpack.i.bf16 %v2494_v15, %v2492_v4 }
 0x199   :  { %v5139_v43 = vunpack.i.h.bf16 %v5137_v12  ;;  %v5138_v63 = vunpack.i.l.bf16 %v5137_v12  ;;  %5421 = vrot.lane.b32.xlu0 %v7038_v22, %s5810_s29 }
 0x19a   :  { %3385 = vst.msk [vmem:[#allocation2] sm:$0xff] %vm1405_vm11, %v5133_v57  ;;  %3386 = vst.msk [vmem:[#allocation2 + $0x8] sm:$0xff] %vm1405_vm11, %v5134_v40  ;;  %5426 = vrot.lane.b32.xlu1 %v7103_v55, %s5810_s29 }
 0x19b   :  { %v4301_v26 = vpop.f32.mrb[4].mxu0  ;;  %2387 = vst.msk [vmem:[#allocation2 + $0x20] sm:$0xff] %vm395_vm4, %v5138_v63  ;;  %2388 = vst.msk [vmem:[#allocation2 + $0x28] sm:$0xff] %vm395_vm4, %v5139_v43  ;;  %v5142_v8 = vpop.permute.xlu0 %5141 }
 0x19c   :  { %v1733_v22 = vmul.f32 %v4301_v26, %v7261_v1  ;;  %v1609_v54 = vpop.f32.mrb[5].mxu0  ;;  %v5144_v37 = vunpack.i.h.bf16 %v5142_v8  ;;  %v5143_v35 = vunpack.i.l.bf16 %v5142_v8  ;;  %v5147_v16 = vpop.permute.xlu1 %5146 }
 0x19d   :  { %v1731_v34 = vmul.f32 %v7261_v1, %v1609_v54  ;;  %v4302_v3 = vpop.f32.mrb[6].mxu0  ;;  %v5149_v47 = vunpack.i.h.bf16 %v5147_v16  ;;  %v5148_v14 = vunpack.i.l.bf16 %v5147_v16  ;;  %5431 = vrot.lane.b32.xlu0 %v7067_v17, %s5811_s10 }
 0x19e   :  { %v1612_v19 = vpop.f32.mrb[7].mxu0  ;;  %3387 = vst.msk [vmem:[#allocation2 + $0x10] sm:$0xff] %vm1405_vm11, %v5143_v35  ;;  %3388 = vst.msk [vmem:[#allocation2 + $0x18] sm:$0xff] %vm1405_vm11, %v5144_v37  ;;  %5436 = vrot.lane.b32.xlu1 %v7107_v44, %s5811_s10  ;;  %v1734_v2 = vmul.f32 %v4302_v3, %v7261_v1  ;;  %v1772_v10 = vadd.f32 %v7277_v31, %v1733_v22 }
 0x19f   :  { %v1770_v11 = vadd.f32 %v7277_v31, %v1731_v34  ;;  %v1732_v27 = vmul.f32 %v7261_v1, %v1612_v19  ;;  %2389 = vst.msk [vmem:[#allocation2 + $0x30] sm:$0xff] %vm395_vm4, %v5148_v14  ;;  %2390 = vst.msk [vmem:[#allocation2 + $0x38] sm:$0xff] %vm395_vm4, %v5149_v47  ;;  %v5152_v17 = vpop.permute.xlu0 %5151 }
 0x1a0   :  { %v5154_v29 = vunpack.i.h.bf16 %v5152_v17  ;;  %v5153_v39 = vunpack.i.l.bf16 %v5152_v17  ;;  %v5157_v59 = vpop.permute.xlu1 %5156  ;;  %v1773_v18 = vadd.f32 %v7277_v31, %v1734_v2  ;;  %v1804_v48 = vmax.f32 %v1772_v10, 0.0 }
 0x1a1   :  { %v1802_v0 = vmax.f32 %v1770_v11, 0.0  ;;  %v1771_v32 = vadd.f32 %v7277_v31, %v1732_v27  ;;  %v5159_v7 = vunpack.i.h.bf16 %v5157_v59  ;;  %v5158_v46 = vunpack.i.l.bf16 %v5157_v59  ;;  %5441 = vrot.lane.b32.xlu0 %v7090_v61, %s5812_s15 }
 0x1a2   :  { %2595 = vst.msk [vmem:[#allocation2 + $0x20] sm:$0xff] %vm605_vm5, %v5153_v39  ;;  %2596 = vst.msk [vmem:[#allocation2 + $0x28] sm:$0xff] %vm605_vm5, %v5154_v29  ;;  %5446 = vrot.lane.b32.xlu1 %v7125_v60, %s5812_s15 }
 0x1a3   :  { %v1833_v56 = vadd.f32 %v7329_v45, %v1802_v0  ;;  %v1803_v13 = vmax.f32 %v1771_v32, 0.0  ;;  %2597 = vst.msk [vmem:[#allocation2 + $0x30] sm:$0xff] %vm605_vm5, %v5158_v46  ;;  %2598 = vst.msk [vmem:[#allocation2 + $0x38] sm:$0xff] %vm605_vm5, %v5159_v7  ;;  %v5162_v30 = vpop.permute.xlu0 %5161  ;;  %v1805_v45 = vmax.f32 %v1773_v18, 0.0 }
 0x1a4   :  { %v5164_v50 = vunpack.i.h.bf16 %v5162_v30  ;;  %v5163_v24 = vunpack.i.l.bf16 %v5162_v30  ;;  %v5167_v28 = vpop.permute.xlu1 %5166 }
 0x1a5   :  { %v1834_v52 = vadd.f32 %v1833_v56, %v1803_v13  ;;  %v5169_v38 = vunpack.i.h.bf16 %v5167_v28  ;;  %v5168_v40 = vunpack.i.l.bf16 %v5167_v28  ;;  %5451 = vrot.lane.b32.xlu0 %v7103_v55, %s5813_s22 }
 0x1a6   :  { %2725 = vst.msk [vmem:[#allocation2 + $0x20] sm:$0xff] %vm736_vm6, %v5163_v24  ;;  %2726 = vst.msk [vmem:[#allocation2 + $0x28] sm:$0xff] %vm736_vm6, %v5164_v50  ;;  %5456 = vrot.lane.b32.xlu1 %v7090_v61, %s5806_s17 }
 0x1a7   :  { %v1835_v57 = vadd.f32 %v1834_v52, %v1804_v48  ;;  %2727 = vst.msk [vmem:[#allocation2 + $0x30] sm:$0xff] %vm736_vm6, %v5168_v40  ;;  %2728 = vst.msk [vmem:[#allocation2 + $0x38] sm:$0xff] %vm736_vm6, %v5169_v38  ;;  %v5172_v12 = vpop.permute.xlu0 %5171 }
 0x1a8   :  { %v5174_v43 = vunpack.i.h.bf16 %v5172_v12  ;;  %v5173_v63 = vunpack.i.l.bf16 %v5172_v12  ;;  %v5177_v42 = vpop.permute.xlu1 %5176 }
 0x1a9   :  { %v7439_v6 = vadd.f32 %v1835_v57, %v1805_v45  ;;  %v5179_v9 = vunpack.i.h.bf16 %v5177_v42  ;;  %v5178_v26 = vunpack.i.l.bf16 %v5177_v42  ;;  %5461 = vrot.lane.b32.xlu0 %v7155_v62, %s5813_s22 }
 0x1aa   :  { %2859 = vst.msk [vmem:[#allocation2 + $0x20] sm:$0xff] %vm871_vm7, %v5173_v63  ;;  %2860 = vst.msk [vmem:[#allocation2 + $0x28] sm:$0xff] %vm871_vm7, %v5174_v43  ;;  %5466 = vrot.lane.b32.xlu1 %v7125_v60, %s5806_s17 }
 0x1ab   :  { %2861 = vst.msk [vmem:[#allocation2 + $0x30] sm:$0xff] %vm871_vm7, %v5178_v26  ;;  %2862 = vst.msk [vmem:[#allocation2 + $0x38] sm:$0xff] %vm871_vm7, %v5179_v9  ;;  %v5182_v61 = vpop.permute.xlu0 %5181 }
 0x1ac   :  { %v5184_v8 = vunpack.i.h.bf16 %v5182_v61  ;;  %v5183_v22 = vunpack.i.l.bf16 %v5182_v61  ;;  %v5187_v54 = vpop.permute.xlu1 %5186 }
 0x1ad   :  { %v5189_v37 = vunpack.i.h.bf16 %v5187_v54  ;;  %v5188_v35 = vunpack.i.l.bf16 %v5187_v54  ;;  %5471 = vrot.lane.b32.xlu0 %v7103_v55, %s5807_s18 }
 0x1ae   :  { %2992 = vst.msk [vmem:[#allocation2 + $0x20] sm:$0xff] %vm1005_vm8, %v5183_v22  ;;  %2993 = vst.msk [vmem:[#allocation2 + $0x28] sm:$0xff] %vm1005_vm8, %v5184_v8  ;;  %5476 = vrot.lane.b32.xlu1 %v7155_v62, %s5807_s18 }
 0x1af   :  { %2994 = vst.msk [vmem:[#allocation2 + $0x30] sm:$0xff] %vm1005_vm8, %v5188_v35  ;;  %2995 = vst.msk [vmem:[#allocation2 + $0x38] sm:$0xff] %vm1005_vm8, %v5189_v37  ;;  %v5192_v16 = vpop.permute.xlu0 %5191 }
 0x1b0   :  { %v5194_v4 = vunpack.i.h.bf16 %v5192_v16  ;;  %v5193_v34 = vunpack.i.l.bf16 %v5192_v16  ;;  %v5197_v3 = vpop.permute.xlu1 %5196 }
 0x1b1   :  { %v5199_v47 = vunpack.i.h.bf16 %v5197_v3  ;;  %v5198_v14 = vunpack.i.l.bf16 %v5197_v3  ;;  %5481 = vrot.lane.b32.xlu0 %v7107_v44, %s5808_s23 }
 0x1b2   :  { %3122 = vst.msk [vmem:[#allocation2 + $0x20] sm:$0xff] %vm1136_vm9, %v5193_v34  ;;  %3123 = vst.msk [vmem:[#allocation2 + $0x28] sm:$0xff] %vm1136_vm9, %v5194_v4  ;;  %5486 = vrot.lane.b32.xlu1 %v7184_v58, %s5808_s23 }
 0x1b3   :  { %3124 = vst.msk [vmem:[#allocation2 + $0x30] sm:$0xff] %vm1136_vm9, %v5198_v14  ;;  %3125 = vst.msk [vmem:[#allocation2 + $0x38] sm:$0xff] %vm1136_vm9, %v5199_v47  ;;  %v5202_v55 = vpop.permute.xlu0 %5201 }
 0x1b4   :  { %v5204_v15 = vunpack.i.h.bf16 %v5202_v55  ;;  %v5203_v19 = vunpack.i.l.bf16 %v5202_v55  ;;  %v5207_v11 = vpop.permute.xlu1 %5206 }
 0x1b5   :  { %v5209_v2 = vunpack.i.h.bf16 %v5207_v11  ;;  %v5208_v27 = vunpack.i.l.bf16 %v5207_v11  ;;  %5491 = vrot.lane.b32.xlu0 %v7125_v60, %s5809_s24 }
 0x1b6   :  { %3256 = vst.msk [vmem:[#allocation2 + $0x20] sm:$0xff] %vm1271_vm10, %v5203_v19  ;;  %3257 = vst.msk [vmem:[#allocation2 + $0x28] sm:$0xff] %vm1271_vm10, %v5204_v15  ;;  %5496 = vrot.lane.b32.xlu1 %v7207_v51, %s5809_s24  ;;  %v5814_v19 = vmov 0.0  }
 0x1b7   :  { %3258 = vst.msk [vmem:[#allocation2 + $0x30] sm:$0xff] %vm1271_vm10, %v5208_v27  ;;  %3259 = vst.msk [vmem:[#allocation2 + $0x38] sm:$0xff] %vm1271_vm10, %v5209_v2  ;;  %v5212_v44 = vpop.permute.xlu0 %5211  ;;  %4327 = vmatprep.subr.bf16.mxu1 %v5814_v19  ;;  %4385 = vmatprep.subr.bf16.mxu0 %v5814_v19 }
 0x1b8   :  { %v5214_v17 = vunpack.i.h.bf16 %v5212_v44  ;;  %v5213_v10 = vunpack.i.l.bf16 %v5212_v44  ;;  %v5217_v29 = vpop.permute.xlu1 %5216  ;;  %4343 = vmatprep.mubr.msk.bf16.mxu1 %vm5815_vm13, %v5814_v19  ;;  %4401 = vmatprep.mubr.msk.bf16.mxu0 %vm5815_vm13, %v5814_v19 }
 0x1b9   :  { %v5219_v39 = vunpack.i.h.bf16 %v5217_v29  ;;  %v5218_v59 = vunpack.i.l.bf16 %v5217_v29  ;;  %5501 = vrot.lane.b32.xlu0 %v7155_v62, %s5810_s29 }
 0x1ba   :  { %3389 = vst.msk [vmem:[#allocation2 + $0x20] sm:$0xff] %vm1405_vm11, %v5213_v10  ;;  %3390 = vst.msk [vmem:[#allocation2 + $0x28] sm:$0xff] %vm1405_vm11, %v5214_v17  ;;  %5506 = vrot.lane.b32.xlu1 %v7220_v33, %s5810_s29 }
 0x1bb   :  { %v4305_v60 = vpop.f32.mrb[8].mxu0  ;;  %2391 = vst.msk [vmem:[#allocation2 + $0x40] sm:$0xff] %vm395_vm4, %v5218_v59  ;;  %2392 = vst.msk [vmem:[#allocation2 + $0x48] sm:$0xff] %vm395_vm4, %v5219_v39  ;;  %v5222_v0 = vpop.permute.xlu0 %5221 }
 0x1bc   :  { %v1737_v32 = vmul.f32 %v4305_v60, %v7261_v1  ;;  %v1625_v7 = vpop.f32.mrb[9].mxu0  ;;  %v5224_v46 = vunpack.i.h.bf16 %v5222_v0  ;;  %v5223_v56 = vunpack.i.l.bf16 %v5222_v0  ;;  %v5227_v18 = vpop.permute.xlu1 %5226 }
 0x1bd   :  { %v1735_v62 = vmul.f32 %v7261_v1, %v1625_v7  ;;  %v4306_v13 = vpop.f32.mrb[10].mxu0  ;;  %v5229_v30 = vunpack.i.h.bf16 %v5227_v18  ;;  %v5228_v48 = vunpack.i.l.bf16 %v5227_v18  ;;  %5511 = vrot.lane.b32.xlu0 %v7184_v58, %s5811_s10 }
 0x1be   :  { %v1628_v50 = vpop.f32.mrb[11].mxu0  ;;  %3391 = vst.msk [vmem:[#allocation2 + $0x30] sm:$0xff] %vm1405_vm11, %v5223_v56  ;;  %3392 = vst.msk [vmem:[#allocation2 + $0x38] sm:$0xff] %vm1405_vm11, %v5224_v46  ;;  %5516 = vrot.lane.b32.xlu1 %v7224_v53, %s5811_s10  ;;  %v1738_v28 = vmul.f32 %v4306_v13, %v7261_v1  ;;  %v1776_v58 = vadd.f32 %v7277_v31, %v1737_v32 }
 0x1bf   :  { %v1774_v24 = vadd.f32 %v7277_v31, %v1735_v62  ;;  %v1736_v52 = vmul.f32 %v7261_v1, %v1628_v50  ;;  %2393 = vst.msk [vmem:[#allocation2 + $0x50] sm:$0xff] %vm395_vm4, %v5228_v48  ;;  %2394 = vst.msk [vmem:[#allocation2 + $0x58] sm:$0xff] %vm395_vm4, %v5229_v30  ;;  %v5232_v38 = vpop.permute.xlu0 %5231 }
 0x1c0   :  { %v5234_v40 = vunpack.i.h.bf16 %v5232_v38  ;;  %v5233_v45 = vunpack.i.l.bf16 %v5232_v38  ;;  %v5237_v57 = vpop.permute.xlu1 %5236  ;;  %v1777_v26 = vadd.f32 %v7277_v31, %v1738_v28  ;;  %v1808_v35 = vmax.f32 %v1776_v58, 0.0  ;;  %v5704_v38 = vld [vmem:[%s8105_s4 + $0x8] sm:$0xff]  }
 0x1c1   :  { %v1806_v12 = vmax.f32 %v1774_v24, 0.0  ;;  %v1775_v43 = vadd.f32 %v7277_v31, %v1736_v52  ;;  %v5239_v63 = vunpack.i.h.bf16 %v5237_v57  ;;  %v5238_v42 = vunpack.i.l.bf16 %v5237_v57  ;;  %5521 = vrot.lane.b32.xlu0 %v7207_v51, %s5812_s15 }
 0x1c2   :  { %2599 = vst.msk [vmem:[#allocation2 + $0x40] sm:$0xff] %vm605_vm5, %v5233_v45  ;;  %2600 = vst.msk [vmem:[#allocation2 + $0x48] sm:$0xff] %vm605_vm5, %v5234_v40  ;;  %5526 = vrot.lane.b32.xlu1 %v7242_v5, %s5812_s15 }
 0x1c3   :  { %v1837_v9 = vadd.f32 %v7439_v6, %v1806_v12  ;;  %v1807_v61 = vmax.f32 %v1775_v43, 0.0  ;;  %2601 = vst.msk [vmem:[#allocation2 + $0x50] sm:$0xff] %vm605_vm5, %v5238_v42  ;;  %2602 = vst.msk [vmem:[#allocation2 + $0x58] sm:$0xff] %vm605_vm5, %v5239_v63  ;;  %v5242_v8 = vpop.permute.xlu0 %5241  ;;  %v1809_v6 = vmax.f32 %v1777_v26, 0.0 }
 0x1c4   :  { %v5244_v22 = vunpack.i.h.bf16 %v5242_v8  ;;  %v5243_v54 = vunpack.i.l.bf16 %v5242_v8  ;;  %v5247_v37 = vpop.permute.xlu1 %5246  ;;  %v5705_v8 = vld [vmem:[%s8105_s4 + $0x10] sm:$0xff]  }
 0x1c5   :  { %v1838_v16 = vadd.f32 %v1837_v9, %v1807_v61  ;;  %v5249_v4 = vunpack.i.h.bf16 %v5247_v37  ;;  %v5248_v34 = vunpack.i.l.bf16 %v5247_v37  ;;  %5531 = vrot.lane.b32.xlu0 %v7220_v33, %s5813_s22 }
 0x1c6   :  { %2729 = vst.msk [vmem:[#allocation2 + $0x40] sm:$0xff] %vm736_vm6, %v5243_v54  ;;  %2730 = vst.msk [vmem:[#allocation2 + $0x48] sm:$0xff] %vm736_vm6, %v5244_v22  ;;  %5536 = vrot.lane.b32.xlu1 %v7207_v51, %s5806_s17 }
 0x1c7   :  { %v1839_v3 = vadd.f32 %v1838_v16, %v1808_v35  ;;  %2731 = vst.msk [vmem:[#allocation2 + $0x50] sm:$0xff] %vm736_vm6, %v5248_v34  ;;  %2732 = vst.msk [vmem:[#allocation2 + $0x58] sm:$0xff] %vm736_vm6, %v5249_v4  ;;  %v5252_v47 = vpop.permute.xlu0 %5251 }
 0x1c8   :  { %v5254_v14 = vunpack.i.h.bf16 %v5252_v47  ;;  %v5253_v55 = vunpack.i.l.bf16 %v5252_v47  ;;  %v5257_v15 = vpop.permute.xlu1 %5256 }
 0x1c9   :  { %v7516_v11 = vadd.f32 %v1839_v3, %v1809_v6  ;;  %v5259_v2 = vunpack.i.h.bf16 %v5257_v15  ;;  %v5258_v27 = vunpack.i.l.bf16 %v5257_v15  ;;  %5541 = vrot.lane.b32.xlu0 %v7289_v23, %s5813_s22 }
 0x1ca   :  { %2863 = vst.msk [vmem:[#allocation2 + $0x40] sm:$0xff] %vm871_vm7, %v5253_v55  ;;  %2864 = vst.msk [vmem:[#allocation2 + $0x48] sm:$0xff] %vm871_vm7, %v5254_v14  ;;  %5546 = vrot.lane.b32.xlu1 %v7242_v5, %s5806_s17 }
 0x1cb   :  { %2865 = vst.msk [vmem:[#allocation2 + $0x50] sm:$0xff] %vm871_vm7, %v5258_v27  ;;  %2866 = vst.msk [vmem:[#allocation2 + $0x58] sm:$0xff] %vm871_vm7, %v5259_v2  ;;  %v5262_v51 = vpop.permute.xlu0 %5261 }
 0x1cc   :  { %v5264_v44 = vunpack.i.h.bf16 %v5262_v51  ;;  %v5263_v17 = vunpack.i.l.bf16 %v5262_v51  ;;  %v5267_v10 = vpop.permute.xlu1 %5266  ;;  %v4232_v51 = vld [vmem:[%s8101_s0 + $0x198] sm:$0xff]  }
 0x1cd   :  { %v5269_v29 = vunpack.i.h.bf16 %v5267_v10  ;;  %v5268_v39 = vunpack.i.l.bf16 %v5267_v10  ;;  %5551 = vrot.lane.b32.xlu0 %v7220_v33, %s5807_s18 }
 0x1ce   :  { %2996 = vst.msk [vmem:[#allocation2 + $0x40] sm:$0xff] %vm1005_vm8, %v5263_v17  ;;  %2997 = vst.msk [vmem:[#allocation2 + $0x48] sm:$0xff] %vm1005_vm8, %v5264_v44  ;;  %5556 = vrot.lane.b32.xlu1 %v7289_v23, %s5807_s18 }
 0x1cf   :  { %2998 = vst.msk [vmem:[#allocation2 + $0x50] sm:$0xff] %vm1005_vm8, %v5268_v39  ;;  %2999 = vst.msk [vmem:[#allocation2 + $0x58] sm:$0xff] %vm1005_vm8, %v5269_v29  ;;  %v5272_v59 = vpop.permute.xlu0 %5271  ;;  %v4111_v29 = vld [vmem:[%s8101_s0 + $0x1a0] sm:$0x1] }
 0x1d0   :  { %v5274_v60 = vunpack.i.h.bf16 %v5272_v59  ;;  %v5273_v0 = vunpack.i.l.bf16 %v5272_v59  ;;  %v5277_v32 = vpop.permute.xlu1 %5276 }
 0x1d1   :  { %v5279_v7 = vunpack.i.h.bf16 %v5277_v32  ;;  %v5278_v46 = vunpack.i.l.bf16 %v5277_v32  ;;  %5561 = vrot.lane.b32.xlu0 %v7224_v53, %s5808_s23  ;;  %v5703_v53 = vld [vmem:[%s8105_s4] sm:$0xff]  }
 0x1d2   :  { %3126 = vst.msk [vmem:[#allocation2 + $0x40] sm:$0xff] %vm1136_vm9, %v5273_v0  ;;  %3127 = vst.msk [vmem:[#allocation2 + $0x48] sm:$0xff] %vm1136_vm9, %v5274_v60  ;;  %5566 = vrot.lane.b32.xlu1 %v7320_v25, %s5808_s23  ;;  %4328 = vmatpush3.bf16.msra.mxu1 %v5703_v53  ;;  %v7611_v60 = vunpack.c.l.bf16 %v4232_v51  ;;  %v7613_v0 = vunpack.c.h.bf16 %v4232_v51  ;;  %v5707_v32 = vld [vmem:[%s8105_s4 + $0x20] sm:$0xff]  }
 0x1d3   :  { %3128 = vst.msk [vmem:[#allocation2 + $0x50] sm:$0xff] %vm1136_vm9, %v5278_v46  ;;  %3129 = vst.msk [vmem:[#allocation2 + $0x58] sm:$0xff] %vm1136_vm9, %v5279_v7  ;;  %v5282_v33 = vpop.permute.xlu0 %5281  ;;  %4329 = vmatprep.subr.bf16.mxu1 %v5814_v19 }
 0x1d4   :  { %v5284_v56 = vunpack.i.h.bf16 %v5282_v33  ;;  %v5283_v18 = vunpack.i.l.bf16 %v5282_v33  ;;  %v5287_v62 = vpop.permute.xlu1 %5286 }
 0x1d5   :  { %v5289_v13 = vunpack.i.h.bf16 %v5287_v62  ;;  %v5288_v30 = vunpack.i.l.bf16 %v5287_v62  ;;  %5571 = vrot.lane.b32.xlu0 %v7242_v5, %s5809_s24 }
 0x1d6   :  { %3260 = vst.msk [vmem:[#allocation2 + $0x40] sm:$0xff] %vm1271_vm10, %v5283_v18  ;;  %3261 = vst.msk [vmem:[#allocation2 + $0x48] sm:$0xff] %vm1271_vm10, %v5284_v56  ;;  %5576 = vrot.lane.b32.xlu1 %v7341_v21, %s5809_s24  ;;  %4330 = vmatpush3.bf16.msra.mxu1 %v5704_v38  ;;  %v2123_v56 = vunpack.c.l.bf16 %v4111_v29 }
 0x1d7   :  { %3262 = vst.msk [vmem:[#allocation2 + $0x50] sm:$0xff] %vm1271_vm10, %v5288_v30  ;;  %3263 = vst.msk [vmem:[#allocation2 + $0x58] sm:$0xff] %vm1271_vm10, %v5289_v13  ;;  %v5292_v48 = vpop.permute.xlu0 %5291  ;;  %4331 = vmatprep.subr.bf16.mxu1 %v5814_v19  ;;  %v5708_v13 = vld [vmem:[%s8105_s4 + $0x28] sm:$0xff]  }
 0x1d8   :  { %v5294_v50 = vunpack.i.h.bf16 %v5292_v48  ;;  %v5293_v24 = vunpack.i.l.bf16 %v5292_v48  ;;  %v5297_v28 = vpop.permute.xlu1 %5296 }
 0x1d9   :  { %v5299_v5 = vunpack.i.h.bf16 %v5297_v28  ;;  %v5298_v52 = vunpack.i.l.bf16 %v5297_v28  ;;  %5581 = vrot.lane.b32.xlu0 %v7289_v23, %s5810_s29 }
 0x1da   :  { %3393 = vst.msk [vmem:[#allocation2 + $0x40] sm:$0xff] %vm1405_vm11, %v5293_v24  ;;  %3394 = vst.msk [vmem:[#allocation2 + $0x48] sm:$0xff] %vm1405_vm11, %v5294_v50  ;;  %5586 = vrot.lane.b32.xlu1 %v7354_v41, %s5810_s29  ;;  %4332 = vmatpush3.bf16.msra.mxu1 %v5705_v8  ;;  %v2754_v50 = vrot.slane %v7611_v60, 1  ;;  %v2755_v24 = vrot.slane %v7613_v0, 1 }
 0x1db   :  { %v4309_v58 = vpop.f32.mrb[12].mxu0  ;;  %2395 = vst.msk [vmem:[#allocation2 + $0x60] sm:$0xff] %vm395_vm4, %v5298_v52  ;;  %2396 = vst.msk [vmem:[#allocation2 + $0x68] sm:$0xff] %vm395_vm4, %v5299_v5  ;;  %v5302_v40 = vpop.permute.xlu0 %5301  ;;  %4333 = vmatprep.subr.bf16.mxu1 %v5814_v19  ;;  %v2757_v5 = vrot.slane %v2123_v56, 1 }
 0x1dc   :  { %v1741_v23 = vmul.f32 %v4309_v58, %v7261_v1  ;;  %v1641_v45 = vpop.f32.mrb[13].mxu0  ;;  %v5304_v57 = vunpack.i.h.bf16 %v5302_v40  ;;  %v5303_v12 = vunpack.i.l.bf16 %v5302_v40  ;;  %v5307_v43 = vpop.permute.xlu1 %5306  ;;  %v5709_v40 = vld [vmem:[%s8105_s4 + $0x30] sm:$0xff]  }
 0x1dd   :  { %v1739_v63 = vmul.f32 %v7261_v1, %v1641_v45  ;;  %v4310_v42 = vpop.f32.mrb[14].mxu0  ;;  %v5309_v9 = vunpack.i.h.bf16 %v5307_v43  ;;  %v5308_v26 = vunpack.i.l.bf16 %v5307_v43  ;;  %5591 = vrot.lane.b32.xlu0 %v7320_v25, %s5811_s10  ;;  %v2758_v43 = vsel %vm218_vm0, %v2755_v24, %v2757_v5 }
 0x1de   :  { %v1644_v61 = vpop.f32.mrb[15].mxu0  ;;  %3395 = vst.msk [vmem:[#allocation2 + $0x50] sm:$0xff] %vm1405_vm11, %v5303_v12  ;;  %3396 = vst.msk [vmem:[#allocation2 + $0x58] sm:$0xff] %vm1405_vm11, %v5304_v57  ;;  %5596 = vrot.lane.b32.xlu1 %v7358_v20, %s5811_s10  ;;  %v1742_v54 = vmul.f32 %v4310_v42, %v7261_v1  ;;  %v1780_v35 = vadd.f32 %v7277_v31, %v1741_v23  ;;  %v7650_v57 = vpack.i.bf16 %v7613_v0, %v7611_v60 }
 0x1df   :  { %v1778_v22 = vadd.f32 %v7277_v31, %v1739_v63  ;;  %v1740_v25 = vmul.f32 %v7261_v1, %v1644_v61  ;;  %2397 = vst.msk [vmem:[#allocation2 + $0x70] sm:$0xff] %vm395_vm4, %v5308_v26  ;;  %2398 = vst.msk [vmem:[#allocation2 + $0x78] sm:$0xff] %vm395_vm4, %v5309_v9  ;;  %v5312_v37 = vpop.permute.xlu0 %5311  ;;  %v5706_v1 = vld [vmem:[%s8105_s4 + $0x18] sm:$0xff]   ;;  %v2756_v12 = vsel %vm218_vm0, %v2754_v50, %v2755_v24  ;;  %v2887_v63 = vrot.slane %v7611_v60, 2  ;;  %v4112_v26 = vld [vmem:[%s8101_s0 + $0x1a4] sm:$0xff]  }
 0x1e0   :  { %v5314_v16 = vunpack.i.h.bf16 %v5312_v37  ;;  %v5313_v4 = vunpack.i.l.bf16 %v5312_v37  ;;  %v5317_v34 = vpop.permute.xlu1 %5316  ;;  %v1781_v15 = vadd.f32 %v7277_v31, %v1742_v54  ;;  %4334 = vmatpush3.bf16.msra.mxu1 %v5706_v1  ;;  %v2888_v42 = vrot.slane %v7613_v0, 2  ;;  %v4114_v54 = vld [vmem:[%s8101_s0 + $0x1ac] sm:$0x1] }
 0x1e1   :  { %v1810_v6 = vmax.f32 %v1778_v22, 0.0  ;;  %v1779_v3 = vadd.f32 %v7277_v31, %v1740_v25  ;;  %v5319_v47 = vunpack.i.h.bf16 %v5317_v34  ;;  %v5318_v14 = vunpack.i.l.bf16 %v5317_v34  ;;  %5601 = vrot.lane.b32.xlu0 %v7341_v21, %s5812_s15  ;;  %4335 = vmatprep.subr.bf16.mxu1 %v5814_v19  ;;  %v5710_v25 = vld [vmem:[%s8105_s4 + $0x38] sm:$0xff]  }
 0x1e2   :  { %2603 = vst.msk [vmem:[#allocation2 + $0x60] sm:$0xff] %vm605_vm5, %v5313_v4  ;;  %2604 = vst.msk [vmem:[#allocation2 + $0x68] sm:$0xff] %vm605_vm5, %v5314_v16  ;;  %5606 = vrot.lane.b32.xlu1 %v7382_v49, %s5812_s15  ;;  %v1813_v7 = vmax.f32 %v1781_v15, 0.0  ;;  %v2890_v9 = vrot.slane %v2123_v56, 2  ;;  %v7673_v16 = vld [vmem:[%s8102_s1] sm:$0xff]   ;;  %v7679_v4 = vpack.i.bf16 %v2758_v43, %v2756_v12  ;;  %v7681_v34 = vunpack.c.l.bf16 %v4112_v26 }
 0x1e3   :  { %v1841_v55 = vadd.f32 %v7516_v11, %v1810_v6  ;;  %v1811_v2 = vmax.f32 %v1779_v3, 0.0  ;;  %2605 = vst.msk [vmem:[#allocation2 + $0x70] sm:$0xff] %vm605_vm5, %v5318_v14  ;;  %2606 = vst.msk [vmem:[#allocation2 + $0x78] sm:$0xff] %vm605_vm5, %v5319_v47  ;;  %v5322_v27 = vpop.permute.xlu0 %5321  ;;  %v1812_v11 = vmax.f32 %v1780_v35, 0.0  ;;  %v2889_v6 = vsel %vm428_vm1, %v2887_v63, %v2888_v42 }
 0x1e4   :  { %v5324_v44 = vunpack.i.h.bf16 %v5322_v27  ;;  %v5323_v17 = vunpack.i.l.bf16 %v5322_v27  ;;  %v5327_v10 = vpop.permute.xlu1 %5326  ;;  %4336 = vmatpush3.bf16.msra.mxu1 %v5707_v32  ;;  %v2891_v3 = vsel %vm428_vm1, %v2888_v42, %v2890_v9  ;;  %v7687_v47 = vunpack.c.h.bf16 %v4112_v26 }
 0x1e5   :  { %v1842_v31 = vadd.f32 %v1841_v55, %v1811_v2  ;;  %v5329_v39 = vunpack.i.h.bf16 %v5327_v10  ;;  %v5328_v59 = vunpack.i.l.bf16 %v5327_v10  ;;  %5611 = vrot.lane.b32.xlu0 %v7354_v41, %s5813_s22  ;;  %4337 = vmatprep.subr.bf16.mxu1 %v5814_v19  ;;  %v2126_v14 = vunpack.c.l.bf16 %v4114_v54 }
 0x1e6   :  { %2733 = vst.msk [vmem:[#allocation2 + $0x60] sm:$0xff] %vm736_vm6, %v5323_v17  ;;  %2734 = vst.msk [vmem:[#allocation2 + $0x68] sm:$0xff] %vm736_vm6, %v5324_v44  ;;  %5616 = vrot.lane.b32.xlu1 %v7341_v21, %s5806_s17  ;;  %v7696_v51 = vpack.i.bf16 %v2891_v3, %v2889_v6  ;;  %v3151_v17 = vrot.slane %v7681_v34, 1  ;;  %v5675_v60 = vpack.i.bf16 %v7687_v47, %v7681_v34  ;;  %v3284_v0 = vrot.slane %v7681_v34, 2 }
 0x1e7   :  { %v1843_v46 = vadd.f32 %v1842_v31, %v1812_v11  ;;  %2735 = vst.msk [vmem:[#allocation2 + $0x70] sm:$0xff] %vm736_vm6, %v5328_v59  ;;  %2736 = vst.msk [vmem:[#allocation2 + $0x78] sm:$0xff] %vm736_vm6, %v5329_v39  ;;  %v5332_v33 = vpop.permute.xlu0 %5331  ;;  %v3154_v10 = vrot.slane %v2126_v14, 1  ;;  %v3285_v32 = vrot.slane %v7687_v47, 2  ;;  %v3287_v56 = vrot.slane %v2126_v14, 2 }
 0x1e8   :  { %v5334_v21 = vunpack.i.h.bf16 %v5332_v33  ;;  %v5333_v18 = vunpack.i.l.bf16 %v5332_v33  ;;  %v5337_v62 = vpop.permute.xlu1 %5336  ;;  %4338 = vmatpush3.bf16.msra.mxu1 %v5708_v13 }
 0x1e9   :  { %v7625_v30 = vadd.f32 %v1843_v46, %v1813_v7  ;;  %v5339_v53 = vunpack.i.h.bf16 %v5337_v62  ;;  %v5338_v48 = vunpack.i.l.bf16 %v5337_v62  ;;  %5621 = vrot.lane.b32.xlu0 %v7412_v36, %s5813_s22  ;;  %4339 = vmatprep.subr.bf16.mxu1 %v5814_v19 }
 0x1ea   :  { %2867 = vst.msk [vmem:[#allocation2 + $0x60] sm:$0xff] %vm871_vm7, %v5333_v18  ;;  %2868 = vst.msk [vmem:[#allocation2 + $0x68] sm:$0xff] %vm871_vm7, %v5334_v21  ;;  %5626 = vrot.lane.b32.xlu1 %v7382_v49, %s5806_s17  ;;  %v7719_v21 = vld [vmem:[%s8103_s2] ss:$0 sm:$0xff] }
 0x1eb   :  { %2869 = vst.msk [vmem:[#allocation2 + $0x70] sm:$0xff] %vm871_vm7, %v5338_v48  ;;  %2870 = vst.msk [vmem:[#allocation2 + $0x78] sm:$0xff] %vm871_vm7, %v5339_v53  ;;  %v5342_v28 = vpop.permute.xlu0 %5341 }
 0x1ec   :  { %v5344_v52 = vunpack.i.h.bf16 %v5342_v28  ;;  %v5343_v38 = vunpack.i.l.bf16 %v5342_v28  ;;  %v5347_v58 = vpop.permute.xlu1 %5346  ;;  %4340 = vmatpush3.bf16.msra.mxu1 %v5709_v40  ;;  %v7732_v40 = vld [vmem:[%s8104_s3] ss:$0 sm:$0xff] }
 0x1ed   :  { %v5349_v23 = vunpack.i.h.bf16 %v5347_v58  ;;  %v5348_v45 = vunpack.i.l.bf16 %v5347_v58  ;;  %5631 = vrot.lane.b32.xlu0 %v7354_v41, %s5807_s18  ;;  %4341 = vmatprep.subr.bf16.mxu1 %v5814_v19  ;;  %v3286_v58 = vsel %vm428_vm1, %v3284_v0, %v3285_v32 }
 0x1ee   :  { %3000 = vst.msk [vmem:[#allocation2 + $0x60] sm:$0xff] %vm1005_vm8, %v5343_v38  ;;  %3001 = vst.msk [vmem:[#allocation2 + $0x68] sm:$0xff] %vm1005_vm8, %v5344_v52  ;;  %5636 = vrot.lane.b32.xlu1 %v7412_v36, %s5807_s18 }
 0x1ef   :  { %3002 = vst.msk [vmem:[#allocation2 + $0x70] sm:$0xff] %vm1005_vm8, %v5348_v45  ;;  %3003 = vst.msk [vmem:[#allocation2 + $0x78] sm:$0xff] %vm1005_vm8, %v5349_v23  ;;  %v5352_v41 = vpop.permute.xlu0 %5351 }
 0x1f0   :  { %v5354_v61 = vunpack.i.h.bf16 %v5352_v41  ;;  %v5353_v8 = vunpack.i.l.bf16 %v5352_v41  ;;  %v5357_v22 = vpop.permute.xlu1 %5356  ;;  %4342 = vmatpush3.bf16.msra.mxu1 %v5710_v25  ;;  %v3288_v41 = vsel %vm428_vm1, %v3285_v32, %v3287_v56 }
 0x1f1   :  { %v5359_v37 = vunpack.i.h.bf16 %v5357_v22  ;;  %v5358_v35 = vunpack.i.l.bf16 %v5357_v22  ;;  %5641 = vrot.lane.b32.xlu0 %v7358_v20, %s5808_s23  ;;  %4347 = vmatprep.subr.bf16.mxu1 %v7673_v16  ;;  %v5695_v54 = vpack.i.bf16 %v3288_v41, %v3286_v58 }
 0x1f2   :  { %3130 = vst.msk [vmem:[#allocation2 + $0x60] sm:$0xff] %vm1136_vm9, %v5353_v8  ;;  %3131 = vst.msk [vmem:[#allocation2 + $0x68] sm:$0xff] %vm1136_vm9, %v5354_v61  ;;  %5646 = vrot.lane.b32.xlu1 %v7650_v57, %s5808_s23 }
 0x1f3   :  { %3132 = vst.msk [vmem:[#allocation2 + $0x70] sm:$0xff] %vm1136_vm9, %v5358_v35  ;;  %3133 = vst.msk [vmem:[#allocation2 + $0x78] sm:$0xff] %vm1136_vm9, %v5359_v37  ;;  %v5362_v20 = vpop.permute.xlu0 %5361 }
 0x1f4   :  { %v5364_v1 = vunpack.i.h.bf16 %v5362_v20  ;;  %v5363_v55 = vunpack.i.l.bf16 %v5362_v20  ;;  %v5367_v15 = vpop.permute.xlu1 %5366 }
 0x1f5   :  { %v5369_v2 = vunpack.i.h.bf16 %v5367_v15  ;;  %v5368_v27 = vunpack.i.l.bf16 %v5367_v15  ;;  %5651 = vrot.lane.b32.xlu0 %v7382_v49, %s5809_s24  ;;  %v3152_v49 = vrot.slane %v7687_v47, 1 }
 0x1f6   :  { %3264 = vst.msk [vmem:[#allocation2 + $0x60] sm:$0xff] %vm1271_vm10, %v5363_v55  ;;  %3265 = vst.msk [vmem:[#allocation2 + $0x68] sm:$0xff] %vm1271_vm10, %v5364_v1  ;;  %5656 = vrot.lane.b32.xlu1 %v7679_v4, %s5809_s24 }
 0x1f7   :  { %3266 = vst.msk [vmem:[#allocation2 + $0x70] sm:$0xff] %vm1271_vm10, %v5368_v27  ;;  %3267 = vst.msk [vmem:[#allocation2 + $0x78] sm:$0xff] %vm1271_vm10, %v5369_v2  ;;  %v5372_v44 = vpop.permute.xlu0 %5371  ;;  %v3153_v46 = vsel %vm218_vm0, %v3151_v17, %v3152_v49  ;;  %v3155_v33 = vsel %vm218_vm0, %v3152_v49, %v3154_v10 }
 0x1f8   :  { %v5374_v29 = vunpack.i.h.bf16 %v5372_v44  ;;  %v5373_v11 = vunpack.i.l.bf16 %v5372_v44  ;;  %v5377_v31 = vpop.permute.xlu1 %5376  ;;  %v5685_v38 = vpack.i.bf16 %v3155_v33, %v3153_v46 }
 0x1f9   :  { %v5379_v39 = vunpack.i.h.bf16 %v5377_v31  ;;  %v5378_v59 = vunpack.i.l.bf16 %v5377_v31  ;;  %5661 = vrot.lane.b32.xlu0 %v7412_v36, %s5810_s29 }
 0x1fa   :  { %3397 = vst.msk [vmem:[#allocation2 + $0x60] sm:$0xff] %vm1405_vm11, %v5373_v11  ;;  %3398 = vst.msk [vmem:[#allocation2 + $0x68] sm:$0xff] %vm1405_vm11, %v5374_v29  ;;  %5666 = vrot.lane.b32.xlu1 %v7696_v51, %s5810_s29 }
 0x1fb   :  { %v4313_v7 = vpop.f32.mrb[16].mxu0  ;;  %2399 = vst.msk [vmem:[#allocation2 + $0x80] sm:$0xff] %vm395_vm4, %v5378_v59  ;;  %2400 = vst.msk [vmem:[#allocation2 + $0x88] sm:$0xff] %vm395_vm4, %v5379_v39  ;;  %v5382_v36 = vpop.permute.xlu0 %5381 }
 0x1fc   :  { %v1745_v18 = vmul.f32 %v7719_v21, %v4313_v7  ;;  %v1657_v62 = vpop.f32.mrb[17].mxu0  ;;  %v5384_v13 = vunpack.i.h.bf16 %v5382_v36  ;;  %v5383_v53 = vunpack.i.l.bf16 %v5382_v36  ;;  %v5387_v48 = vpop.permute.xlu1 %5386 }
 0x1fd   :  { %v1743_v50 = vmul.f32 %v7719_v21, %v1657_v62  ;;  %v4314_v24 = vpop.f32.mrb[18].mxu0  ;;  %v5389_v28 = vunpack.i.h.bf16 %v5387_v48  ;;  %v5388_v5 = vunpack.i.l.bf16 %v5387_v48  ;;  %5671 = vrot.lane.b32.xlu0 %v7650_v57, %s5811_s10 }
 0x1fe   :  { %v1660_v52 = vpop.f32.mrb[19].mxu0  ;;  %3399 = vst.msk [vmem:[#allocation2 + $0x70] sm:$0xff] %vm1405_vm11, %v5383_v53  ;;  %3400 = vst.msk [vmem:[#allocation2 + $0x78] sm:$0xff] %vm1405_vm11, %v5384_v13  ;;  %5676 = vrot.lane.b32.xlu1 %v5675_v60, %s5811_s10  ;;  %v1746_v45 = vmul.f32 %v7719_v21, %v4314_v24  ;;  %v1784_v43 = vadd.f32 %v7732_v40, %v1745_v18 }
 0x1ff   :  { %v1782_v23 = vadd.f32 %v7732_v40, %v1743_v50  ;;  %v1744_v57 = vmul.f32 %v7719_v21, %v1660_v52  ;;  %2401 = vst.msk [vmem:[#allocation2 + $0x90] sm:$0xff] %vm395_vm4, %v5388_v5  ;;  %2402 = vst.msk [vmem:[#allocation2 + $0x98] sm:$0xff] %vm395_vm4, %v5389_v28  ;;  %v5392_v12 = vpop.permute.xlu0 %5391 }
 0x200   :  { %v5394_v63 = vunpack.i.h.bf16 %v5392_v12  ;;  %v5393_v42 = vunpack.i.l.bf16 %v5392_v12  ;;  %v5397_v9 = vpop.permute.xlu1 %5396  ;;  %v1785_v37 = vadd.f32 %v7732_v40, %v1746_v45  ;;  %v1816_v3 = vmax.f32 %v1784_v43, 0.0 }
 0x201   :  { %v1814_v26 = vmax.f32 %v1782_v23, 0.0  ;;  %v1783_v61 = vadd.f32 %v7732_v40, %v1744_v57  ;;  %v5399_v8 = vunpack.i.h.bf16 %v5397_v9  ;;  %v5398_v22 = vunpack.i.l.bf16 %v5397_v9  ;;  %5681 = vrot.lane.b32.xlu0 %v7679_v4, %s5812_s15 }
 0x202   :  { %2607 = vst.msk [vmem:[#allocation2 + $0x80] sm:$0xff] %vm605_vm5, %v5393_v42  ;;  %2608 = vst.msk [vmem:[#allocation2 + $0x88] sm:$0xff] %vm605_vm5, %v5394_v63  ;;  %5686 = vrot.lane.b32.xlu1 %v5685_v38, %s5812_s15 }
 0x203   :  { %v1845_v25 = vadd.f32 %v7625_v30, %v1814_v26  ;;  %v1815_v35 = vmax.f32 %v1783_v61, 0.0  ;;  %2609 = vst.msk [vmem:[#allocation2 + $0x90] sm:$0xff] %vm605_vm5, %v5398_v22  ;;  %2610 = vst.msk [vmem:[#allocation2 + $0x98] sm:$0xff] %vm605_vm5, %v5399_v8  ;;  %v5402_v34 = vpop.permute.xlu0 %5401  ;;  %v1817_v30 = vmax.f32 %v1785_v37, 0.0 }
 0x204   :  { %v5404_v20 = vunpack.i.h.bf16 %v5402_v34  ;;  %v5403_v6 = vunpack.i.l.bf16 %v5402_v34  ;;  %v5407_v4 = vpop.permute.xlu1 %5406 }
 0x205   :  { %v1846_v47 = vadd.f32 %v1845_v25, %v1815_v35  ;;  %v5409_v14 = vunpack.i.h.bf16 %v5407_v4  ;;  %v5408_v1 = vunpack.i.l.bf16 %v5407_v4  ;;  %5691 = vrot.lane.b32.xlu0 %v7696_v51, %s5813_s22 }
 0x206   :  { %2737 = vst.msk [vmem:[#allocation2 + $0x80] sm:$0xff] %vm736_vm6, %v5403_v6  ;;  %2738 = vst.msk [vmem:[#allocation2 + $0x88] sm:$0xff] %vm736_vm6, %v5404_v20  ;;  %5696 = vrot.lane.b32.xlu1 %v5695_v54, %s5813_s22 }
 0x207   :  { %v1847_v55 = vadd.f32 %v1846_v47, %v1816_v3  ;;  %2739 = vst.msk [vmem:[#allocation2 + $0x90] sm:$0xff] %vm736_vm6, %v5408_v1  ;;  %2740 = vst.msk [vmem:[#allocation2 + $0x98] sm:$0xff] %vm736_vm6, %v5409_v14  ;;  %v5412_v15 = vpop.permute.xlu0 %5411 }
 0x208   :  { %v5414_v2 = vunpack.i.h.bf16 %v5412_v15  ;;  %v5413_v27 = vunpack.i.l.bf16 %v5412_v15  ;;  %v5417_v44 = vpop.permute.xlu1 %5416 }
 0x209   :  { %v7758_v17 = vadd.f32 %v1847_v55, %v1817_v30  ;;  %v5419_v49 = vunpack.i.h.bf16 %v5417_v44  ;;  %v5418_v51 = vunpack.i.l.bf16 %v5417_v44 }
 0x20a   :  { %2871 = vst.msk [vmem:[#allocation2 + $0x80] sm:$0xff] %vm871_vm7, %v5413_v27  ;;  %2872 = vst.msk [vmem:[#allocation2 + $0x88] sm:$0xff] %vm871_vm7, %v5414_v2 }
 0x20b   :  { %2873 = vst.msk [vmem:[#allocation2 + $0x90] sm:$0xff] %vm871_vm7, %v5418_v51  ;;  %2874 = vst.msk [vmem:[#allocation2 + $0x98] sm:$0xff] %vm871_vm7, %v5419_v49  ;;  %v5422_v10 = vpop.permute.xlu0 %5421 }
 0x20c   :  { %v5424_v29 = vunpack.i.h.bf16 %v5422_v10  ;;  %v5423_v11 = vunpack.i.l.bf16 %v5422_v10  ;;  %v5427_v31 = vpop.permute.xlu1 %5426 }
 0x20d   :  { %v5429_v39 = vunpack.i.h.bf16 %v5427_v31  ;;  %v5428_v59 = vunpack.i.l.bf16 %v5427_v31 }
 0x20e   :  { %3004 = vst.msk [vmem:[#allocation2 + $0x80] sm:$0xff] %vm1005_vm8, %v5423_v11  ;;  %3005 = vst.msk [vmem:[#allocation2 + $0x88] sm:$0xff] %vm1005_vm8, %v5424_v29 }
 0x20f   :  { %3006 = vst.msk [vmem:[#allocation2 + $0x90] sm:$0xff] %vm1005_vm8, %v5428_v59  ;;  %3007 = vst.msk [vmem:[#allocation2 + $0x98] sm:$0xff] %vm1005_vm8, %v5429_v39  ;;  %v5432_v60 = vpop.permute.xlu0 %5431 }
 0x210   :  { %v5434_v0 = vunpack.i.h.bf16 %v5432_v60  ;;  %v5433_v32 = vunpack.i.l.bf16 %v5432_v60  ;;  %v5437_v7 = vpop.permute.xlu1 %5436 }
 0x211   :  { %v5439_v36 = vunpack.i.h.bf16 %v5437_v7  ;;  %v5438_v46 = vunpack.i.l.bf16 %v5437_v7 }
 0x212   :  { %3134 = vst.msk [vmem:[#allocation2 + $0x80] sm:$0xff] %vm1136_vm9, %v5433_v32  ;;  %3135 = vst.msk [vmem:[#allocation2 + $0x88] sm:$0xff] %vm1136_vm9, %v5434_v0 }
 0x213   :  { %3136 = vst.msk [vmem:[#allocation2 + $0x90] sm:$0xff] %vm1136_vm9, %v5438_v46  ;;  %3137 = vst.msk [vmem:[#allocation2 + $0x98] sm:$0xff] %vm1136_vm9, %v5439_v36  ;;  %v5442_v33 = vpop.permute.xlu0 %5441 }
 0x214   :  { %v5444_v56 = vunpack.i.h.bf16 %v5442_v33  ;;  %v5443_v18 = vunpack.i.l.bf16 %v5442_v33  ;;  %v5447_v62 = vpop.permute.xlu1 %5446 }
 0x215   :  { %v5449_v13 = vunpack.i.h.bf16 %v5447_v62  ;;  %v5448_v53 = vunpack.i.l.bf16 %v5447_v62 }
 0x216   :  { %3268 = vst.msk [vmem:[#allocation2 + $0x80] sm:$0xff] %vm1271_vm10, %v5443_v18  ;;  %3269 = vst.msk [vmem:[#allocation2 + $0x88] sm:$0xff] %vm1271_vm10, %v5444_v56 }
 0x217   :  { %3270 = vst.msk [vmem:[#allocation2 + $0x90] sm:$0xff] %vm1271_vm10, %v5448_v53  ;;  %3271 = vst.msk [vmem:[#allocation2 + $0x98] sm:$0xff] %vm1271_vm10, %v5449_v13  ;;  %v5452_v48 = vpop.permute.xlu0 %5451 }
 0x218   :  { %v5454_v50 = vunpack.i.h.bf16 %v5452_v48  ;;  %v5453_v24 = vunpack.i.l.bf16 %v5452_v48  ;;  %v5457_v28 = vpop.permute.xlu1 %5456 }
 0x219   :  { %v5459_v5 = vunpack.i.h.bf16 %v5457_v28  ;;  %v5458_v52 = vunpack.i.l.bf16 %v5457_v28 }
 0x21a   :  { %3401 = vst.msk [vmem:[#allocation2 + $0x80] sm:$0xff] %vm1405_vm11, %v5453_v24  ;;  %3402 = vst.msk [vmem:[#allocation2 + $0x88] sm:$0xff] %vm1405_vm11, %v5454_v50 }
 0x21b   :  { %v4317_v38 = vpop.f32.mrb[20].mxu0  ;;  %2403 = vst.msk [vmem:[#allocation2 + $0xa0] sm:$0xff] %vm395_vm4, %v5458_v52  ;;  %2404 = vst.msk [vmem:[#allocation2 + $0xa8] sm:$0xff] %vm395_vm4, %v5459_v5  ;;  %v5462_v58 = vpop.permute.xlu0 %5461 }
 0x21c   :  { %v1749_v23 = vmul.f32 %v7719_v21, %v4317_v38  ;;  %v1673_v45 = vpop.f32.mrb[21].mxu0  ;;  %v5464_v57 = vunpack.i.h.bf16 %v5462_v58  ;;  %v5463_v12 = vunpack.i.l.bf16 %v5462_v58  ;;  %v5467_v41 = vpop.permute.xlu1 %5466 }
 0x21d   :  { %v1747_v43 = vmul.f32 %v7719_v21, %v1673_v45  ;;  %v4318_v63 = vpop.f32.mrb[22].mxu0  ;;  %v5469_v42 = vunpack.i.h.bf16 %v5467_v41  ;;  %v5468_v9 = vunpack.i.l.bf16 %v5467_v41 }
 0x21e   :  { %v1676_v26 = vpop.f32.mrb[23].mxu0  ;;  %3403 = vst.msk [vmem:[#allocation2 + $0x90] sm:$0xff] %vm1405_vm11, %v5463_v12  ;;  %3404 = vst.msk [vmem:[#allocation2 + $0x98] sm:$0xff] %vm1405_vm11, %v5464_v57  ;;  %v1750_v8 = vmul.f32 %v7719_v21, %v4318_v63  ;;  %v1788_v25 = vadd.f32 %v7732_v40, %v1749_v23 }
 0x21f   :  { %v1786_v61 = vadd.f32 %v7732_v40, %v1747_v43  ;;  %v1748_v22 = vmul.f32 %v7719_v21, %v1676_v26  ;;  %2405 = vst.msk [vmem:[#allocation2 + $0xb0] sm:$0xff] %vm395_vm4, %v5468_v9  ;;  %2406 = vst.msk [vmem:[#allocation2 + $0xb8] sm:$0xff] %vm395_vm4, %v5469_v42  ;;  %v5472_v54 = vpop.permute.xlu0 %5471 }
 0x220   :  { %v5474_v37 = vunpack.i.h.bf16 %v5472_v54  ;;  %v5473_v35 = vunpack.i.l.bf16 %v5472_v54  ;;  %v5477_v34 = vpop.permute.xlu1 %5476  ;;  %v1789_v14 = vadd.f32 %v7732_v40, %v1750_v8  ;;  %v1820_v27 = vmax.f32 %v1788_v25, 0.0 }
 0x221   :  { %v1818_v20 = vmax.f32 %v1786_v61, 0.0  ;;  %v1787_v6 = vadd.f32 %v7732_v40, %v1748_v22  ;;  %v5479_v4 = vunpack.i.h.bf16 %v5477_v34  ;;  %v5478_v3 = vunpack.i.l.bf16 %v5477_v34 }
 0x222   :  { %2611 = vst.msk [vmem:[#allocation2 + $0xa0] sm:$0xff] %vm605_vm5, %v5473_v35  ;;  %2612 = vst.msk [vmem:[#allocation2 + $0xa8] sm:$0xff] %vm605_vm5, %v5474_v37 }
 0x223   :  { %v1849_v47 = vadd.f32 %v7758_v17, %v1818_v20  ;;  %v1819_v1 = vmax.f32 %v1787_v6, 0.0  ;;  %2613 = vst.msk [vmem:[#allocation2 + $0xb0] sm:$0xff] %vm605_vm5, %v5478_v3  ;;  %2614 = vst.msk [vmem:[#allocation2 + $0xb8] sm:$0xff] %vm605_vm5, %v5479_v4  ;;  %v5482_v30 = vpop.permute.xlu0 %5481  ;;  %v1821_v17 = vmax.f32 %v1789_v14, 0.0 }
 0x224   :  { %v5484_v55 = vunpack.i.h.bf16 %v5482_v30  ;;  %v5483_v15 = vunpack.i.l.bf16 %v5482_v30  ;;  %v5487_v2 = vpop.permute.xlu1 %5486 }
 0x225   :  { %v1850_v44 = vadd.f32 %v1849_v47, %v1819_v1  ;;  %v5489_v49 = vunpack.i.h.bf16 %v5487_v2  ;;  %v5488_v51 = vunpack.i.l.bf16 %v5487_v2 }
 0x226   :  { %2741 = vst.msk [vmem:[#allocation2 + $0xa0] sm:$0xff] %vm736_vm6, %v5483_v15  ;;  %2742 = vst.msk [vmem:[#allocation2 + $0xa8] sm:$0xff] %vm736_vm6, %v5484_v55 }
 0x227   :  { %v1851_v10 = vadd.f32 %v1850_v44, %v1820_v27  ;;  %2743 = vst.msk [vmem:[#allocation2 + $0xb0] sm:$0xff] %vm736_vm6, %v5488_v51  ;;  %2744 = vst.msk [vmem:[#allocation2 + $0xb8] sm:$0xff] %vm736_vm6, %v5489_v49  ;;  %v5492_v29 = vpop.permute.xlu0 %5491 }
 0x228   :  { %v5494_v11 = vunpack.i.h.bf16 %v5492_v29  ;;  %v5493_v31 = vunpack.i.l.bf16 %v5492_v29  ;;  %v5497_v39 = vpop.permute.xlu1 %5496 }
 0x229   :  { %v7801_v59 = vadd.f32 %v1851_v10, %v1821_v17  ;;  %v5499_v60 = vunpack.i.h.bf16 %v5497_v39  ;;  %v5498_v0 = vunpack.i.l.bf16 %v5497_v39 }
 0x22a   :  { %2875 = vst.msk [vmem:[#allocation2 + $0xa0] sm:$0xff] %vm871_vm7, %v5493_v31  ;;  %2876 = vst.msk [vmem:[#allocation2 + $0xa8] sm:$0xff] %vm871_vm7, %v5494_v11 }
 0x22b   :  { %2877 = vst.msk [vmem:[#allocation2 + $0xb0] sm:$0xff] %vm871_vm7, %v5498_v0  ;;  %2878 = vst.msk [vmem:[#allocation2 + $0xb8] sm:$0xff] %vm871_vm7, %v5499_v60  ;;  %v5502_v32 = vpop.permute.xlu0 %5501 }
 0x22c   :  { %v5504_v7 = vunpack.i.h.bf16 %v5502_v32  ;;  %v5503_v36 = vunpack.i.l.bf16 %v5502_v32  ;;  %v5507_v46 = vpop.permute.xlu1 %5506 }
 0x22d   :  { %v5509_v33 = vunpack.i.h.bf16 %v5507_v46  ;;  %v5508_v56 = vunpack.i.l.bf16 %v5507_v46 }
 0x22e   :  { %3008 = vst.msk [vmem:[#allocation2 + $0xa0] sm:$0xff] %vm1005_vm8, %v5503_v36  ;;  %3009 = vst.msk [vmem:[#allocation2 + $0xa8] sm:$0xff] %vm1005_vm8, %v5504_v7 }
 0x22f   :  { %3010 = vst.msk [vmem:[#allocation2 + $0xb0] sm:$0xff] %vm1005_vm8, %v5508_v56  ;;  %3011 = vst.msk [vmem:[#allocation2 + $0xb8] sm:$0xff] %vm1005_vm8, %v5509_v33  ;;  %v5512_v18 = vpop.permute.xlu0 %5511 }
 0x230   :  { %v5514_v62 = vunpack.i.h.bf16 %v5512_v18  ;;  %v5513_v13 = vunpack.i.l.bf16 %v5512_v18  ;;  %v5517_v53 = vpop.permute.xlu1 %5516 }
 0x231   :  { %v5519_v48 = vunpack.i.h.bf16 %v5517_v53  ;;  %v5518_v50 = vunpack.i.l.bf16 %v5517_v53 }
 0x232   :  { %3138 = vst.msk [vmem:[#allocation2 + $0xa0] sm:$0xff] %vm1136_vm9, %v5513_v13  ;;  %3139 = vst.msk [vmem:[#allocation2 + $0xa8] sm:$0xff] %vm1136_vm9, %v5514_v62 }
 0x233   :  { %3140 = vst.msk [vmem:[#allocation2 + $0xb0] sm:$0xff] %vm1136_vm9, %v5518_v50  ;;  %3141 = vst.msk [vmem:[#allocation2 + $0xb8] sm:$0xff] %vm1136_vm9, %v5519_v48  ;;  %v5522_v24 = vpop.permute.xlu0 %5521 }
 0x234   :  { %v5524_v28 = vunpack.i.h.bf16 %v5522_v24  ;;  %v5523_v5 = vunpack.i.l.bf16 %v5522_v24  ;;  %v5527_v52 = vpop.permute.xlu1 %5526 }
 0x235   :  { %v5529_v38 = vunpack.i.h.bf16 %v5527_v52  ;;  %v5528_v58 = vunpack.i.l.bf16 %v5527_v52 }
 0x236   :  { %3272 = vst.msk [vmem:[#allocation2 + $0xa0] sm:$0xff] %vm1271_vm10, %v5523_v5  ;;  %3273 = vst.msk [vmem:[#allocation2 + $0xa8] sm:$0xff] %vm1271_vm10, %v5524_v28 }
 0x237   :  { %3274 = vst.msk [vmem:[#allocation2 + $0xb0] sm:$0xff] %vm1271_vm10, %v5528_v58  ;;  %3275 = vst.msk [vmem:[#allocation2 + $0xb8] sm:$0xff] %vm1271_vm10, %v5529_v38  ;;  %v5532_v23 = vpop.permute.xlu0 %5531 }
 0x238   :  { %v5534_v45 = vunpack.i.h.bf16 %v5532_v23  ;;  %v5533_v57 = vunpack.i.l.bf16 %v5532_v23  ;;  %v5537_v12 = vpop.permute.xlu1 %5536 }
 0x239   :  { %v5539_v41 = vunpack.i.h.bf16 %v5537_v12  ;;  %v5538_v43 = vunpack.i.l.bf16 %v5537_v12 }
 0x23a   :  { %3405 = vst.msk [vmem:[#allocation2 + $0xa0] sm:$0xff] %vm1405_vm11, %v5533_v57  ;;  %3406 = vst.msk [vmem:[#allocation2 + $0xa8] sm:$0xff] %vm1405_vm11, %v5534_v45 }
 0x23b   :  { %v4321_v63 = vpop.f32.mrb[24].mxu0  ;;  %2407 = vst.msk [vmem:[#allocation2 + $0xc0] sm:$0xff] %vm395_vm4, %v5538_v43  ;;  %2408 = vst.msk [vmem:[#allocation2 + $0xc8] sm:$0xff] %vm395_vm4, %v5539_v41  ;;  %v5542_v42 = vpop.permute.xlu0 %5541 }
 0x23c   :  { %v1753_v9 = vmul.f32 %v7719_v21, %v4321_v63  ;;  %v1689_v26 = vpop.f32.mrb[25].mxu0  ;;  %v5544_v61 = vunpack.i.h.bf16 %v5542_v42  ;;  %v5543_v8 = vunpack.i.l.bf16 %v5542_v42  ;;  %v5547_v22 = vpop.permute.xlu1 %5546 }
 0x23d   :  { %v1751_v54 = vmul.f32 %v7719_v21, %v1689_v26  ;;  %v4322_v25 = vpop.f32.mrb[26].mxu0  ;;  %v5549_v37 = vunpack.i.h.bf16 %v5547_v22  ;;  %v5548_v35 = vunpack.i.l.bf16 %v5547_v22 }
 0x23e   :  { %v1692_v34 = vpop.f32.mrb[27].mxu0  ;;  %3407 = vst.msk [vmem:[#allocation2 + $0xb0] sm:$0xff] %vm1405_vm11, %v5543_v8  ;;  %3408 = vst.msk [vmem:[#allocation2 + $0xb8] sm:$0xff] %vm1405_vm11, %v5544_v61  ;;  %v1754_v6 = vmul.f32 %v7719_v21, %v4322_v25  ;;  %v1792_v47 = vadd.f32 %v7732_v40, %v1753_v9 }
 0x23f   :  { %v1790_v20 = vadd.f32 %v7732_v40, %v1751_v54  ;;  %v1752_v4 = vmul.f32 %v7719_v21, %v1692_v34  ;;  %2409 = vst.msk [vmem:[#allocation2 + $0xd0] sm:$0xff] %vm395_vm4, %v5548_v35  ;;  %2410 = vst.msk [vmem:[#allocation2 + $0xd8] sm:$0xff] %vm395_vm4, %v5549_v37  ;;  %v5552_v3 = vpop.permute.xlu0 %5551 }
 0x240   :  { %v5554_v14 = vunpack.i.h.bf16 %v5552_v3  ;;  %v5553_v1 = vunpack.i.l.bf16 %v5552_v3  ;;  %v5557_v30 = vpop.permute.xlu1 %5556  ;;  %v1793_v49 = vadd.f32 %v7732_v40, %v1754_v6  ;;  %v1824_v31 = vmax.f32 %v1792_v47, 0.0 }
 0x241   :  { %v1822_v55 = vmax.f32 %v1790_v20, 0.0  ;;  %v1791_v15 = vadd.f32 %v7732_v40, %v1752_v4  ;;  %v5559_v2 = vunpack.i.h.bf16 %v5557_v30  ;;  %v5558_v27 = vunpack.i.l.bf16 %v5557_v30 }
 0x242   :  { %2615 = vst.msk [vmem:[#allocation2 + $0xc0] sm:$0xff] %vm605_vm5, %v5553_v1  ;;  %2616 = vst.msk [vmem:[#allocation2 + $0xc8] sm:$0xff] %vm605_vm5, %v5554_v14 }
 0x243   :  { %v1853_v44 = vadd.f32 %v7801_v59, %v1822_v55  ;;  %v1823_v51 = vmax.f32 %v1791_v15, 0.0  ;;  %2617 = vst.msk [vmem:[#allocation2 + $0xd0] sm:$0xff] %vm605_vm5, %v5558_v27  ;;  %2618 = vst.msk [vmem:[#allocation2 + $0xd8] sm:$0xff] %vm605_vm5, %v5559_v2  ;;  %v5562_v17 = vpop.permute.xlu0 %5561  ;;  %v1825_v59 = vmax.f32 %v1793_v49, 0.0 }
 0x244   :  { %v5564_v10 = vunpack.i.h.bf16 %v5562_v17  ;;  %v5563_v29 = vunpack.i.l.bf16 %v5562_v17  ;;  %v5567_v11 = vpop.permute.xlu1 %5566 }
 0x245   :  { %v1854_v39 = vadd.f32 %v1853_v44, %v1823_v51  ;;  %v5569_v60 = vunpack.i.h.bf16 %v5567_v11  ;;  %v5568_v0 = vunpack.i.l.bf16 %v5567_v11 }
 0x246   :  { %2745 = vst.msk [vmem:[#allocation2 + $0xc0] sm:$0xff] %vm736_vm6, %v5563_v29  ;;  %2746 = vst.msk [vmem:[#allocation2 + $0xc8] sm:$0xff] %vm736_vm6, %v5564_v10 }
 0x247   :  { %v1855_v32 = vadd.f32 %v1854_v39, %v1824_v31  ;;  %2747 = vst.msk [vmem:[#allocation2 + $0xd0] sm:$0xff] %vm736_vm6, %v5568_v0  ;;  %2748 = vst.msk [vmem:[#allocation2 + $0xd8] sm:$0xff] %vm736_vm6, %v5569_v60  ;;  %v5572_v7 = vpop.permute.xlu0 %5571 }
 0x248   :  { %v5574_v36 = vunpack.i.h.bf16 %v5572_v7  ;;  %v5573_v46 = vunpack.i.l.bf16 %v5572_v7  ;;  %v5577_v33 = vpop.permute.xlu1 %5576 }
 0x249   :  { %v7844_v56 = vadd.f32 %v1855_v32, %v1825_v59  ;;  %v5579_v18 = vunpack.i.h.bf16 %v5577_v33  ;;  %v5578_v62 = vunpack.i.l.bf16 %v5577_v33 }
 0x24a   :  { %2879 = vst.msk [vmem:[#allocation2 + $0xc0] sm:$0xff] %vm871_vm7, %v5573_v46  ;;  %2880 = vst.msk [vmem:[#allocation2 + $0xc8] sm:$0xff] %vm871_vm7, %v5574_v36 }
 0x24b   :  { %2881 = vst.msk [vmem:[#allocation2 + $0xd0] sm:$0xff] %vm871_vm7, %v5578_v62  ;;  %2882 = vst.msk [vmem:[#allocation2 + $0xd8] sm:$0xff] %vm871_vm7, %v5579_v18  ;;  %v5582_v13 = vpop.permute.xlu0 %5581 }
 0x24c   :  { %v5584_v53 = vunpack.i.h.bf16 %v5582_v13  ;;  %v5583_v48 = vunpack.i.l.bf16 %v5582_v13  ;;  %v5587_v50 = vpop.permute.xlu1 %5586 }
 0x24d   :  { %v5589_v24 = vunpack.i.h.bf16 %v5587_v50  ;;  %v5588_v28 = vunpack.i.l.bf16 %v5587_v50 }
 0x24e   :  { %3012 = vst.msk [vmem:[#allocation2 + $0xc0] sm:$0xff] %vm1005_vm8, %v5583_v48  ;;  %3013 = vst.msk [vmem:[#allocation2 + $0xc8] sm:$0xff] %vm1005_vm8, %v5584_v53 }
 0x24f   :  { %3014 = vst.msk [vmem:[#allocation2 + $0xd0] sm:$0xff] %vm1005_vm8, %v5588_v28  ;;  %3015 = vst.msk [vmem:[#allocation2 + $0xd8] sm:$0xff] %vm1005_vm8, %v5589_v24  ;;  %v5592_v5 = vpop.permute.xlu0 %5591 }
 0x250   :  { %v5594_v52 = vunpack.i.h.bf16 %v5592_v5  ;;  %v5593_v38 = vunpack.i.l.bf16 %v5592_v5  ;;  %v5597_v58 = vpop.permute.xlu1 %5596 }
 0x251   :  { %v5599_v23 = vunpack.i.h.bf16 %v5597_v58  ;;  %v5598_v45 = vunpack.i.l.bf16 %v5597_v58 }
 0x252   :  { %3142 = vst.msk [vmem:[#allocation2 + $0xc0] sm:$0xff] %vm1136_vm9, %v5593_v38  ;;  %3143 = vst.msk [vmem:[#allocation2 + $0xc8] sm:$0xff] %vm1136_vm9, %v5594_v52 }
 0x253   :  { %3144 = vst.msk [vmem:[#allocation2 + $0xd0] sm:$0xff] %vm1136_vm9, %v5598_v45  ;;  %3145 = vst.msk [vmem:[#allocation2 + $0xd8] sm:$0xff] %vm1136_vm9, %v5599_v23  ;;  %v5602_v57 = vpop.permute.xlu0 %5601 }
 0x254   :  { %v5604_v12 = vunpack.i.h.bf16 %v5602_v57  ;;  %v5603_v41 = vunpack.i.l.bf16 %v5602_v57  ;;  %v5607_v43 = vpop.permute.xlu1 %5606 }
 0x255   :  { %v5609_v63 = vunpack.i.h.bf16 %v5607_v43  ;;  %v5608_v42 = vunpack.i.l.bf16 %v5607_v43 }
 0x256   :  { %3276 = vst.msk [vmem:[#allocation2 + $0xc0] sm:$0xff] %vm1271_vm10, %v5603_v41  ;;  %3277 = vst.msk [vmem:[#allocation2 + $0xc8] sm:$0xff] %vm1271_vm10, %v5604_v12 }
 0x257   :  { %3278 = vst.msk [vmem:[#allocation2 + $0xd0] sm:$0xff] %vm1271_vm10, %v5608_v42  ;;  %3279 = vst.msk [vmem:[#allocation2 + $0xd8] sm:$0xff] %vm1271_vm10, %v5609_v63  ;;  %v5612_v9 = vpop.permute.xlu0 %5611 }
 0x258   :  { %v4325_v26 = vpop.f32.mrb[28].mxu0  ;;  %v5614_v61 = vunpack.i.h.bf16 %v5612_v9  ;;  %v5613_v8 = vunpack.i.l.bf16 %v5612_v9  ;;  %v5617_v22 = vpop.permute.xlu1 %5616 }
 0x259   :  { %v1705_v54 = vpop.f32.mrb[29].mxu0  ;;  %v5619_v25 = vunpack.i.h.bf16 %v5617_v22  ;;  %v5618_v37 = vunpack.i.l.bf16 %v5617_v22  ;;  %v1757_v35 = vmul.f32 %v7719_v21, %v4325_v26 }
 0x25a   :  { %v1755_v34 = vmul.f32 %v7719_v21, %v1705_v54  ;;  %v4326_v20 = vpop.f32.mrb[30].mxu0  ;;  %3409 = vst.msk [vmem:[#allocation2 + $0xc0] sm:$0xff] %vm1405_vm11, %v5613_v8  ;;  %3410 = vst.msk [vmem:[#allocation2 + $0xc8] sm:$0xff] %vm1405_vm11, %v5614_v61 }
 0x25b   :  { %v1758_v6 = vmul.f32 %v7719_v21, %v4326_v20  ;;  %v1708_v4 = vpop.f32.mrb[31].mxu0  ;;  %2411 = vst.msk [vmem:[#allocation2 + $0xe0] sm:$0xff] %vm395_vm4, %v5618_v37  ;;  %2412 = vst.msk [vmem:[#allocation2 + $0xe8] sm:$0xff] %vm395_vm4, %v5619_v25  ;;  %v5622_v3 = vpop.permute.xlu0 %5621  ;;  %v1796_v27 = vadd.f32 %v7732_v40, %v1757_v35  ;;  %v3417_v35 = vld [vmem:[#allocation2] sm:$0xff] }
 0x25c   :  { %v1794_v47 = vadd.f32 %v7732_v40, %v1755_v34  ;;  %v1756_v14 = vmul.f32 %v7719_v21, %v1708_v4  ;;  %v5624_v1 = vunpack.i.h.bf16 %v5622_v3  ;;  %v5623_v30 = vunpack.i.l.bf16 %v5622_v3  ;;  %v5627_v55 = vpop.permute.xlu1 %5626  ;;  %v3418_v34 = vld [vmem:[#allocation2 + $0x8] sm:$0xff] }
 0x25d   :  { %v5629_v15 = vunpack.i.h.bf16 %v5627_v55  ;;  %v5628_v2 = vunpack.i.l.bf16 %v5627_v55  ;;  %v1797_v51 = vadd.f32 %v7732_v40, %v1758_v6  ;;  %v1828_v0 = vmax.f32 %v1796_v27, 0.0 }
 0x25e   :  { %v1826_v44 = vmax.f32 %v1794_v47, 0.0  ;;  %v1795_v49 = vadd.f32 %v7732_v40, %v1756_v14  ;;  %3411 = vst.msk [vmem:[#allocation2 + $0xd0] sm:$0xff] %vm1405_vm11, %v5623_v30  ;;  %3412 = vst.msk [vmem:[#allocation2 + $0xd8] sm:$0xff] %vm1405_vm11, %v5624_v1  ;;  %v5712_v1 = vld [vmem:[%s8102_s1 + $0x8] sm:$0xff]   ;;  %v3449_v30 = vpack.c.bf16 %v3418_v34, %v3417_v35  ;;  %v5714_v35 = vld [vmem:[%s8105_s4] sm:$0xff]  }
 0x25f   :  { %2413 = vst.msk [vmem:[#allocation2 + $0xf0] sm:$0xff] %vm395_vm4, %v5628_v2  ;;  %2414 = vst.msk [vmem:[#allocation2 + $0xf8] sm:$0xff] %vm395_vm4, %v5629_v15  ;;  %v5632_v21 = vpop.permute.xlu0 %5631  ;;  %v1829_v32 = vmax.f32 %v1797_v51, 0.0  ;;  %v5713_v51 = vld [vmem:[%s8102_s1 + $0x10] ss:$0 sps:$4 sm:$0x33]   ;;  %4386 = vmatpush3.bf16.msra.mxu0 %v5714_v35 }
 0x260   :  { %v1857_v17 = vadd.f32 %v7844_v56, %v1826_v44  ;;  %v1827_v10 = vmax.f32 %v1795_v49, 0.0  ;;  %v5634_v29 = vunpack.i.h.bf16 %v5632_v21  ;;  %v5633_v11 = vunpack.i.l.bf16 %v5632_v21  ;;  %v5637_v31 = vpop.permute.xlu1 %5636  ;;  %v3419_v21 = vld [vmem:[#allocation2 + $0x10] sm:$0xff]  ;;  %4387 = vmatprep.subr.bf16.mxu0 %v5814_v19  ;;  %v5715_v34 = vld [vmem:[%s8105_s4 + $0x8] sm:$0xff]  }
 0x261   :  { %v5639_v39 = vunpack.i.h.bf16 %v5637_v31  ;;  %v5638_v60 = vunpack.i.l.bf16 %v5637_v31 }
 0x262   :  { %v1858_v59 = vadd.f32 %v1857_v17, %v1827_v10  ;;  %2619 = vst.msk [vmem:[#allocation2 + $0xe0] sm:$0xff] %vm605_vm5, %v5633_v11  ;;  %2620 = vst.msk [vmem:[#allocation2 + $0xe8] sm:$0xff] %vm605_vm5, %v5634_v29  ;;  %v3420_v17 = vld [vmem:[#allocation2 + $0x18] sm:$0xff]  ;;  %v3421_v10 = vld [vmem:[#allocation2 + $0x20] sm:$0xff] }
 0x263   :  { %2621 = vst.msk [vmem:[#allocation2 + $0xf0] sm:$0xff] %vm605_vm5, %v5638_v60  ;;  %2622 = vst.msk [vmem:[#allocation2 + $0xf8] sm:$0xff] %vm605_vm5, %v5639_v39  ;;  %v5642_v40 = vpop.permute.xlu0 %5641  ;;  %v3422_v29 = vld [vmem:[#allocation2 + $0x28] sm:$0xff]  ;;  %v3450_v11 = vpack.c.bf16 %v3420_v17, %v3419_v21  ;;  %v3423_v39 = vld [vmem:[#allocation2 + $0x30] sm:$0xff]  ;;  %4388 = vmatpush3.bf16.msra.mxu0 %v5715_v34 }
 0x264   :  { %v1859_v7 = vadd.f32 %v1858_v59, %v1828_v0  ;;  %v5644_v36 = vunpack.i.h.bf16 %v5642_v40  ;;  %v5643_v46 = vunpack.i.l.bf16 %v5642_v40  ;;  %v5647_v33 = vpop.permute.xlu1 %5646  ;;  %v3451_v31 = vpack.c.bf16 %v3422_v29, %v3421_v10  ;;  %v3424_v60 = vld [vmem:[#allocation2 + $0x38] sm:$0xff]  ;;  %v3425_v0 = vld [vmem:[#allocation2 + $0x40] sm:$0xff]  ;;  %v3426_v59 = vld [vmem:[#allocation2 + $0x48] sm:$0xff]  ;;  %4389 = vmatprep.subr.bf16.mxu0 %v5814_v19 }
 0x265   :  { %v5649_v56 = vunpack.i.h.bf16 %v5647_v33  ;;  %v5648_v18 = vunpack.i.l.bf16 %v5647_v33  ;;  %v3452_v40 = vpack.c.bf16 %v3424_v60, %v3423_v39  ;;  %v3430_v33 = vld [vmem:[#allocation2 + $0x68] sm:$0xff] }
 0x266   :  { %v1860_v62 = vadd.f32 %v1859_v7, %v1829_v32  ;;  %2749 = vst.msk [vmem:[#allocation2 + $0xe0] sm:$0xff] %vm736_vm6, %v5643_v46  ;;  %2750 = vst.msk [vmem:[#allocation2 + $0xe8] sm:$0xff] %vm736_vm6, %v5644_v36  ;;  %v3453_v32 = vpack.c.bf16 %v3426_v59, %v3425_v0  ;;  %v3427_v7 = vld [vmem:[#allocation2 + $0x50] sm:$0xff]  ;;  %v3428_v36 = vld [vmem:[#allocation2 + $0x58] sm:$0xff] }
 0x267   :  { %2751 = vst.msk [vmem:[#allocation2 + $0xf0] sm:$0xff] %vm736_vm6, %v5648_v18  ;;  %2752 = vst.msk [vmem:[#allocation2 + $0xf8] sm:$0xff] %vm736_vm6, %v5649_v56  ;;  %v5652_v13 = vpop.permute.xlu0 %5651  ;;  %v3429_v46 = vld [vmem:[#allocation2 + $0x60] sm:$0xff]  ;;  %v3454_v56 = vpack.c.bf16 %v3428_v36, %v3427_v7 }
 0x268   :  { %v1861_v53 = vrot.slane %v1860_v62, 4  ;;  %v5654_v48 = vunpack.i.h.bf16 %v5652_v13  ;;  %v5653_v50 = vunpack.i.l.bf16 %v5652_v13  ;;  %v5657_v24 = vpop.permute.xlu1 %5656  ;;  %v3455_v18 = vpack.c.bf16 %v3430_v33, %v3429_v46  ;;  %v3432_v13 = vld [vmem:[#allocation2 + $0x78] sm:$0xff] }
 0x269   :  { %v5659_v28 = vunpack.i.h.bf16 %v5657_v24  ;;  %v5658_v5 = vunpack.i.l.bf16 %v5657_v24 }
 0x26a   :  { %v1862_v52 = vadd.f32 %v1861_v53, %v1860_v62  ;;  %2883 = vst.msk [vmem:[#allocation2 + $0xe0] sm:$0xff] %vm871_vm7, %v5653_v50  ;;  %2884 = vst.msk [vmem:[#allocation2 + $0xe8] sm:$0xff] %vm871_vm7, %v5654_v48  ;;  %v3431_v62 = vld [vmem:[#allocation2 + $0x70] sm:$0xff]  ;;  %v3433_v53 = vld [vmem:[#allocation2 + $0x80] sm:$0xff] }
 0x26b   :  { %2885 = vst.msk [vmem:[#allocation2 + $0xf0] sm:$0xff] %vm871_vm7, %v5658_v5  ;;  %2886 = vst.msk [vmem:[#allocation2 + $0xf8] sm:$0xff] %vm871_vm7, %v5659_v28  ;;  %v5662_v38 = vpop.permute.xlu0 %5661  ;;  %v3434_v48 = vld [vmem:[#allocation2 + $0x88] sm:$0xff]  ;;  %v3456_v50 = vpack.c.bf16 %v3432_v13, %v3431_v62  ;;  %v3435_v28 = vld [vmem:[#allocation2 + $0x90] sm:$0xff] }
 0x26c   :  { %v1863_v58 = vrot.slane %v1862_v52, 2  ;;  %v5664_v23 = vunpack.i.h.bf16 %v5662_v38  ;;  %v5663_v45 = vunpack.i.l.bf16 %v5662_v38  ;;  %v5667_v57 = vpop.permute.xlu1 %5666  ;;  %v3457_v24 = vpack.c.bf16 %v3434_v48, %v3433_v53  ;;  %v3436_v5 = vld [vmem:[#allocation2 + $0x98] sm:$0xff]  ;;  %v3438_v38 = vld [vmem:[#allocation2 + $0xa8] sm:$0xff] }
 0x26d   :  { %v5669_v12 = vunpack.i.h.bf16 %v5667_v57  ;;  %v5668_v41 = vunpack.i.l.bf16 %v5667_v57  ;;  %v3440_v57 = vld [vmem:[#allocation2 + $0xb8] sm:$0xff] }
 0x26e   :  { %v1864_v43 = vadd.f32 %v1863_v58, %v1862_v52  ;;  %3016 = vst.msk [vmem:[#allocation2 + $0xe0] sm:$0xff] %vm1005_vm8, %v5663_v45  ;;  %3017 = vst.msk [vmem:[#allocation2 + $0xe8] sm:$0xff] %vm1005_vm8, %v5664_v23  ;;  %v3437_v52 = vld [vmem:[#allocation2 + $0xa0] sm:$0xff]  ;;  %v3458_v58 = vpack.c.bf16 %v3436_v5, %v3435_v28  ;;  %v3439_v45 = vld [vmem:[#allocation2 + $0xb0] sm:$0xff] }
 0x26f   :  { %3018 = vst.msk [vmem:[#allocation2 + $0xf0] sm:$0xff] %vm1005_vm8, %v5668_v41  ;;  %3019 = vst.msk [vmem:[#allocation2 + $0xf8] sm:$0xff] %vm1005_vm8, %v5669_v12  ;;  %v5672_v63 = vpop.permute.xlu0 %5671  ;;  %v3459_v23 = vpack.c.bf16 %v3438_v38, %v3437_v52  ;;  %v3441_v12 = vld [vmem:[#allocation2 + $0xc0] sm:$0xff]  ;;  %v3442_v41 = vld [vmem:[#allocation2 + $0xc8] sm:$0xff] }
 0x270   :  { %v1865_v42 = vrot.slane %v1864_v43, 1  ;;  %v5674_v9 = vunpack.i.h.bf16 %v5672_v63  ;;  %v5673_v26 = vunpack.i.l.bf16 %v5672_v63  ;;  %v5677_v61 = vpop.permute.xlu1 %5676  ;;  %v3461_v63 = vpack.c.bf16 %v3442_v41, %v3441_v12 }
 0x271   :  { %v5679_v8 = vunpack.i.h.bf16 %v5677_v61  ;;  %v5678_v22 = vunpack.i.l.bf16 %v5677_v61  ;;  %v3444_v61 = vld [vmem:[#allocation2 + $0xd8] sm:$0xff] }
 0x272   :  { %v1866_v54 = vadd.f32 %v1865_v42, %v1864_v43  ;;  %3146 = vst.msk [vmem:[#allocation2 + $0xe0] sm:$0xff] %vm1136_vm9, %v5673_v26  ;;  %3147 = vst.msk [vmem:[#allocation2 + $0xe8] sm:$0xff] %vm1136_vm9, %v5674_v9  ;;  %v3460_v43 = vpack.c.bf16 %v3440_v57, %v3439_v45  ;;  %v3443_v26 = vld [vmem:[#allocation2 + $0xd0] sm:$0xff] }
 0x273   :  { %3148 = vst.msk [vmem:[#allocation2 + $0xf0] sm:$0xff] %vm1136_vm9, %v5678_v22  ;;  %3149 = vst.msk [vmem:[#allocation2 + $0xf8] sm:$0xff] %vm1136_vm9, %v5679_v8  ;;  %v5682_v25 = vpop.permute.xlu0 %5681  ;;  %v3462_v22 = vpack.c.bf16 %v3444_v61, %v3443_v26 }
 0x274   :  { %v1868_v37 = vmul.f32 0.00390625, %v1866_v54  ;;  %v5684_v20 = vunpack.i.h.bf16 %v5682_v25  ;;  %v5683_v6 = vunpack.i.l.bf16 %v5682_v25  ;;  %v5687_v4 = vpop.permute.xlu1 %5686 }
 0x275   :  { %v5689_v3 = vunpack.i.h.bf16 %v5687_v4  ;;  %v5688_v47 = vunpack.i.l.bf16 %v5687_v4  ;;  %v5718_v4 = vld [vmem:[%s8105_s4 + $0x20] sm:$0xff]  }
 0x276   :  { %v1869_v14 = vpack.c.bf16 %v1868_v37, %v1868_v37  ;;  %3280 = vst.msk [vmem:[#allocation2 + $0xe0] sm:$0xff] %vm1271_vm10, %v5683_v6  ;;  %3281 = vst.msk [vmem:[#allocation2 + $0xe8] sm:$0xff] %vm1271_vm10, %v5684_v20  ;;  %v5716_v20 = vld [vmem:[%s8105_s4 + $0x10] sm:$0xff]   ;;  %v5717_v6 = vld [vmem:[%s8105_s4 + $0x18] sm:$0xff]  }
 0x277   :  { %3282 = vst.msk [vmem:[#allocation2 + $0xf0] sm:$0xff] %vm1271_vm10, %v5688_v47  ;;  %3283 = vst.msk [vmem:[#allocation2 + $0xf8] sm:$0xff] %vm1271_vm10, %v5689_v3  ;;  %v5692_v55 = vpop.permute.xlu0 %5691  ;;  %4390 = vmatpush3.bf16.msra.mxu0 %v5716_v20  ;;  %v5719_v3 = vld [vmem:[%s8105_s4 + $0x28] sm:$0xff]   ;;  %v5720_v47 = vld [vmem:[%s8105_s4 + $0x30] sm:$0xff]  }
 0x278   :  { %4344 = vmatmul.mubr.bf16.vlgmr.msra.gmra.mrb[0].mxu1 %v1869_v14  ;;  %v5694_v15 = vunpack.i.h.bf16 %v5692_v55  ;;  %v5693_v2 = vunpack.i.l.bf16 %v5692_v55  ;;  %v5697_v27 = vpop.permute.xlu1 %5696  ;;  %4391 = vmatprep.subr.bf16.mxu0 %v5814_v19  ;;  %v5721_v14 = vld [vmem:[%s8105_s4 + $0x38] sm:$0xff]  }
 0x279   :  { %4348 = vmatpush3.bf16.msra.mxu1 %v7673_v16  ;;  %4353 = vmatprep.mubr.msk.bf16.mxu1 %vm1506_vm12, %v3449_v30  ;;  %v5699_v44 = vunpack.i.h.bf16 %v5697_v27  ;;  %v5698_v49 = vunpack.i.l.bf16 %v5697_v27  ;;  %v3534_v16 = vsel %vm1555_vm3, %v5713_v51, 0 }
 0x27a   :  { %4349 = vmatprep.subr.bf16.mxu1 %v5712_v1  ;;  %3413 = vst.msk [vmem:[#allocation2 + $0xe0] sm:$0xff] %vm1405_vm11, %v5693_v2  ;;  %3414 = vst.msk [vmem:[#allocation2 + $0xe8] sm:$0xff] %vm1405_vm11, %v5694_v15 }
 0x27b   :  { %3415 = vst.msk [vmem:[#allocation2 + $0xf0] sm:$0xff] %vm1405_vm11, %v5698_v49  ;;  %3416 = vst.msk [vmem:[#allocation2 + $0xf8] sm:$0xff] %vm1405_vm11, %v5699_v44  ;;  %4392 = vmatpush3.bf16.msra.mxu0 %v5717_v6 }
 0x27c   :  { %4393 = vmatprep.subr.bf16.mxu0 %v5814_v19 }
 0x27d   :  { %4350 = vmatpush3.bf16.msra.mxu1 %v5712_v1  ;;  %v1886_v1 = vld [vmem:[%s8106_s5] sm:$0x1] }
 0x27e   :  { %4406 = vmatprep.subr.msk.bf16.mxu1 %vm1555_vm3, %v5713_v51  ;;  %v7979_v51 = vld [vmem:[%s8104_s3] ss:$0 sm:$0xff] }
 0x27f   :  { %4394 = vmatpush3.bf16.msra.mxu0 %v5718_v4 }
 0x280   :  { %4395 = vmatprep.subr.bf16.mxu0 %v5814_v19 }
 0x281   :  { %4352 = vmatpush3.bf16.msra.mxu1 %v3534_v16  ;;  %v3445_v42 = vld [vmem:[#allocation2 + $0xe0] sm:$0xff]  ;;  %v3446_v9 = vld [vmem:[#allocation2 + $0xe8] sm:$0xff] }
 0x282   :  { %v3463_v8 = vpack.c.bf16 %v3446_v9, %v3445_v42  ;;  %v3447_v54 = vld [vmem:[#allocation2 + $0xf0] sm:$0xff]  ;;  %v3448_v25 = vld [vmem:[#allocation2 + $0xf8] sm:$0xff] }
 0x283   :  { %v3464_v37 = vpack.c.bf16 %v3448_v25, %v3447_v54  ;;  %4396 = vmatpush3.bf16.msra.mxu0 %v5719_v3 }
 0x284   :  { %4354 = vmatmul.mubr.msk.bf16.vlgmr.msra.gmra.mrb[4].mxu1 %vm1506_vm12, %v3450_v11  ;;  %4397 = vmatprep.subr.bf16.mxu0 %v5814_v19 }
 0x285   :  { %4357 = vmatprep.mubr.msk.bf16.mxu1 %vm1506_vm12, %v3451_v31 }
 0x287   :  { %4398 = vmatpush3.bf16.msra.mxu0 %v5720_v47 }
 0x288   :  { %4399 = vmatprep.subr.bf16.mxu0 %v5814_v19  ;;  %v7974_v19 = vld [vmem:[%s8103_s2] ss:$0 sm:$0xff] }
 0x28b   :  { %4400 = vmatpush3.bf16.msra.mxu0 %v5721_v14 }
 0x28c   :  { %4358 = vmatmul.mubr.msk.bf16.gmra.mrb[8].mxu1 %vm1506_vm12, %v3452_v40 }
 0x28d   :  { %4361 = vmatprep.mubr.msk.bf16.mxu1 %vm1506_vm12, %v3453_v32 }
 0x294   :  { %4362 = vmatmul.mubr.msk.bf16.gmra.mrb[12].mxu1 %vm1506_vm12, %v3454_v56 }
 0x295   :  { %4365 = vmatprep.mubr.msk.bf16.mxu1 %vm1506_vm12, %v3455_v18 }
 0x29c   :  { %4366 = vmatmul.mubr.msk.bf16.gmra.mrb[16].mxu1 %vm1506_vm12, %v3456_v50 }
 0x29d   :  { %4369 = vmatprep.mubr.msk.bf16.mxu1 %vm1506_vm12, %v3457_v24 }
 0x2a4   :  { %4370 = vmatmul.mubr.msk.bf16.gmra.mrb[20].mxu1 %vm1506_vm12, %v3458_v58 }
 0x2a5   :  { %4373 = vmatprep.mubr.msk.bf16.mxu1 %vm1506_vm12, %v3459_v23 }
 0x2ac   :  { %4374 = vmatmul.mubr.msk.bf16.gmra.mrb[24].mxu1 %vm1506_vm12, %v3460_v43 }
 0x2ad   :  { %4377 = vmatprep.mubr.msk.bf16.mxu1 %vm1506_vm12, %v3461_v63 }
 0x2b4   :  { %4378 = vmatmul.mubr.msk.bf16.gmra.mrb[28].mxu1 %vm1506_vm12, %v3462_v22 }
 0x2b5   :  { %4381 = vmatprep.mubr.msk.bf16.mxu1 %vm1506_vm12, %v3463_v8 }
 0x2bc   :  { %4382 = vmatmul.mubr.msk.bf16.gmra.mrb[32].mxu1 %vm1506_vm12, %v3464_v37 }
 0x34b   :  { %v1969_v30 = vpop.f32.mrb[0].mxu1 }
 0x34c   :  { %v7966_v55 = vadd.f32 %v1969_v30, %v1886_v1  ;;  %v4345_v15 = vpop.f32.mrb[1].mxu1 }
 0x34d   :  { %v1972_v2 = vpop.f32.mrb[2].mxu1 }
 0x34e   :  { %1975 = vst [vmem:[#allocation3] sm:$0x1] %v7966_v55  ;;  %v4346_v27 = vpop.f32.mrb[3].mxu1  ;;  %v1977_v44 = vsel %vm1976_vm14, %v7966_v55, -inf }
 0x34f   :  { %1978 = vmax.xlane.f32.xlu0 %v1977_v44 }
 0x357   :  { %v4355_v49 = vpop.f32.mrb[4].mxu1 }
 0x358   :  { %v3570_v16 = vpop.f32.mrb[5].mxu1  ;;  %v3706_v21 = vmul.f32 %v4355_v49, %v7974_v19 }
 0x359   :  { %v3704_v17 = vmul.f32 %v7974_v19, %v3570_v16  ;;  %v4356_v10 = vpop.f32.mrb[6].mxu1 }
 0x35a   :  { %v3707_v29 = vmul.f32 %v4356_v10, %v7974_v19  ;;  %v3573_v11 = vpop.f32.mrb[7].mxu1  ;;  %v3745_v60 = vadd.f32 %v7979_v51, %v3706_v21 }
 0x35b   :  { %v3743_v31 = vadd.f32 %v7979_v51, %v3704_v17  ;;  %v3705_v39 = vmul.f32 %v7974_v19, %v3573_v11 }
 0x35c   :  { %v3746_v59 = vadd.f32 %v7979_v51, %v3707_v29  ;;  %v3777_v46 = vmax.f32 %v3745_v60, 0.0 }
 0x35d   :  { %v3744_v0 = vadd.f32 %v7979_v51, %v3705_v39  ;;  %v3775_v40 = vmax.f32 %v3743_v31, 0.0 }
 0x35e   :  { %v3778_v13 = vmax.f32 %v3746_v59, 0.0 }
 0x35f   :  { %v3776_v32 = vmax.f32 %v3744_v0, 0.0  ;;  %v4359_v7 = vpop.f32.mrb[8].mxu1 }
 0x360   :  { %v3586_v36 = vpop.f32.mrb[9].mxu1  ;;  %v3710_v56 = vmul.f32 %v4359_v7, %v7974_v19 }
 0x361   :  { %v3807_v33 = vadd.f32 %v3776_v32, %v3775_v40  ;;  %v3708_v18 = vmul.f32 %v7974_v19, %v3586_v36  ;;  %v4360_v62 = vpop.f32.mrb[10].mxu1 }
 0x362   :  { %v3589_v53 = vpop.f32.mrb[11].mxu1  ;;  %v3711_v24 = vmul.f32 %v4360_v62, %v7974_v19  ;;  %v3749_v5 = vadd.f32 %v7979_v51, %v3710_v56 }
 0x363   :  { %v3808_v48 = vadd.f32 %v3807_v33, %v3777_v46  ;;  %v3747_v50 = vadd.f32 %v7979_v51, %v3708_v18  ;;  %v3709_v28 = vmul.f32 %v7974_v19, %v3589_v53 }
 0x364   :  { %v3750_v45 = vadd.f32 %v7979_v51, %v3711_v24  ;;  %v3781_v43 = vmax.f32 %v3749_v5, 0.0 }
 0x365   :  { %v3779_v52 = vmax.f32 %v3747_v50, 0.0  ;;  %v3809_v38 = vadd.f32 %v3808_v48, %v3778_v13  ;;  %v3748_v58 = vadd.f32 %v7979_v51, %v3709_v28 }
 0x366   :  { %v3782_v22 = vmax.f32 %v3750_v45, 0.0 }
 0x367   :  { %v3810_v23 = vadd.f32 %v3809_v38, %v3779_v52  ;;  %v3780_v57 = vmax.f32 %v3748_v58, 0.0  ;;  %v4363_v12 = vpop.f32.mrb[12].mxu1 }
 0x368   :  { %v3602_v41 = vpop.f32.mrb[13].mxu1  ;;  %v3714_v42 = vmul.f32 %v4363_v12, %v7974_v19 }
 0x369   :  { %v3811_v63 = vadd.f32 %v3810_v23, %v3780_v57  ;;  %v3712_v9 = vmul.f32 %v7974_v19, %v3602_v41  ;;  %v4364_v26 = vpop.f32.mrb[14].mxu1 }
 0x36a   :  { %v3715_v61 = vmul.f32 %v4364_v26, %v7974_v19  ;;  %v3605_v8 = vpop.f32.mrb[15].mxu1  ;;  %v3753_v35 = vadd.f32 %v7979_v51, %v3714_v42 }
 0x36b   :  { %v3812_v54 = vadd.f32 %v3811_v63, %v3781_v43  ;;  %v3751_v25 = vadd.f32 %v7979_v51, %v3712_v9  ;;  %v3713_v37 = vmul.f32 %v7974_v19, %v3605_v8 }
 0x36c   :  { %v3754_v4 = vadd.f32 %v7979_v51, %v3715_v61  ;;  %v3785_v30 = vmax.f32 %v3753_v35, 0.0 }
 0x36d   :  { %v3783_v34 = vmax.f32 %v3751_v25, 0.0  ;;  %v3813_v20 = vadd.f32 %v3812_v54, %v3782_v22  ;;  %v3752_v6 = vadd.f32 %v7979_v51, %v3713_v37 }
 0x36e   :  { %v3786_v49 = vmax.f32 %v3754_v4, 0.0 }
 0x36f   :  { %v3814_v3 = vadd.f32 %v3813_v20, %v3783_v34  ;;  %v3784_v47 = vmax.f32 %v3752_v6, 0.0  ;;  %v4367_v14 = vpop.f32.mrb[16].mxu1 }
 0x370   :  { %v3618_v1 = vpop.f32.mrb[17].mxu1  ;;  %v3718_v2 = vmul.f32 %v4367_v14, %v7974_v19 }
 0x371   :  { %v3815_v15 = vadd.f32 %v3814_v3, %v3784_v47  ;;  %v3716_v27 = vmul.f32 %v7974_v19, %v3618_v1  ;;  %v4368_v44 = vpop.f32.mrb[18].mxu1 }
 0x372   :  { %v3621_v16 = vpop.f32.mrb[19].mxu1  ;;  %v3719_v10 = vmul.f32 %v4368_v44, %v7974_v19  ;;  %v3757_v11 = vadd.f32 %v7979_v51, %v3718_v2 }
 0x373   :  { %v3816_v21 = vadd.f32 %v3815_v15, %v3785_v30  ;;  %v3755_v17 = vadd.f32 %v7979_v51, %v3716_v27  ;;  %v3717_v29 = vmul.f32 %v7974_v19, %v3621_v16 }
 0x374   :  { %v3758_v59 = vadd.f32 %v7979_v51, %v3719_v10  ;;  %v3789_v36 = vmax.f32 %v3757_v11, 0.0 }
 0x375   :  { %v3787_v31 = vmax.f32 %v3755_v17, 0.0  ;;  %v3817_v39 = vadd.f32 %v3816_v21, %v3786_v49  ;;  %v3756_v60 = vadd.f32 %v7979_v51, %v3717_v29 }
 0x376   :  { %v3790_v53 = vmax.f32 %v3758_v59, 0.0 }
 0x377   :  { %v3818_v0 = vadd.f32 %v3817_v39, %v3787_v31  ;;  %v3788_v40 = vmax.f32 %v3756_v60, 0.0  ;;  %v4371_v32 = vpop.f32.mrb[20].mxu1 }
 0x378   :  { %v3634_v7 = vpop.f32.mrb[21].mxu1  ;;  %v3722_v33 = vmul.f32 %v4371_v32, %v7974_v19 }
 0x379   :  { %v3819_v46 = vadd.f32 %v3818_v0, %v3788_v40  ;;  %v3720_v56 = vmul.f32 %v7974_v19, %v3634_v7  ;;  %v4372_v18 = vpop.f32.mrb[22].mxu1 }
 0x37a   :  { %v3723_v62 = vmul.f32 %v4372_v18, %v7974_v19  ;;  %v3637_v13 = vpop.f32.mrb[23].mxu1  ;;  %v3761_v28 = vadd.f32 %v7979_v51, %v3722_v33 }
 0x37b   :  { %v3820_v48 = vadd.f32 %v3819_v46, %v3789_v36  ;;  %v3759_v50 = vadd.f32 %v7979_v51, %v3720_v56  ;;  %v3721_v24 = vmul.f32 %v7974_v19, %v3637_v13 }
 0x37c   :  { %v3762_v58 = vadd.f32 %v7979_v51, %v3723_v62  ;;  %v3793_v41 = vmax.f32 %v3761_v28, 0.0 }
 0x37d   :  { %v3791_v5 = vmax.f32 %v3759_v50, 0.0  ;;  %v3821_v52 = vadd.f32 %v3820_v48, %v3790_v53  ;;  %v3760_v38 = vadd.f32 %v7979_v51, %v3721_v24 }
 0x37e   :  { %v3794_v26 = vmax.f32 %v3762_v58, 0.0 }
 0x37f   :  { %v3822_v23 = vadd.f32 %v3821_v52, %v3791_v5  ;;  %v3792_v45 = vmax.f32 %v3760_v38, 0.0  ;;  %v4375_v57 = vpop.f32.mrb[24].mxu1 }
 0x380   :  { %v3650_v12 = vpop.f32.mrb[25].mxu1  ;;  %v3726_v63 = vmul.f32 %v4375_v57, %v7974_v19 }
 0x381   :  { %v3823_v43 = vadd.f32 %v3822_v23, %v3792_v45  ;;  %v3724_v42 = vmul.f32 %v7974_v19, %v3650_v12  ;;  %v4376_v9 = vpop.f32.mrb[26].mxu1 }
 0x382   :  { %v3653_v61 = vpop.f32.mrb[27].mxu1  ;;  %v3727_v54 = vmul.f32 %v4376_v9, %v7974_v19  ;;  %v3765_v37 = vadd.f32 %v7979_v51, %v3726_v63 }
 0x383   :  { %v3824_v8 = vadd.f32 %v3823_v43, %v3793_v41  ;;  %v3763_v22 = vadd.f32 %v7979_v51, %v3724_v42  ;;  %v3725_v25 = vmul.f32 %v7974_v19, %v3653_v61 }
 0x384   :  { %v3766_v4 = vadd.f32 %v7979_v51, %v3727_v54  ;;  %v3797_v1 = vmax.f32 %v3765_v37, 0.0 }
 0x385   :  { %v3795_v35 = vmax.f32 %v3763_v22, 0.0  ;;  %v3825_v34 = vadd.f32 %v3824_v8, %v3794_v26  ;;  %v3764_v20 = vadd.f32 %v7979_v51, %v3725_v25 }
 0x386   :  { %v3798_v16 = vmax.f32 %v3766_v4, 0.0  ;;  %v3862_v4 = vld [vmem:[%s8106_s5] sm:$0x1]  ;;  %s5816_s5 = smov [#allocation3]  }
 0x387   :  { %v3826_v6 = vadd.f32 %v3825_v34, %v3795_v35  ;;  %v3796_v3 = vmax.f32 %v3764_v20, 0.0  ;;  %v4379_v47 = vpop.f32.mrb[28].mxu1  ;;  %v1998_v34 = vlaneseq  ;;  %s3997_s15 = sshll.u32 %s5816_s5, 4  ;;  %s3998_s15 = int_to_ptr.vmem [resolvable:$true] %s3997_s15 }
 0x388   :  { %v3666_v14 = vpop.f32.mrb[29].mxu1  ;;  %v3730_v15 = vmul.f32 %v4379_v47, %v7974_v19  ;;  %s5736_s22 = scalar_lea.vmem %s3998_s15, 32  ;;  %p5741_p1 = scmp.lt.s32.totalorder %s3998_s15, %s3998_s15 }
 0x389   :  { %v3827_v30 = vadd.f32 %v3826_v6, %v3796_v3  ;;  %v3728_v2 = vmul.f32 %v7974_v19, %v3666_v14  ;;  %v4380_v27 = vpop.f32.mrb[30].mxu1  ;;  %v1999_v20 = vand.u32 127, %v1998_v34  ;;  %p5737_p0 = scmp.ne.s32.totalorder %s3998_s15, %s5736_s22  ;;  %p5742_p2 = scmp.lt.s32.totalorder %s5736_s22, %s5736_s22 }
 0x38a   :  { %v3731_v44 = vmul.f32 %v4380_v27, %v7974_v19  ;;  %v3669_v49 = vpop.f32.mrb[31].mxu1  ;;  %v3769_v29 = vadd.f32 %v7979_v51, %v3730_v15 }
 0x38b   :  { %v3828_v21 = vadd.f32 %v3827_v30, %v3797_v1  ;;  %v3767_v17 = vadd.f32 %v7979_v51, %v3728_v2  ;;  %v3729_v10 = vmul.f32 %v7974_v19, %v3669_v49  ;;  %p5743_p3 = por %p5742_p2, %p5741_p1 }
 0x38c   :  { %v3770_v60 = vadd.f32 %v7979_v51, %v3731_v44  ;;  %v3801_v7 = vmax.f32 %v3769_v29, 0.0 }
 0x38d   :  { %v3799_v11 = vmax.f32 %v3767_v17, 0.0  ;;  %v3829_v31 = vadd.f32 %v3828_v21, %v3798_v16  ;;  %v3768_v39 = vadd.f32 %v7979_v51, %v3729_v10  ;;  %p5744_p4 = pnand %p5743_p3, %p5737_p0 }
 0x38e   :  { %v3802_v18 = vmax.f32 %v3770_v60, 0.0 }
 0x38f   :  { %v3830_v0 = vadd.f32 %v3829_v31, %v3799_v11  ;;  %v3800_v59 = vmax.f32 %v3768_v39, 0.0  ;;  %v4383_v40 = vpop.f32.mrb[32].mxu1 }
 0x390   :  { %v3682_v32 = vpop.f32.mrb[33].mxu1  ;;  %v3734_v46 = vmul.f32 %v4383_v40, %v7974_v19 }
 0x391   :  { %v3831_v36 = vadd.f32 %v3830_v0, %v3800_v59  ;;  %v3732_v33 = vmul.f32 %v7974_v19, %v3682_v32  ;;  %v4384_v56 = vpop.f32.mrb[34].mxu1 }
 0x392   :  { %v3685_v62 = vpop.f32.mrb[35].mxu1  ;;  %v3735_v48 = vmul.f32 %v4384_v56, %v7974_v19  ;;  %v3773_v24 = vadd.f32 %v7979_v51, %v3734_v46 }
 0x393   :  { %v3832_v13 = vadd.f32 %v3831_v36, %v3801_v7  ;;  %v3771_v53 = vadd.f32 %v7979_v51, %v3732_v33  ;;  %v3733_v50 = vmul.f32 %v7974_v19, %v3685_v62 }
 0x394   :  { %v3774_v58 = vadd.f32 %v7979_v51, %v3735_v48  ;;  %v3805_v45 = vmax.f32 %v3773_v24, 0.0 }
 0x395   :  { %v3803_v28 = vmax.f32 %v3771_v53, 0.0  ;;  %v3833_v5 = vadd.f32 %v3832_v13, %v3802_v18  ;;  %v3772_v52 = vadd.f32 %v7979_v51, %v3733_v50 }
 0x396   :  { %v3806_v12 = vmax.f32 %v3774_v58, 0.0 }
 0x397   :  { %v3834_v38 = vadd.f32 %v3833_v5, %v3803_v28  ;;  %v3804_v23 = vmax.f32 %v3772_v52, 0.0 }
 0x399   :  { %v3835_v57 = vadd.f32 %v3834_v38, %v3804_v23 }
 0x39b   :  { %v3836_v41 = vadd.f32 %v3835_v57, %v3805_v45 }
 0x39d   :  { %v3837_v43 = vadd.f32 %v3836_v41, %v3806_v12 }
 0x39f   :  { %v3838_v63 = vrot.slane %v3837_v43, 4 }
 0x3a1   :  { %v3839_v42 = vadd.f32 %v3838_v63, %v3837_v43 }
 0x3a3   :  { %v3840_v9 = vrot.slane %v3839_v42, 2 }
 0x3a5   :  { %v3841_v26 = vadd.f32 %v3840_v9, %v3839_v42 }
 0x3a7   :  { %v3842_v19 = vrot.slane %v3841_v26, 1 }
 0x3a9   :  { %v3843_v61 = vadd.f32 %v3842_v19, %v3841_v26 }
 0x3ab   :  { %v3844_v8 = vmul.f32 0.00390625, %v3843_v61 }
 0x3ad   :  { %v3845_v22 = vpack.c.bf16 %v3844_v8, %v3844_v8 }
 0x3af   :  { %4402 = vmatmul.mubr.bf16.vlgmr.msra.gmra.mrb[32].mxu0 %v3845_v22 }
 0x3dc   :  { %v1979_v54 = vpop.xlane.xlu0 %1978 }
 0x3dd   :  { %v1980_v25 = vsub.f32 %v7966_v55, %v1979_v54  ;;  %vm2000_vm15 = vcmp.eq.f32.partialorder %v7966_v55, %v1979_v54 }
 0x3de   :  { %v2001_v6 = vsel %vm2000_vm15, %v1999_v20, 128 }
 0x3df   :  { %v1981_v37 = vmul.f32 1.442695, %v1980_v25  ;;  %v2002_v3 = vsel %vm1976_vm14, %v2001_v6, 2147483647 }
 0x3e0   :  { %v2004_v15 = vshra.s32 %v2002_v3, 16  ;;  %v2003_v29 = vand.u32 65535, %v2002_v3 }
 0x3e1   :  { %5722 = vpow2.f32 %v1981_v37 }
 0x3e2   :  { %v2006_v44 = vcvt.s32.f32 %v2004_v15  ;;  %v2005_v0 = vcvt.s32.f32 %v2003_v29 }
 0x3eb   :  { %v5723_v51 = vpop.eup %5722 }
 0x3ec   :  { %v1983_v35 = vsel %vm1976_vm14, %v5723_v51, 0.0 }
 0x3ed   :  { %1984 = vadd.xlane.f32.xlu0 %v1983_v35 }
 0x47a   :  { %v1985_v55 = vpop.xlane.xlu0 %1984 }
 0x47b   :  { %5724 = vrcp.f32 %v1985_v55 }
 0x482   :  { %v3945_v47 = vpop.f32.mrb[32].mxu0 }
 0x483   :  { %v3946_v14 = vadd.f32 %v3945_v47, %v3862_v4  ;;  %v4403_v1 = vpop.f32.mrb[33].mxu0 }
 0x484   :  { %v3948_v30 = vpop.f32.mrb[34].mxu0 }
 0x485   :  { %3951 = vst [vmem:[#allocation3 + $0x1] sm:$0x1] %v3946_v14  ;;  %v4404_v2 = vpop.f32.mrb[35].mxu0  ;;  %v3952_v27 = vsel %vm1976_vm14, %v3946_v14, -inf  ;;  %v5725_v49 = vpop.eup %5724 }
 0x486   :  { %3953 = vmax.xlane.f32.xlu1 %v3952_v27  ;;  %v1987_v16 = vmul.f32 %v5725_v49, %v5723_v51 }
 0x488   :  { %v1989_v21 = vadd.f32 1e-06, %v1987_v16  ;;  %v1988_v59 = vsub.f32 0.0, %v1987_v16 }
 0x48a   :  { %2007 = vmin.xlane.f32.xlu1 %v2006_v44  ;;  %5726 = vlog2.f32 %v1989_v21 }
 0x494   :  { %v5727_v17 = vpop.eup %5726 }
 0x495   :  { %v1991_v31 = vmul.f32 0.6931472, %v5727_v17 }
 0x497   :  { %v1992_v32 = vmul.f32 %v1991_v31, %v1988_v59 }
 0x499   :  { %v1993_v36 = vsel %vm1976_vm14, %v1992_v32, 0.0 }
 0x513   :  { %v3954_v10 = vpop.xlane.xlu1 %3953 }
 0x514   :  { %v3955_v11 = vsub.f32 %v3946_v14, %v3954_v10  ;;  %vm3973_vm1 = vcmp.eq.f32.partialorder %v3946_v14, %v3954_v10 }
 0x515   :  { %v3974_v7 = vsel %vm3973_vm1, %v1999_v20, 128 }
 0x516   :  { %v3956_v39 = vmul.f32 1.442695, %v3955_v11  ;;  %v3975_v46 = vsel %vm1976_vm14, %v3974_v7, 2147483647 }
 0x517   :  { %v2008_v60 = vpop.xlane.xlu1 %2007  ;;  %v3977_v56 = vshra.s32 %v3975_v46, 16  ;;  %v3976_v52 = vand.u32 65535, %v3975_v46 }
 0x518   :  { %5728 = vpow2.f32 %v3956_v39  ;;  %vm2009_vm0 = vcmp.eq.f32.partialorder %v2006_v44, %v2008_v60  ;;  %v2014_v13 = vcvt.f32.s32 %v2008_v60 }
 0x519   :  { %v2010_v40 = vsel %vm2009_vm0, %v2005_v0, inf  ;;  %v3979_v62 = vcvt.s32.f32 %v3977_v56  ;;  %v3978_v58 = vcvt.s32.f32 %v3976_v52 }
 0x51a   :  { %2011 = vmin.xlane.f32.xlu1 %v2010_v40  ;;  %v2015_v48 = vshll.u32 %v2014_v13, 16 }
 0x51e   :  { %1994 = vadd.xlane.f32.xlu1 %v1993_v36 }
 0x522   :  { %v5729_v33 = vpop.eup %5728 }
 0x523   :  { %v3958_v18 = vsel %vm1976_vm14, %v5729_v33, 0.0 }
 0x524   :  { %3959 = vadd.xlane.f32.xlu0 %v3958_v18 }
 0x528   :  { %3980 = vmin.xlane.f32.xlu0 %v3979_v62 }
 0x5a7   :  { %v2012_v53 = vpop.xlane.xlu1 %2011 }
 0x5a8   :  { %v2013_v50 = vcvt.f32.s32 %v2012_v53 }
 0x5aa   :  { %v2016_v24 = vadd.s32 %v2015_v48, %v2013_v50 }
 0x5ab   :  { %v1995_v28 = vpop.xlane.xlu1 %1994 }
 0x5ac   :  { %2017 = vst.msk [vmem:[#allocation7] sm:$0x1] %vm1996_vm2, %v2016_v24  ;;  %1997 = vst.msk [vmem:[#allocation5] sm:$0x1] %vm1996_vm2, %v1995_v28 }
 0x5b1   :  { %v3960_v5 = vpop.xlane.xlu0 %3959 }
 0x5b2   :  { %5730 = vrcp.f32 %v3960_v5 }
 0x5b5   :  { %v3981_v38 = vpop.xlane.xlu0 %3980 }
 0x5b6   :  { %vm3982_vm3 = vcmp.eq.f32.partialorder %v3979_v62, %v3981_v38 }
 0x5b7   :  { %v3983_v23 = vsel %vm3982_vm3, %v3978_v58, inf }
 0x5b8   :  { %3984 = vmin.xlane.f32.xlu0 %v3983_v23 }
 0x5bc   :  { %v5731_v45 = vpop.eup %5730 }
 0x5bd   :  { %v3962_v57 = vmul.f32 %v5731_v45, %v5729_v33 }
 0x5bf   :  { %v3964_v12 = vadd.f32 1e-06, %v3962_v57  ;;  %v3963_v43 = vsub.f32 0.0, %v3962_v57 }
 0x5c1   :  { %5732 = vlog2.f32 %v3964_v12 }
 0x5cb   :  { %v5733_v41 = vpop.eup %5732 }
 0x5cc   :  { %v3966_v63 = vmul.f32 0.6931472, %v5733_v41 }
 0x5ce   :  { %v3967_v42 = vmul.f32 %v3966_v63, %v3963_v43 }
 0x5d0   :  { %v3968_v9 = vsel %vm1976_vm14, %v3967_v42, 0.0 }
 0x5d1   :  { %3969 = vadd.xlane.f32.xlu0 %v3968_v9 }
 0x5d2   :  { %5747 = shalt.err (!%p5744_p4)
}
 0x5d3   :  { %s5748_s26 = scalar_lea.hbm %s8107_s6, 32 }
 0x5d4   :  { %p5749_p5 = scmp.ne.s32.totalorder %s8107_s6, %s5748_s26  ;;  %p5752_p6 = scmp.lt.u32.totalorder %s5748_s26, %s8107_s6 }
 0x5d6   :  { %p5754_p7 = pnand %p5752_p6, %p5749_p5 }
 0x5d8   :  { %5757 = shalt.err (!%p5754_p7)
}
 0x5d9   :  { %4000 = dma.vmem_to_hbm [thread:$0]  %s3998_s15, 32, %s8107_s6, [#allocation4]   ;;  %v3987_v26 = vcvt.f32.s32 %v3981_v38  ;;  %vm3971_vm4 = vcmask 8200  }
 0x5da   :  { %s5817_s17 = smov [#allocation5]   ;;  %s5818_s13 = smov [#allocation7]  }
 0x5db   :  { %v3988_v61 = vshll.u32 %v3987_v26, 16  ;;  %s4007_s18 = sshll.u32 %s5817_s17, 4  ;;  %s4017_s14 = sshll.u32 %s5818_s13, 4  ;;  %s4008_s18 = int_to_ptr.vmem [resolvable:$true] %s4007_s18  ;;  %s8069_s14 = int_to_ptr.vmem [resolvable:$true] %s4017_s14 }
 0x5dc   :  { %s5758_s16 = scalar_lea.vmem %s4008_s18, 16  ;;  %s5762_s19 = scalar_lea.vmem %s4008_s18, 32 }
 0x5dd   :  { %p5759_p8 = scmp.ne.s32.totalorder %s4008_s18, %s5758_s16  ;;  %p5763_p9 = scmp.lt.s32.totalorder %s4008_s18, %s4008_s18 }
 0x5de   :  { %p5764_p10 = scmp.lt.s32.totalorder %s5762_s19, %s5758_s16 }
 0x5e0   :  { %p5765_p11 = por %p5764_p10, %p5763_p9 }
 0x5e2   :  { %p5766_p12 = pnand %p5765_p11, %p5759_p8 }
 0x645   :  { %v3985_v19 = vpop.xlane.xlu0 %3984 }
 0x646   :  { %v3986_v8 = vcvt.f32.s32 %v3985_v19 }
 0x648   :  { %v3989_v22 = vadd.s32 %v3988_v61, %v3986_v8 }
 0x64a   :  { %3990 = vst.msk [vmem:[#allocation7] sm:$0x1] %vm3971_vm4, %v3989_v22 }
 0x65e   :  { %v3970_v54 = vpop.xlane.xlu0 %3969 }
 0x65f   :  { %3972 = vst.msk [vmem:[#allocation5] sm:$0x1] %vm3971_vm4, %v3970_v54 }
 0x660   :  { %5769 = shalt.err (!%p5766_p12)
}
 0x661   :  { %s5770_s21 = scalar_lea.hbm %s8108_s7, 16 }
 0x662   :  { %p5771_p13 = scmp.ne.s32.totalorder %s8108_s7, %s5770_s21  ;;  %p5774_p0 = scmp.lt.u32.totalorder %s5770_s21, %s8108_s7 }
 0x664   :  { %p5776_p1 = pnand %p5774_p0, %p5771_p13 }
 0x666   :  { %5779 = shalt.err (!%p5776_p1)
}
 0x667   :  { %4010 = dma.vmem_to_hbm [thread:$0]  %s4008_s18, 16, %s8108_s7, [#allocation6]  }
 0x668   :  { %s5780_s2 = scalar_lea.vmem %s8069_s14, 16  ;;  %s5784_s3 = scalar_lea.vmem %s8069_s14, 32 }
 0x669   :  { %p5781_p2 = scmp.ne.s32.totalorder %s8069_s14, %s5780_s2  ;;  %p5785_p3 = scmp.lt.s32.totalorder %s8069_s14, %s8069_s14 }
 0x66a   :  { %p5786_p4 = scmp.lt.s32.totalorder %s5784_s3, %s5780_s2 }
 0x66c   :  { %p5787_p5 = por %p5786_p4, %p5785_p3 }
 0x66e   :  { %p5788_p6 = pnand %p5787_p5, %p5781_p2 }
 0x670   :  { %5791 = shalt.err (!%p5788_p6)
}
 0x671   :  { %s5792_s22 = scalar_lea.hbm %s8109_s8, 16 }
 0x672   :  { %p5793_p7 = scmp.ne.s32.totalorder %s8109_s8, %s5792_s22  ;;  %p5796_p8 = scmp.lt.u32.totalorder %s5792_s22, %s8109_s8 }
 0x674   :  { %p5798_p9 = pnand %p5796_p8, %p5793_p7 }
 0x676   :  { %5801 = shalt.err (!%p5798_p9)
}
 0x677   :  { %4020 = dma.vmem_to_hbm [thread:$0]  %s8069_s14, 16, %s8109_s8, [#allocation6]  }
 0x678   :  { %5802 = dma.done.wait [#allocation4], 32  }
 0x679   :  { %5803 = vsyncadd [#allocation4], 4294967264 }
 0x67a   :  { %5804 = dma.done.wait [#allocation6], 32  }
 0x67b   :  { %5805 = vsyncadd [#allocation6], 4294967264 }
 0x67c   :  { %4030 = vsyncpa [#allocation4], 1 }
 0x67d   :  { %4031 = vsyncpa [#allocation6], 1 }

</bundles_post_ra>
